<compile_context>
chip_gen: v7x
topology: tpu7x:2x2x1
jax: 0.10.0
libtpu: 0.0.40
codegen_flags: <defaults>
</compile_context>

<pallas_src>
import functools

import jax
import jax.numpy as jnp
from jax.experimental import pallas as pl
from jax.experimental.pallas import tpu as pltpu


# ---------------------------------------------------------------------------
# Pass A: row-tiled feature transform   s1 = x @ W1     (W resident)
# ---------------------------------------------------------------------------
def _feature_matmul_kernel(x_ref, w_ref, out_ref):
    out_ref[...] = jnp.dot(
        x_ref[...], w_ref[...], preferred_element_type=jnp.float32
    ).astype(out_ref.dtype)


def _feature_matmul(x, w, *, row_tile, out_dtype, vmem_limit_bytes):
    n, f = x.shape
    h = w.shape[1]
    tm = min(row_tile, n)
    assert n % tm == 0, (n, tm)
    return pl.pallas_call(
        _feature_matmul_kernel,
        out_shape=jax.ShapeDtypeStruct((n, h), out_dtype),
        grid_spec=pltpu.PrefetchScalarGridSpec(
            num_scalar_prefetch=0,
            grid=(n // tm,),
            in_specs=[
                pl.BlockSpec((tm, f), lambda i: (i, 0)),
                pl.BlockSpec((f, h), lambda i: (0, 0)),    # weight resident
            ],
            out_specs=pl.BlockSpec((tm, h), lambda i: (i, 0)),
        ),
        compiler_params=pltpu.CompilerParams(
            dimension_semantics=("parallel",),
            vmem_limit_bytes=vmem_limit_bytes,
        ),
    )(x, w)


# ---------------------------------------------------------------------------
# Pass B (fused): two_hop = adj @ adj (diag zeroed)  AND  h1 = adj @ s1.
# Grid = (i rows, j cols, k reduction); s1 is a single resident VMEM block.
# ---------------------------------------------------------------------------
def _propagate_two_hop_kernel(a_row_ref, a_col_ref, s1_ref,
                              two_hop_ref, h1_ref,
                              th_acc, h1_acc):
    i = pl.program_id(0)
    j = pl.program_id(1)
    k = pl.program_id(2)
    k_last = pl.num_programs(2) - 1
    t = a_row_ref.shape[0]

    a_row = a_row_ref[...]            # adj[i, k] tile, shared by both products

    @pl.when(k == 0)
    def _():
        th_acc[...] = jnp.zeros_like(th_acc)

    th_acc[...] += jnp.dot(a_row, a_col_ref[...],
                           preferred_element_type=jnp.float32)

    # h1 = adj @ s1 is independent of j: accumulate it only during the first
    # column sweep. s1 is resident in VMEM, so there is no redundant DMA.
    @pl.when(j == 0)
    def _():
        @pl.when(k == 0)
        def _():
            h1_acc[...] = jnp.zeros_like(h1_acc)

        s1_tile = s1_ref[pl.ds(pl.multiple_of(k * t, t), t), :]
        h1_acc[...] += jnp.dot(a_row, s1_tile,
                               preferred_element_type=jnp.float32)

        @pl.when(k == k_last)
        def _():
            h1_ref[...] = h1_acc[...].astype(h1_ref.dtype)

    # Off-diagonal tiles: plain writeback.
    @pl.when(jnp.logical_and(k == k_last, i != j))
    def _():
        two_hop_ref[...] = th_acc[...].astype(two_hop_ref.dtype)

    # Diagonal tiles only: zero the diagonal with a small per-tile iota.
    @pl.when(jnp.logical_and(k == k_last, i == j))
    def _():
        tm, tn = th_acc.shape
        rows = jax.lax.broadcasted_iota(jnp.int32, (tm, tn), 0)
        cols = jax.lax.broadcasted_iota(jnp.int32, (tm, tn), 1)
        two_hop_ref[...] = jnp.where(
            rows == cols, jnp.float32(0.0), th_acc[...]
        ).astype(two_hop_ref.dtype)


def _propagate_and_two_hop(adj, s1, *, tile, h1_dtype, out_dtype,
                           vmem_limit_bytes):
    n = adj.shape[0]
    h = s1.shape[1]
    t = min(tile, n)
    assert n % t == 0, (n, t)
    nb = n // t
    # TODO(synk): for very large N (resident s1 > a few tens of MB) fall back
    # to a streamed, j==0-gated s1 BlockSpec instead of full residency.
    return pl.pallas_call(
        _propagate_two_hop_kernel,
        out_shape=(
            jax.ShapeDtypeStruct((n, n), out_dtype),   # adj_two_hop
            jax.ShapeDtypeStruct((n, h), h1_dtype),    # h1
        ),
        grid_spec=pltpu.PrefetchScalarGridSpec(
            num_scalar_prefetch=0,
            grid=(nb, nb, nb),
            in_specs=[
                pl.BlockSpec((t, t), lambda i, j, k: (i, k)),  # adj rows (LHS)
                pl.BlockSpec((t, t), lambda i, j, k: (k, j)),  # adj cols (RHS)
                pl.BlockSpec((n, h), lambda i, j, k: (0, 0)),  # s1 resident
            ],
            out_specs=(
                pl.BlockSpec((t, t), lambda i, j, k: (i, j)),  # two_hop tile
                pl.BlockSpec((t, h), lambda i, j, k: (i, 0)),  # h1 row slab
            ),
            scratch_shapes=[
                pltpu.VMEM((t, t), jnp.float32),
                pltpu.VMEM((t, h), jnp.float32),
            ],
        ),
        compiler_params=pltpu.CompilerParams(
            # j must stay "arbitrary": the h1 output block does not depend on
            # j, so sharding j across TensorCores would race on its writeback.
            dimension_semantics=("parallel", "arbitrary", "arbitrary"),
            vmem_limit_bytes=vmem_limit_bytes,
        ),
    )(adj, adj, s1)


# ---------------------------------------------------------------------------
# Pass C (fused gc2): h2 = adj @ (h1 @ W2).  W2 and h1 resident in VMEM;
# the s2 tile is recomputed on-chip per (i, k) — cheap vs. adj streaming.
# ---------------------------------------------------------------------------
def _propagate_gc2_kernel(a_ref, h1_all_ref, w2_ref, h2_ref, acc_ref):
    k = pl.program_id(1)
    t = a_ref.shape[1]

    @pl.when(k == 0)
    def _():
        acc_ref[...] = jnp.zeros_like(acc_ref)

    h1_tile = h1_all_ref[pl.ds(pl.multiple_of(k * t, t), t), :]
    s2_tile = jnp.dot(h1_tile, w2_ref[...],
                      preferred_element_type=jnp.float32)
    acc_ref[...] += jnp.dot(a_ref[...], s2_tile.astype(a_ref.dtype),
                            preferred_element_type=jnp.float32)

    @pl.when(k == pl.num_programs(1) - 1)
    def _():
        h2_ref[...] = acc_ref[...].astype(h2_ref.dtype)


def _propagate_gc2(adj, h1, w2, *, tile, out_dtype, vmem_limit_bytes):
    n = adj.shape[0]
    h1d = h1.shape[1]
    h2d = w2.shape[1]
    t = min(tile, n)
    assert n % t == 0, (n, t)
    nb = n // t
    return pl.pallas_call(
        _propagate_gc2_kernel,
        out_shape=jax.ShapeDtypeStruct((n, h2d), out_dtype),
        grid_spec=pltpu.PrefetchScalarGridSpec(
            num_scalar_prefetch=0,
            grid=(nb, nb),
            in_specs=[
                pl.BlockSpec((t, t), lambda i, k: (i, k)),      # adj stream
                pl.BlockSpec((n, h1d), lambda i, k: (0, 0)),    # h1 resident
                pl.BlockSpec((h1d, h2d), lambda i, k: (0, 0)),  # W2 resident
            ],
            out_specs=pl.BlockSpec((t, h2d), lambda i, k: (i, 0)),
            scratch_shapes=[pltpu.VMEM((t, h2d), jnp.float32)],
        ),
        compiler_params=pltpu.CompilerParams(
            dimension_semantics=("parallel", "arbitrary"),
            vmem_limit_bytes=vmem_limit_bytes,
        ),
    )(adj, h1, w2)


# ---------------------------------------------------------------------------
# Pass D: decoder  rec = h1 @ h2^T   (contract last dims, no transpose)
# ---------------------------------------------------------------------------
def _decoder_kernel(h1_ref, h2_ref, rec_ref):
    rec_ref[...] = jax.lax.dot_general(
        h1_ref[...], h2_ref[...],
        dimension_numbers=(((1,), (1,)), ((), ())),
        preferred_element_type=jnp.float32,
    ).astype(rec_ref.dtype)


def _decode(h1, h2, *, tile, out_dtype, vmem_limit_bytes):
    n, h = h1.shape
    assert h2.shape == (n, h)
    t = min(tile, n)
    assert n % t == 0, (n, t)
    nb = n // t
    return pl.pallas_call(
        _decoder_kernel,
        out_shape=jax.ShapeDtypeStruct((n, n), out_dtype),
        grid_spec=pltpu.PrefetchScalarGridSpec(
            num_scalar_prefetch=0,
            grid=(nb, nb),
            in_specs=[
                pl.BlockSpec((t, h), lambda i, j: (i, 0)),
                pl.BlockSpec((t, h), lambda i, j: (j, 0)),
            ],
            out_specs=pl.BlockSpec((t, t), lambda i, j: (i, j)),
        ),
        compiler_params=pltpu.CompilerParams(
            dimension_semantics=("parallel", "parallel"),
            vmem_limit_bytes=vmem_limit_bytes,
        ),
    )(h1, h2)


# ---------------------------------------------------------------------------
# Full forward
# ---------------------------------------------------------------------------
@functools.partial(
    jax.jit,
    static_argnames=("tile", "row_tile", "compute_dtype", "out_dtype",
                     "vmem_limit_bytes"))
def gcn_modified_ae_boosting_first_layer(
        x, adj, w1, w2, *,
        tile=512,                      # matmul tile (B/C/D); keep nb_i >= 2 on v7x
        row_tile=1024,                 # Pass A row slab
        compute_dtype=jnp.float32,     # jnp.bfloat16 -> bf16 MXU operands, f32 acc
        out_dtype=None,                # dtype of rec / two_hop (default: compute)
        vmem_limit_bytes=32 * 1024 * 1024):
    """Returns (adj_recovered, (h1, h2), adj_two_hop)."""
    n, f = x.shape
    h1_dim = w1.shape[1]
    h2_dim = w2.shape[1]
    assert adj.shape == (n, n)
    assert w1.shape[0] == f and w2.shape[0] == h1_dim
    # The PyTorch forward does embeddings[0] @ embeddings[1].t(), which is
    # only well-formed when hidden_dim1 == hidden_dim2.
    assert h1_dim == h2_dim, "module requires hidden_dim1 == hidden_dim2"

    cd = compute_dtype
    od = compute_dtype if out_dtype is None else out_dtype

    # Single hoisted casts (one pass over each array, independent of XLA CSE).
    adj_c = adj.astype(cd)
    x_c = x.astype(cd)
    w1_c = w1.astype(cd)
    w2_c = w2.astype(cd)

    # Pass A: s1 = x @ W1  (emitted directly in compute dtype).
    s1 = _feature_matmul(x_c, w1_c, row_tile=row_tile, out_dtype=cd,
                         vmem_limit_bytes=vmem_limit_bytes)

    # Pass B: two_hop = adj@adj (diag zeroed)  and  h1 = adj@s1, sharing the
    # streamed adj LHS tile; s1 fully resident in VMEM.
    two_hop, h1 = _propagate_and_two_hop(
        adj_c, s1, tile=tile, h1_dtype=cd, out_dtype=od,
        vmem_limit_bytes=vmem_limit_bytes)

    # Pass C: h2 = adj @ (h1 @ W2), with the gc2 feature transform fused.
    h2 = _propagate_gc2(adj_c, h1, w2_c, tile=tile, out_dtype=cd,
                        vmem_limit_bytes=vmem_limit_bytes)

    # Pass D: rec = h1 @ h2^T.
    rec = _decode(h1, h2, tile=tile, out_dtype=od,
                  vmem_limit_bytes=vmem_limit_bytes)

    return rec, (h1, h2), two_hop


# ---------------------------------------------------------------------------
# Demo / self-check
# ---------------------------------------------------------------------------
def _glorot_uniform(key, shape):
    fan_in, fan_out = shape
    limit = jnp.sqrt(6.0 / (fan_in + fan_out))
    return jax.random.uniform(key, shape, jnp.float32, -limit, limit)


def _reference(x, adj, w1, w2):
    h1 = adj @ (x @ w1)
    h2 = adj @ (h1 @ w2)
    rec = h1 @ h2.T
    th = adj @ adj
    th = th - jnp.diag(jnp.diag(th))
    return rec, (h1, h2), th


if __name__ == "__main__":
    # Small synthetic graph.  hidden_dim1 == hidden_dim2 is required by the
    # module's decoder; 128-wide hidden dims keep h1/h2 lane-dense.
    N, F_IN, H1, H2 = 512, 128, 128, 128

    key = jax.random.PRNGKey(0)
    kx, ka, kw1, kw2 = jax.random.split(key, 4)

    x = jax.random.normal(kx, (N, F_IN), jnp.float32)
    # symmetric, degree-normalized dense adjacency (self-loops + random edges)
    a_raw = (jax.random.uniform(ka, (N, N)) > 0.9).astype(jnp.float32)
    a_sym = jnp.clip(a_raw + a_raw.T + jnp.eye(N, dtype=jnp.float32), 0.0, 1.0)
    deg = jnp.sum(a_sym, axis=1)
    d_inv_sqrt = 1.0 / jnp.sqrt(deg)
    adj = a_sym * d_inv_sqrt[:, None] * d_inv_sqrt[None, :]

    w1 = _glorot_uniform(kw1, (F_IN, H1))
    w2 = _glorot_uniform(kw2, (H1, H2))

    # tile=128 exercises a non-trivial (4, 4, 4) fused grid at this size
    # (production default is tile=512); row_tile=256 exercises Pass A's grid.
    rec, (h1, h2), two_hop = gcn_modified_ae_boosting_first_layer(
        x, adj, w1, w2, tile=128, row_tile=256)
    jax.block_until_ready((rec, h1, h2, two_hop))

    r_rec, (r_h1, r_h2), r_th = _reference(x, adj, w1, w2)
    for name, got, want in (("h1", h1, r_h1),
                            ("h2", h2, r_h2),
                            ("adj_recovered", rec, r_rec),
                            ("adj_two_hop", two_hop, r_th)):
        ok = jnp.allclose(got, want, atol=2e-4, rtol=2e-4)
        assert bool(ok), (name, float(jnp.max(jnp.abs(got - want))))

    # bf16-operand smoke run (f32 accumulation retained): verifies the MXU
    # bf16 path compiles/runs; generous tolerance (operand rounding).
    rec_b, (h1_b, h2_b), th_b = gcn_modified_ae_boosting_first_layer(
        x, adj, w1, w2, tile=128, row_tile=256, compute_dtype=jnp.bfloat16)
    jax.block_until_ready((rec_b, h1_b, h2_b, th_b))
    err = jnp.max(jnp.abs(h1_b.astype(jnp.float32) - r_h1))
    bound = 0.1 * jnp.max(jnp.abs(r_h1)) + 1e-2
    assert bool(err < bound), ("bf16 h1", float(err), float(bound))

    print("KERNEL_OK")
</pallas_src>

<mosaic_0001>
module attributes {stable_mosaic.version = 11 : i64} {
  func.func @_propagate_gc2_kernel(%arg0: i32, %arg1: i32, %arg2: memref<128x128xf32, #tpu.memory_space<vmem>>, %arg3: memref<512x128xf32, #tpu.memory_space<vmem>>, %arg4: memref<128x128xf32, #tpu.memory_space<vmem>>, %arg5: memref<128x128xf32, #tpu.memory_space<vmem>>, %arg6: memref<128x128xf32, #tpu.memory_space<vmem>>) attributes {dimension_semantics = [#tpu.dimension_semantics<parallel>, #tpu.dimension_semantics<arbitrary>], iteration_bounds = array<i64: 4, 4>, scalar_prefetch = 0 : i64, scratch_operands = 1 : i64, tpu.core_type = #tpu.core_type<tc>, window_params = [{transform_indices = @transform_0, window_bounds = array<i64: 128, 128>}, {pipeline_mode = #tpu.pipeline_mode<synchronous>, transform_indices = @transform_1, window_bounds = array<i64: 512, 128>}, {pipeline_mode = #tpu.pipeline_mode<synchronous>, transform_indices = @transform_2, window_bounds = array<i64: 128, 128>}, {transform_indices = @transform_3, window_bounds = array<i64: 128, 128>}]} {
    %c0_i32 = arith.constant 0 : i32
    %0 = arith.cmpi eq, %arg1, %c0_i32 : i32
    %1 = arith.extui %0 : i1 to i32
    %c0_i32_0 = arith.constant 0 : i32
    %2 = arith.cmpi ne, %1, %c0_i32_0 : i32
    scf.if %2 {
      %cst_11 = arith.constant 0.000000e+00 : f32
      %17 = vector.broadcast %cst_11 : f32 to vector<128x128xf32>
      %c0_12 = arith.constant 0 : index
      %c0_13 = arith.constant 0 : index
      %18 = vector.load %arg6[%c0_12, %c0_13] : memref<128x128xf32, #tpu.memory_space<vmem>>, vector<128x128xf32>
      tpu.vector_store %arg6[%c0_12, %c0_13], %17 {strides = array<i32>} : memref<128x128xf32, #tpu.memory_space<vmem>>, vector<128x128xf32>,
    } else {
    }
    %c128_i32 = arith.constant 128 : i32
    %3 = arith.muli %arg1, %c128_i32 : i32
    %4 = tpu.assume_multiple %3, 128 : i32
    %5 = arith.index_cast %4 : i32 to index
    %c0 = arith.constant 0 : index
    %6 = vector.load %arg3[%5, %c0] : memref<512x128xf32, #tpu.memory_space<vmem>>, vector<128x128xf32>
    %c0_1 = arith.constant 0 : index
    %c0_2 = arith.constant 0 : index
    %7 = vector.load %arg4[%c0_1, %c0_2] : memref<128x128xf32, #tpu.memory_space<vmem>>, vector<128x128xf32>
    %cst = arith.constant dense<0.000000e+00> : vector<128x128xf32>
    %8 = tpu.matmul %6, %7, %cst {dimension_numbers = #tpu.dot_dimension_numbers<[1], [0], [0], [1], [0, 0, 1, 1], [], []>} : vector<128x128xf32>, vector<128x128xf32>, vector<128x128xf32> -> vector<128x128xf32>
    %c0_3 = arith.constant 0 : index
    %c0_4 = arith.constant 0 : index
    %9 = vector.load %arg6[%c0_3, %c0_4] : memref<128x128xf32, #tpu.memory_space<vmem>>, vector<128x128xf32>
    %c0_5 = arith.constant 0 : index
    %c0_6 = arith.constant 0 : index
    %10 = vector.load %arg2[%c0_5, %c0_6] : memref<128x128xf32, #tpu.memory_space<vmem>>, vector<128x128xf32>
    %cst_7 = arith.constant dense<0.000000e+00> : vector<128x128xf32>
    %11 = tpu.matmul %10, %8, %cst_7 {dimension_numbers = #tpu.dot_dimension_numbers<[1], [0], [0], [1], [0, 0, 1, 1], [], []>} : vector<128x128xf32>, vector<128x128xf32>, vector<128x128xf32> -> vector<128x128xf32>
    %12 = arith.addf %9, %11 : vector<128x128xf32>
    %c0_8 = arith.constant 0 : index
    %c0_9 = arith.constant 0 : index
    %13 = vector.load %arg6[%c0_8, %c0_9] : memref<128x128xf32, #tpu.memory_space<vmem>>, vector<128x128xf32>
    tpu.vector_store %arg6[%c0_8, %c0_9], %12 {strides = array<i32>} : memref<128x128xf32, #tpu.memory_space<vmem>>, vector<128x128xf32>,
    %c3_i32 = arith.constant 3 : i32
    %14 = arith.cmpi eq, %arg1, %c3_i32 : i32
    %15 = arith.extui %14 : i1 to i32
    %c0_i32_10 = arith.constant 0 : i32
    %16 = arith.cmpi ne, %15, %c0_i32_10 : i32
    scf.if %16 {
      %c0_11 = arith.constant 0 : index
      %c0_12 = arith.constant 0 : index
      %17 = vector.load %arg6[%c0_11, %c0_12] : memref<128x128xf32, #tpu.memory_space<vmem>>, vector<128x128xf32>
      %c0_13 = arith.constant 0 : index
      %c0_14 = arith.constant 0 : index
      %18 = vector.load %arg5[%c0_13, %c0_14] : memref<128x128xf32, #tpu.memory_space<vmem>>, vector<128x128xf32>
      tpu.vector_store %arg5[%c0_13, %c0_14], %17 {strides = array<i32>} : memref<128x128xf32, #tpu.memory_space<vmem>>, vector<128x128xf32>,
    } else {
    }
    return
  }
  func.func @transform_0(%arg0: i32, %arg1: i32) -> (i32, i32) {
    %c0_i32 = arith.constant 0 : i32
    return %arg0, %arg1 : i32, i32
  }
  func.func @transform_1(%arg0: i32, %arg1: i32) -> (i32, i32) {
    %c0_i32 = arith.constant 0 : i32
    %c0_i32_0 = arith.constant 0 : i32
    %c0_i32_1 = arith.constant 0 : i32
    return %c0_i32, %c0_i32_0 : i32, i32
  }
  func.func @transform_2(%arg0: i32, %arg1: i32) -> (i32, i32) {
    %c0_i32 = arith.constant 0 : i32
    %c0_i32_0 = arith.constant 0 : i32
    %c0_i32_1 = arith.constant 0 : i32
    return %c0_i32, %c0_i32_0 : i32, i32
  }
  func.func @transform_3(%arg0: i32, %arg1: i32) -> (i32, i32) {
    %c0_i32 = arith.constant 0 : i32
    %c0_i32_0 = arith.constant 0 : i32
    return %arg0, %c0_i32 : i32, i32
  }
}

module attributes {stable_mosaic.version = 11 : i64} {
  func.func @_propagate_two_hop_kernel(%arg0: i32, %arg1: i32, %arg2: i32, %arg3: memref<128x128xf32, #tpu.memory_space<vmem>>, %arg4: memref<128x128xf32, #tpu.memory_space<vmem>>, %arg5: memref<512x128xf32, #tpu.memory_space<vmem>>, %arg6: memref<128x128xf32, #tpu.memory_space<vmem>>, %arg7: memref<128x128xf32, #tpu.memory_space<vmem>>, %arg8: memref<128x128xf32, #tpu.memory_space<vmem>>, %arg9: memref<128x128xf32, #tpu.memory_space<vmem>>) attributes {dimension_semantics = [#tpu.dimension_semantics<parallel>, #tpu.dimension_semantics<arbitrary>, #tpu.dimension_semantics<arbitrary>], iteration_bounds = array<i64: 4, 4, 4>, scalar_prefetch = 0 : i64, scratch_operands = 2 : i64, tpu.core_type = #tpu.core_type<tc>, window_params = [{transform_indices = @transform_0, window_bounds = array<i64: 128, 128>}, {transform_indices = @transform_1, window_bounds = array<i64: 128, 128>}, {pipeline_mode = #tpu.pipeline_mode<synchronous>, transform_indices = @transform_2, window_bounds = array<i64: 512, 128>}, {transform_indices = @transform_3, window_bounds = array<i64: 128, 128>}, {transform_indices = @transform_4, window_bounds = array<i64: 128, 128>}]} {
    %c0 = arith.constant 0 : index
    %c0_0 = arith.constant 0 : index
    %0 = vector.load %arg3[%c0, %c0_0] : memref<128x128xf32, #tpu.memory_space<vmem>>, vector<128x128xf32>
    %c0_i32 = arith.constant 0 : i32
    %1 = arith.cmpi eq, %arg2, %c0_i32 : i32
    %2 = arith.extui %1 : i1 to i32
    %c0_i32_1 = arith.constant 0 : i32
    %3 = arith.cmpi ne, %2, %c0_i32_1 : i32
    scf.if %3 {
      %cst_13 = arith.constant 0.000000e+00 : f32
      %22 = vector.broadcast %cst_13 : f32 to vector<128x128xf32>
      %c0_14 = arith.constant 0 : index
      %c0_15 = arith.constant 0 : index
      %23 = vector.load %arg8[%c0_14, %c0_15] : memref<128x128xf32, #tpu.memory_space<vmem>>, vector<128x128xf32>
      tpu.vector_store %arg8[%c0_14, %c0_15], %22 {strides = array<i32>} : memref<128x128xf32, #tpu.memory_space<vmem>>, vector<128x128xf32>,
    } else {
    }
    %c0_2 = arith.constant 0 : index
    %c0_3 = arith.constant 0 : index
    %4 = vector.load %arg8[%c0_2, %c0_3] : memref<128x128xf32, #tpu.memory_space<vmem>>, vector<128x128xf32>
    %c0_4 = arith.constant 0 : index
    %c0_5 = arith.constant 0 : index
    %5 = vector.load %arg4[%c0_4, %c0_5] : memref<128x128xf32, #tpu.memory_space<vmem>>, vector<128x128xf32>
    %cst = arith.constant dense<0.000000e+00> : vector<128x128xf32>
    %6 = tpu.matmul %0, %5, %cst {dimension_numbers = #tpu.dot_dimension_numbers<[1], [0], [0], [1], [0, 0, 1, 1], [], []>} : vector<128x128xf32>, vector<128x128xf32>, vector<128x128xf32> -> vector<128x128xf32>
    %7 = arith.addf %4, %6 : vector<128x128xf32>
    %c0_6 = arith.constant 0 : index
    %c0_7 = arith.constant 0 : index
    %8 = vector.load %arg8[%c0_6, %c0_7] : memref<128x128xf32, #tpu.memory_space<vmem>>, vector<128x128xf32>
    tpu.vector_store %arg8[%c0_6, %c0_7], %7 {strides = array<i32>} : memref<128x128xf32, #tpu.memory_space<vmem>>, vector<128x128xf32>,
    %c0_i32_8 = arith.constant 0 : i32
    %9 = arith.cmpi eq, %arg1, %c0_i32_8 : i32
    %10 = arith.extui %9 : i1 to i32
    %c0_i32_9 = arith.constant 0 : i32
    %11 = arith.cmpi ne, %10, %c0_i32_9 : i32
    scf.if %11 {
      %c0_i32_13 = arith.constant 0 : i32
      %22 = arith.cmpi eq, %arg2, %c0_i32_13 : i32
      %23 = arith.extui %22 : i1 to i32
      %c0_i32_14 = arith.constant 0 : i32
      %24 = arith.cmpi ne, %23, %c0_i32_14 : i32
      scf.if %24 {
        %cst_23 = arith.constant 0.000000e+00 : f32
        %36 = vector.broadcast %cst_23 : f32 to vector<128x128xf32>
        %c0_24 = arith.constant 0 : index
        %c0_25 = arith.constant 0 : index
        %37 = vector.load %arg9[%c0_24, %c0_25] : memref<128x128xf32, #tpu.memory_space<vmem>>, vector<128x128xf32>
        tpu.vector_store %arg9[%c0_24, %c0_25], %36 {strides = array<i32>} : memref<128x128xf32, #tpu.memory_space<vmem>>, vector<128x128xf32>,
      } else {
      }
      %c128_i32 = arith.constant 128 : i32
      %25 = arith.muli %arg2, %c128_i32 : i32
      %26 = tpu.assume_multiple %25, 128 : i32
      %27 = arith.index_cast %26 : i32 to index
      %c0_15 = arith.constant 0 : index
      %28 = vector.load %arg5[%27, %c0_15] : memref<512x128xf32, #tpu.memory_space<vmem>>, vector<128x128xf32>
      %c0_16 = arith.constant 0 : index
      %c0_17 = arith.constant 0 : index
      %29 = vector.load %arg9[%c0_16, %c0_17] : memref<128x128xf32, #tpu.memory_space<vmem>>, vector<128x128xf32>
      %cst_18 = arith.constant dense<0.000000e+00> : vector<128x128xf32>
      %30 = tpu.matmul %0, %28, %cst_18 {dimension_numbers = #tpu.dot_dimension_numbers<[1], [0], [0], [1], [0, 0, 1, 1], [], []>} : vector<128x128xf32>, vector<128x128xf32>, vector<128x128xf32> -> vector<128x128xf32>
      %31 = arith.addf %29, %30 : vector<128x128xf32>
      %c0_19 = arith.constant 0 : index
      %c0_20 = arith.constant 0 : index
      %32 = vector.load %arg9[%c0_19, %c0_20] : memref<128x128xf32, #tpu.memory_space<vmem>>, vector<128x128xf32>
      tpu.vector_store %arg9[%c0_19, %c0_20], %31 {strides = array<i32>} : memref<128x128xf32, #tpu.memory_space<vmem>>, vector<128x128xf32>,
      %c3_i32_21 = arith.constant 3 : i32
      %33 = arith.cmpi eq, %arg2, %c3_i32_21 : i32
      %34 = arith.extui %33 : i1 to i32
      %c0_i32_22 = arith.constant 0 : i32
      %35 = arith.cmpi ne, %34, %c0_i32_22 : i32
      scf.if %35 {
        %c0_23 = arith.constant 0 : index
        %c0_24 = arith.constant 0 : index
        %36 = vector.load %arg9[%c0_23, %c0_24] : memref<128x128xf32, #tpu.memory_space<vmem>>, vector<128x128xf32>
        %c0_25 = arith.constant 0 : index
        %c0_26 = arith.constant 0 : index
        %37 = vector.load %arg7[%c0_25, %c0_26] : memref<128x128xf32, #tpu.memory_space<vmem>>, vector<128x128xf32>
        tpu.vector_store %arg7[%c0_25, %c0_26], %36 {strides = array<i32>} : memref<128x128xf32, #tpu.memory_space<vmem>>, vector<128x128xf32>,
      } else {
      }
    } else {
    }
    %c3_i32 = arith.constant 3 : i32
    %12 = arith.cmpi eq, %arg2, %c3_i32 : i32
    %13 = arith.cmpi ne, %arg0, %arg1 : i32
    %14 = arith.andi %12, %13 : i1
    %15 = arith.extui %14 : i1 to i32
    %c0_i32_10 = arith.constant 0 : i32
    %16 = arith.cmpi ne, %15, %c0_i32_10 : i32
    scf.if %16 {
      %c0_13 = arith.constant 0 : index
      %c0_14 = arith.constant 0 : index
      %22 = vector.load %arg8[%c0_13, %c0_14] : memref<128x128xf32, #tpu.memory_space<vmem>>, vector<128x128xf32>
      %c0_15 = arith.constant 0 : index
      %c0_16 = arith.constant 0 : index
      %23 = vector.load %arg6[%c0_15, %c0_16] : memref<128x128xf32, #tpu.memory_space<vmem>>, vector<128x128xf32>
      tpu.vector_store %arg6[%c0_15, %c0_16], %22 {strides = array<i32>} : memref<128x128xf32, #tpu.memory_space<vmem>>, vector<128x128xf32>,
    } else {
    }
    %c3_i32_11 = arith.constant 3 : i32
    %17 = arith.cmpi eq, %arg2, %c3_i32_11 : i32
    %18 = arith.cmpi eq, %arg0, %arg1 : i32
    %19 = arith.andi %17, %18 : i1
    %20 = arith.extui %19 : i1 to i32
    %c0_i32_12 = arith.constant 0 : i32
    %21 = arith.cmpi ne, %20, %c0_i32_12 : i32
    scf.if %21 {
      %22 = tpu.iota {dimensions = array<i32: 0>} : vector<128x128xi32>
      %23 = tpu.iota {dimensions = array<i32: 1>} : vector<128x128xi32>
      %24 = arith.cmpi eq, %22, %23 : vector<128x128xi32>
      %c0_13 = arith.constant 0 : index
      %c0_14 = arith.constant 0 : index
      %25 = vector.load %arg8[%c0_13, %c0_14] : memref<128x128xf32, #tpu.memory_space<vmem>>, vector<128x128xf32>
      %cst_15 = arith.constant 0.000000e+00 : f32
      %26 = vector.broadcast %cst_15 : f32 to vector<128x128xf32>
      %27 = arith.select %24, %26, %25 : vector<128x128xi1>, vector<128x128xf32>
      %c0_16 = arith.constant 0 : index
      %c0_17 = arith.constant 0 : index
      %28 = vector.load %arg6[%c0_16, %c0_17] : memref<128x128xf32, #tpu.memory_space<vmem>>, vector<128x128xf32>
      tpu.vector_store %arg6[%c0_16, %c0_17], %27 {strides = array<i32>} : memref<128x128xf32, #tpu.memory_space<vmem>>, vector<128x128xf32>,
    } else {
    }
    return
  }
  func.func @transform_0(%arg0: i32, %arg1: i32, %arg2: i32) -> (i32, i32) {
    %c0_i32 = arith.constant 0 : i32
    return %arg0, %arg2 : i32, i32
  }
  func.func @transform_1(%arg0: i32, %arg1: i32, %arg2: i32) -> (i32, i32) {
    %c0_i32 = arith.constant 0 : i32
    return %arg2, %arg1 : i32, i32
  }
  func.func @transform_2(%arg0: i32, %arg1: i32, %arg2: i32) -> (i32, i32) {
    %c0_i32 = arith.constant 0 : i32
    %c0_i32_0 = arith.constant 0 : i32
    %c0_i32_1 = arith.constant 0 : i32
    return %c0_i32, %c0_i32_0 : i32, i32
  }
  func.func @transform_3(%arg0: i32, %arg1: i32, %arg2: i32) -> (i32, i32) {
    %c0_i32 = arith.constant 0 : i32
    return %arg0, %arg1 : i32, i32
  }
  func.func @transform_4(%arg0: i32, %arg1: i32, %arg2: i32) -> (i32, i32) {
    %c0_i32 = arith.constant 0 : i32
    %c0_i32_0 = arith.constant 0 : i32
    return %arg0, %c0_i32 : i32, i32
  }
}

module attributes {stable_mosaic.version = 11 : i64} {
  func.func @_feature_matmul_kernel(%arg0: i32, %arg1: memref<256x128xf32, #tpu.memory_space<vmem>>, %arg2: memref<128x128xf32, #tpu.memory_space<vmem>>, %arg3: memref<256x128xf32, #tpu.memory_space<vmem>>) attributes {dimension_semantics = [#tpu.dimension_semantics<parallel>], iteration_bounds = array<i64: 2>, scalar_prefetch = 0 : i64, scratch_operands = 0 : i64, tpu.core_type = #tpu.core_type<tc>, window_params = [{transform_indices = @transform_0, window_bounds = array<i64: 256, 128>}, {pipeline_mode = #tpu.pipeline_mode<synchronous>, transform_indices = @transform_1, window_bounds = array<i64: 128, 128>}, {transform_indices = @transform_2, window_bounds = array<i64: 256, 128>}]} {
    %c0 = arith.constant 0 : index
    %c0_0 = arith.constant 0 : index
    %0 = vector.load %arg1[%c0, %c0_0] : memref<256x128xf32, #tpu.memory_space<vmem>>, vector<256x128xf32>
    %c0_1 = arith.constant 0 : index
    %c0_2 = arith.constant 0 : index
    %1 = vector.load %arg2[%c0_1, %c0_2] : memref<128x128xf32, #tpu.memory_space<vmem>>, vector<128x128xf32>
    %cst = arith.constant dense<0.000000e+00> : vector<256x128xf32>
    %2 = tpu.matmul %0, %1, %cst {dimension_numbers = #tpu.dot_dimension_numbers<[1], [0], [0], [1], [0, 0, 1, 1], [], []>} : vector<256x128xf32>, vector<128x128xf32>, vector<256x128xf32> -> vector<256x128xf32>
    %c0_3 = arith.constant 0 : index
    %c0_4 = arith.constant 0 : index
    %3 = vector.load %arg3[%c0_3, %c0_4] : memref<256x128xf32, #tpu.memory_space<vmem>>, vector<256x128xf32>
    tpu.vector_store %arg3[%c0_3, %c0_4], %2 {strides = array<i32>} : memref<256x128xf32, #tpu.memory_space<vmem>>, vector<256x128xf32>,
    return
  }
  func.func @transform_0(%arg0: i32) -> (i32, i32) {
    %c0_i32 = arith.constant 0 : i32
    %c0_i32_0 = arith.constant 0 : i32
    return %arg0, %c0_i32 : i32, i32
  }
  func.func @transform_1(%arg0: i32) -> (i32, i32) {
    %c0_i32 = arith.constant 0 : i32
    %c0_i32_0 = arith.constant 0 : i32
    %c0_i32_1 = arith.constant 0 : i32
    return %c0_i32, %c0_i32_0 : i32, i32
  }
  func.func @transform_2(%arg0: i32) -> (i32, i32) {
    %c0_i32 = arith.constant 0 : i32
    %c0_i32_0 = arith.constant 0 : i32
    return %arg0, %c0_i32 : i32, i32
  }
}

module attributes {stable_mosaic.version = 11 : i64} {
  func.func @_decoder_kernel(%arg0: i32, %arg1: i32, %arg2: memref<128x128xf32, #tpu.memory_space<vmem>>, %arg3: memref<128x128xf32, #tpu.memory_space<vmem>>, %arg4: memref<128x128xf32, #tpu.memory_space<vmem>>) attributes {dimension_semantics = [#tpu.dimension_semantics<parallel>, #tpu.dimension_semantics<parallel>], iteration_bounds = array<i64: 4, 4>, scalar_prefetch = 0 : i64, scratch_operands = 0 : i64, tpu.core_type = #tpu.core_type<tc>, window_params = [{transform_indices = @transform_0, window_bounds = array<i64: 128, 128>}, {transform_indices = @transform_1, window_bounds = array<i64: 128, 128>}, {transform_indices = @transform_2, window_bounds = array<i64: 128, 128>}]} {
    %c0 = arith.constant 0 : index
    %c0_0 = arith.constant 0 : index
    %0 = vector.load %arg2[%c0, %c0_0] : memref<128x128xf32, #tpu.memory_space<vmem>>, vector<128x128xf32>
    %c0_1 = arith.constant 0 : index
    %c0_2 = arith.constant 0 : index
    %1 = vector.load %arg3[%c0_1, %c0_2] : memref<128x128xf32, #tpu.memory_space<vmem>>, vector<128x128xf32>
    %cst = arith.constant dense<0.000000e+00> : vector<128x128xf32>
    %2 = tpu.matmul %0, %1, %cst {dimension_numbers = #tpu.dot_dimension_numbers<[1], [1], [0], [0], [0, 0, 1, 0], [], []>} : vector<128x128xf32>, vector<128x128xf32>, vector<128x128xf32> -> vector<128x128xf32>
    %c0_3 = arith.constant 0 : index
    %c0_4 = arith.constant 0 : index
    %3 = vector.load %arg4[%c0_3, %c0_4] : memref<128x128xf32, #tpu.memory_space<vmem>>, vector<128x128xf32>
    tpu.vector_store %arg4[%c0_3, %c0_4], %2 {strides = array<i32>} : memref<128x128xf32, #tpu.memory_space<vmem>>, vector<128x128xf32>,
    return
  }
  func.func @transform_0(%arg0: i32, %arg1: i32) -> (i32, i32) {
    %c0_i32 = arith.constant 0 : i32
    %c0_i32_0 = arith.constant 0 : i32
    return %arg0, %c0_i32 : i32, i32
  }
  func.func @transform_1(%arg0: i32, %arg1: i32) -> (i32, i32) {
    %c0_i32 = arith.constant 0 : i32
    %c0_i32_0 = arith.constant 0 : i32
    return %arg1, %c0_i32 : i32, i32
  }
  func.func @transform_2(%arg0: i32, %arg1: i32) -> (i32, i32) {
    %c0_i32 = arith.constant 0 : i32
    return %arg0, %arg1 : i32, i32
  }
}

</mosaic_0001>

<bundles_post_ra>
// kernel: gcn_modified_ae_boosting_first_layer.7
= control target key start
LH: loop header
LB: loop body
LE: loop exit
PB: predicated region body
PF: predicated region fallthrough
CT: control target
= control target key end

     0   :  { %7 = vsyncpa [#allocation3], 0  ;;  %s1019_s0 = inlined_call_operand.vmem [shape: f32[512,128], index: 0, kind: input, shape index: {}]   ;;  %s1020_s1 = inlined_call_operand.vmem [shape: f32[512,128], index: 1, kind: input, shape index: {}]   ;;  %s1021_s2 = inlined_call_operand.hbm [shape: f32[512,512], index: 2, kind: output, shape index: {}]  }
   0x1   :  { %9 = vsyncpa [#allocation3 + $0x1], 0  ;;  %s819_s9 = smov 0   ;;  %s821_s10 = smov 0  }
   0x2   :  { %s823_s11 = smov 0   ;;  %s825_s12 = smov 0  }
   0x3   :  { %s827_s13 = smov 0   ;;  %s829_s14 = smov 0  }
   0x4   :  { %s831_s15 = smov 0   ;;  %s833_s16 = smov 0  }
   0x5 LB: > { %s477_s17 = sadd.s32 4294967295, %s798_s16   ;;  %s478_s18 = sadd.s32 4294967294, %s798_s16   ;;  %s798_s16 = sphi %s833_s16, %s15_s16   ;;  %s794_s15 = sphi %s831_s15, %s1030_s15   ;;  %s790_s14 = sphi %s829_s14, %s1029_s14   ;;  %s786_s13 = sphi %s827_s13, %s1028_s13   ;;  %s782_s12 = sphi %s825_s12, %s1027_s12   ;;  %s778_s11 = sphi %s823_s11, %s1026_s11   ;;  %s774_s10 = sphi %s821_s10, %s1025_s10   ;;  %s770_s9 = sphi %s819_s9, %s1024_s9  }
   0x6   : > { %s24_s19 = sadd.s32 1, %s790_s14  ;;  %s27_s20 = sadd.s32 1, %s794_s15 }
   0x7   : > { %p25_p0 = scmp.ge.s32.totalorder %s24_s19, 4  ;;  %p98_p1 = scmp.ne.s32.totalorder %s778_s11, %s774_s10 }
   0x8   : > { %p99_p2 = scmp.eq.s32.totalorder %s477_s17, 15  ;;  %p104_p5 = scmp.ne.s32.totalorder %s774_s10, %s770_s9 }
   0x9   : > { %s1032_s19 = smov (%p25_p0, %s24_s19), 0  ;;  %s1034_s20 = smov (!%p25_p0, %s27_s20), %s794_s15 }
   0xa   : > { %s84_s21 = ssub.s32 %s790_s14, %s1032_s19  ;;  %p870_p3 = por %p99_p2, %p98_p1 }
   0xb   : > { %p29_p4 = scmp.ge.s32.totalorder %s1034_s20, 4  ;;  %p105_p6 = scmp.eq.s32.totalorder %s478_s18, 15 }
   0xc   : > { %p481_p7 = scmp.ge.s32.totalorder %s798_s16, 1  ;;  %p141_p9 = scmp.lt.s32.totalorder %s798_s16, 17 }
   0xd   : > { %s1036_s20 = smov (%p29_p4, %s1034_s20), 0  ;;  %p879_p8 = por %p105_p6, %p104_p5 }
   0xe   : > { %s83_s24 = ssub.s32 %s794_s15, %s1036_s20  ;;  %s88_s25 = sadd.s32 1, %s778_s11 }
   0xf   : > { %s85_s26 = sor.u32 %s84_s21, %s83_s24  ;;  %p142_p10 = pnand %p481_p7, %p141_p9 }
  0x10   : > { %p86_p11 = scmp.eq.s32.totalorder %s85_s26, 0  ;;  %s485_s28 = sshll.u32 (!%p142_p10), %s782_s12, 4 }
  0x11   : > { %145 = sbr.rel (%p142_p10) target bundleno = 335 (0x14f), region = 28  ;;  %s483_s29 = sshll.u32 (!%p142_p10), %s786_s13, 4 }
  0x12   : > { %s888_s27 = scalar_select %p86_p11, %s778_s11, %s88_s25  }
  0x13   : > { %p175_p12 = scmp.lt.s32.totalorder (!%p142_p10), %s485_s28, 63  ;;  %p169_p13 = scmp.lt.s32.totalorder (!%p142_p10), %s483_s29, 63 }
  0x14   : > { %s165_s18 = sand.u32 (!%p142_p10), 1, %s774_s10   ;;  %s493_s25 = sshll.u32 (!%p142_p10), %s786_s13, 6 }
  0x15   : > { %s482_s21 = sshll.u32 (!%p142_p10), %s165_s18, 7  ;;  %s387_s26 = sadd.s32 (!%p142_p10), %s782_s12, %s493_s25 }
  0x16   : > { %s937_s24 = scalar_lea.vmem (!%p142_p10), [#allocation2], %s482_s21  ;;  %s967_s3 = scalar_lea.sflag (!%p142_p10), [#allocation3], %s165_s18 }
  0x17   : > { %s390_s13 = sshll.u32 (!%p142_p10), %s937_s24, 4  ;;  %s959_s13 = int_to_ptr.vmem [resolvable:$true] %s390_s13 }
  0x18   : > { %s1038_s28 = smov (!%p175_p12, %s485_s28), 63  ;;  %s1040_s29 = smov (!%p169_p13, %s483_s29), 63 }
  0x19   : > { %s486_s30 = sshll.u32 %s1038_s28, 3  ;;  %s484_s6 = sshll.u32 %s1040_s29, 3 }
  0x1a   : > { %s895_s5 = scalar_lea.vmem %s1020_s1, %s486_s30  ;;  %s904_s17 = scalar_lea.vmem %s1019_s0, %s484_s6 }
  0x1b   : > { %v197_v0 = vld [vmem:[%s895_s5] sm:$0xff]  ;;  %v198_v1 = vld [vmem:[%s895_s5 + $0x8] sm:$0xff]  ;;  %v199_v2 = vld [vmem:[%s895_s5 + $0x10] sm:$0xff]  ;;  %s490_s28 = sshll.u32 %s387_s26, 7  ;;  %s704_s4 = scalar_lea.vmem %s959_s13, 2048 }
  0x1c   : > { %v582_v3 = vpack.c.bf16 %v198_v1, %v197_v0  ;;  %v200_v4 = vld [vmem:[%s895_s5 + $0x18] sm:$0xff]  ;;  %v181_v6 = vld [vmem:[%s904_s17] sm:$0xff]  ;;  %v202_v9 = vld [vmem:[%s895_s5 + $0x28] sm:$0xff]  ;;  %s957_s30 = scalar_lea.hbm %s1021_s2, %s490_s28  ;;  %p705_p0 = scmp.ne.s32.totalorder %s959_s13, %s704_s4 }
  0x1d   : > { %v586_v5 = vpack.c.bf16 %v200_v4, %v199_v2  ;;  %v189_v7 = vld [vmem:[%s904_s17 + $0x40] sm:$0xff]  ;;  %558 = vmatprep.mubr.f32.mxu0 %v181_v6  ;;  %v203_v11 = vld [vmem:[%s895_s5 + $0x30] sm:$0xff]  ;;  %v204_v12 = vld [vmem:[%s895_s5 + $0x38] sm:$0xff] }
  0x1e   : > { %583 = vmatprep.subr.bf16.mxu0 %v582_v3  ;;  %614 = vmatprep.subr.bf16.mxu1 %v582_v3  ;;  %v201_v8 = vld [vmem:[%s895_s5 + $0x20] sm:$0xff]  ;;  %v594_v13 = vpack.c.bf16 %v204_v12, %v203_v11  ;;  %v206_v15 = vld [vmem:[%s895_s5 + $0x48] sm:$0xff]  ;;  %v207_v17 = vld [vmem:[%s895_s5 + $0x50] sm:$0xff]  ;;  %p706_p1 = pnand %p705_p0, %p870_p3 }
  0x1f   : > { %585 = vmatpush3.bf16.xpose.msra.mxu0 %v582_v3  ;;  %622 = vmatpush3.bf16.xpose.msra.mxu1 %v582_v3  ;;  %v590_v10 = vpack.c.bf16 %v202_v9, %v201_v8  ;;  %v205_v14 = vld [vmem:[%s895_s5 + $0x40] sm:$0xff]  ;;  %v208_v18 = vld [vmem:[%s895_s5 + $0x58] sm:$0xff]  ;;  %v210_v21 = vld [vmem:[%s895_s5 + $0x68] sm:$0xff] }
  0x20   : > { %587 = vmatprep.subr.bf16.mxu0 %v586_v5  ;;  %615 = vmatprep.subr.bf16.mxu1 %v586_v5  ;;  %v598_v16 = vpack.c.bf16 %v206_v15, %v205_v14  ;;  %v602_v19 = vpack.c.bf16 %v208_v18, %v207_v17  ;;  %v209_v20 = vld [vmem:[%s895_s5 + $0x60] sm:$0xff]  ;;  %v211_v23 = vld [vmem:[%s895_s5 + $0x70] sm:$0xff]  ;;  %v212_v24 = vld [vmem:[%s895_s5 + $0x78] sm:$0xff]  ;;  %p707_p2 = pneg %p706_p1  ;;  %s800_s5 = smov [#allocation2]  }
  0x21   : > { %570 = vmatprep.mubr.f32.mxu1 %v189_v7  ;;  %v606_v22 = vpack.c.bf16 %v210_v21, %v209_v20  ;;  %v610_v25 = vpack.c.bf16 %v212_v24, %v211_v23  ;;  %v182_v26 = vld [vmem:[%s904_s17 + $0x8] sm:$0xff]  ;;  %v183_v28 = vld [vmem:[%s904_s17 + $0x10] sm:$0xff]  ;;  %v184_v30 = vld [vmem:[%s904_s17 + $0x18] sm:$0xff]  ;;  %s708_s6 = sshll.u32 %s800_s5, 4  ;;  %s709_s6 = int_to_ptr.vmem [resolvable:$false] %s708_s6 }
  0x22   : > { %v190_v27 = vld [vmem:[%s904_s17 + $0x48] sm:$0xff]  ;;  %v191_v29 = vld [vmem:[%s904_s17 + $0x50] sm:$0xff]  ;;  %v192_v31 = vld [vmem:[%s904_s17 + $0x58] sm:$0xff]  ;;  %s710_s7 = scalar_lea.vmem %s709_s6, 4096  ;;  %p711_p4 = scmp.lt.s32.totalorder %s959_s13, %s709_s6 }
  0x23   : > { %v185_v32 = vld [vmem:[%s904_s17 + $0x20] sm:$0xff]  ;;  %v186_v34 = vld [vmem:[%s904_s17 + $0x28] sm:$0xff]  ;;  %v187_v36 = vld [vmem:[%s904_s17 + $0x30] sm:$0xff]  ;;  %p712_p5 = scmp.lt.s32.totalorder %s710_s7, %s704_s4 }
  0x24   : > { %v193_v33 = vld [vmem:[%s904_s17 + $0x60] sm:$0xff]  ;;  %v194_v35 = vld [vmem:[%s904_s17 + $0x68] sm:$0xff]  ;;  %v195_v37 = vld [vmem:[%s904_s17 + $0x70] sm:$0xff] }
  0x25   : > { %v188_v38 = vld [vmem:[%s904_s17 + $0x38] sm:$0xff]  ;;  %p713_p6 = por %p712_p5, %p711_p4 }
  0x26   : > { %v196_v39 = vld [vmem:[%s904_s17 + $0x78] sm:$0xff] }
  0x27   : > { %589 = vmatpush3.bf16.xpose.msra.mxu0 %v586_v5  ;;  %623 = vmatpush3.bf16.xpose.msra.mxu1 %v586_v5  ;;  %p714_p7 = pnand %p713_p6, %p707_p2 }
  0x28   : > { %591 = vmatprep.subr.bf16.mxu0 %v590_v10  ;;  %616 = vmatprep.subr.bf16.mxu1 %v590_v10 }
  0x2f   : > { %593 = vmatpush3.bf16.xpose.msra.mxu0 %v590_v10  ;;  %624 = vmatpush3.bf16.xpose.msra.mxu1 %v590_v10 }
  0x30   : > { %595 = vmatprep.subr.bf16.mxu0 %v594_v13  ;;  %617 = vmatprep.subr.bf16.mxu1 %v594_v13 }
  0x37   : > { %597 = vmatpush3.bf16.xpose.msra.mxu0 %v594_v13  ;;  %625 = vmatpush3.bf16.xpose.msra.mxu1 %v594_v13 }
  0x38   : > { %599 = vmatprep.subr.bf16.mxu0 %v598_v16  ;;  %618 = vmatprep.subr.bf16.mxu1 %v598_v16 }
  0x3f   : > { %601 = vmatpush3.bf16.xpose.msra.mxu0 %v598_v16  ;;  %626 = vmatpush3.bf16.xpose.msra.mxu1 %v598_v16 }
  0x40   : > { %603 = vmatprep.subr.bf16.mxu0 %v602_v19  ;;  %619 = vmatprep.subr.bf16.mxu1 %v602_v19 }
  0x47   : > { %605 = vmatpush3.bf16.xpose.msra.mxu0 %v602_v19  ;;  %627 = vmatpush3.bf16.xpose.msra.mxu1 %v602_v19 }
  0x48   : > { %607 = vmatprep.subr.bf16.mxu0 %v606_v22  ;;  %620 = vmatprep.subr.bf16.mxu1 %v606_v22 }
  0x4f   : > { %609 = vmatpush3.bf16.xpose.msra.mxu0 %v606_v22  ;;  %628 = vmatpush3.bf16.xpose.msra.mxu1 %v606_v22 }
  0x50   : > { %611 = vmatprep.subr.bf16.mxu0 %v610_v25  ;;  %621 = vmatprep.subr.bf16.mxu1 %v610_v25 }
  0x57   : > { %613 = vmatpush3.bf16.xpose.msra.mxu0 %v610_v25  ;;  %629 = vmatpush3.bf16.xpose.msra.mxu1 %v610_v25 }
  0x5e   : > { %559 = vmatmul.mubr.f32.vlgmr.msra.gmra.mrb[0].mxu0 %v182_v26  ;;  %571 = vmatmul.mubr.f32.vlgmr.msra.gmra.mrb[0].mxu1 %v190_v27 }
  0x5f   : > { %561 = vmatprep.mubr.f32.mxu0 %v183_v28  ;;  %573 = vmatprep.mubr.f32.mxu1 %v191_v29 }
  0x62   : > { %562 = vmatmul.mubr.f32.gmra.mrb[2].mxu0 %v184_v30  ;;  %574 = vmatmul.mubr.f32.gmra.mrb[2].mxu1 %v192_v31 }
  0x63   : > { %564 = vmatprep.mubr.f32.mxu0 %v185_v32  ;;  %576 = vmatprep.mubr.f32.mxu1 %v193_v33 }
  0x66   : > { %565 = vmatmul.mubr.f32.gmra.mrb[4].mxu0 %v186_v34  ;;  %577 = vmatmul.mubr.f32.gmra.mrb[4].mxu1 %v194_v35 }
  0x67   : > { %567 = vmatprep.mubr.f32.mxu0 %v187_v36  ;;  %579 = vmatprep.mubr.f32.mxu1 %v195_v37 }
  0x6a   : > { %568 = vmatmul.mubr.f32.gmra.mrb[6].mxu0 %v188_v38  ;;  %580 = vmatmul.mubr.f32.gmra.mrb[6].mxu1 %v196_v39 }
 0x131   : > { %v560_v40 = vpop.f32.mrb[0].mxu0  ;;  %v572_v41 = vpop.f32.mrb[0].mxu1 }
 0x132   : > { %359 = vst [vmem:[%s937_s24 + $0x8] sm:$0xff] %v560_v40  ;;  %367 = vst [vmem:[%s937_s24 + $0x48] sm:$0xff] %v572_v41  ;;  %v279_v42 = vpop.f32.mrb[1].mxu0  ;;  %v319_v43 = vpop.f32.mrb[1].mxu1 }
 0x133   : > { %358 = vst [vmem:[%s937_s24] sm:$0xff] %v279_v42  ;;  %366 = vst [vmem:[%s937_s24 + $0x40] sm:$0xff] %v319_v43 }
 0x135   : > { %v563_v44 = vpop.f32.mrb[2].mxu0  ;;  %v575_v45 = vpop.f32.mrb[2].mxu1 }
 0x136   : > { %361 = vst [vmem:[%s937_s24 + $0x18] sm:$0xff] %v563_v44  ;;  %369 = vst [vmem:[%s937_s24 + $0x58] sm:$0xff] %v575_v45  ;;  %v289_v46 = vpop.f32.mrb[3].mxu0  ;;  %v329_v47 = vpop.f32.mrb[3].mxu1 }
 0x137   : > { %360 = vst [vmem:[%s937_s24 + $0x10] sm:$0xff] %v289_v46  ;;  %368 = vst [vmem:[%s937_s24 + $0x50] sm:$0xff] %v329_v47 }
 0x139   : > { %v566_v48 = vpop.f32.mrb[4].mxu0  ;;  %v578_v49 = vpop.f32.mrb[4].mxu1 }
 0x13a   : > { %363 = vst [vmem:[%s937_s24 + $0x28] sm:$0xff] %v566_v48  ;;  %371 = vst [vmem:[%s937_s24 + $0x68] sm:$0xff] %v578_v49  ;;  %v299_v50 = vpop.f32.mrb[5].mxu0  ;;  %v339_v51 = vpop.f32.mrb[5].mxu1 }
 0x13b   : > { %362 = vst [vmem:[%s937_s24 + $0x20] sm:$0xff] %v299_v50  ;;  %370 = vst [vmem:[%s937_s24 + $0x60] sm:$0xff] %v339_v51 }
 0x13d   : > { %v569_v52 = vpop.f32.mrb[6].mxu0  ;;  %v581_v53 = vpop.f32.mrb[6].mxu1 }
 0x13e   : > { %365 = vst [vmem:[%s937_s24 + $0x38] sm:$0xff] %v569_v52  ;;  %373 = vst [vmem:[%s937_s24 + $0x78] sm:$0xff] %v581_v53  ;;  %v309_v54 = vpop.f32.mrb[7].mxu0  ;;  %v349_v55 = vpop.f32.mrb[7].mxu1 }
 0x13f   : > { %364 = vst [vmem:[%s937_s24 + $0x30] sm:$0xff] %v309_v54  ;;  %372 = vst [vmem:[%s937_s24 + $0x70] sm:$0xff] %v349_v55 }
 0x140   : > { %717 = shalt.err (!%p714_p7)
}
 0x141   : > { %s718_s8 = scalar_lea.hbm %s957_s30, 2048  ;;  %s722_s21 = scalar_lea.hbm %s1021_s2, 32768 }
 0x142   : > { %p719_p9 = scmp.ne.s32.totalorder %s957_s30, %s718_s8  ;;  %p723_p12 = scmp.lt.u32.totalorder %s957_s30, %s1021_s2 }
 0x143   : > { %p724_p13 = scmp.lt.u32.totalorder %s722_s21, %s718_s8  ;;  %p726_p1 = scmp.lt.u32.totalorder %s718_s8, %s957_s30 }
 0x144   : > { %p720_p10 = pnand %p719_p9, %p870_p3 }
 0x145   : > { %p725_p0 = por %p724_p13, %p723_p12 }
 0x146   : > { %p721_p11 = pneg %p720_p10 }
 0x147   : > { %p727_p2 = por %p726_p1, %p725_p0 }
 0x149   : > { %p728_p4 = pnand %p727_p2, %p721_p11 }
 0x14b   : > { %731 = shalt.err (!%p728_p4)
}
 0x14c   : > { %s801_s26 = smov 128   ;;  %s802_s28 = smov 512  }
 0x14d   : > { %s803_s12 = smov 8  }
 0x14e   : > { %630 = dma.vmem_to_hbm [thread:$0]  (%p870_p3), %s959_s13, 2048, %s957_s30, %s967_s3, %s801_s26, %s802_s28, %s803_s12  }
 0x14f PF: > { %p636_p5 = scmp.ge.s32.totalorder %s798_s16, 2  ;;  %s405_s29 = sand.u32 1, %s770_s9  }
 0x150   : > { %s406_s4 = scalar_lea.sflag [#allocation3], %s405_s29 }
 0x151   : > { %p633_p6 = pnand %p636_p5, %p879_p8 }
 0x153   : > { %765 = dma.done.wait (!%p633_p6), %s406_s4, 2048  }
 0x154   : > { %767 = vsyncadd (!%p633_p6), %s406_s4, 4294965248  ;;  %s15_s16 = sadd.s32 1, %s798_s16   ;;  %s1024_s9 = smov %s774_s10 }
 0x155   : > { %p12_p7 = scmp.ge.s32.totalorder %s15_s16, 18   ;;  %s1025_s10 = smov %s778_s11 }
 0x156   : > { %s1026_s11 = smov %s888_s27  ;;  %s1027_s12 = smov %s790_s14 }
 0x157   : > { %s1028_s13 = smov %s794_s15  ;;  %s1029_s14 = smov %s1032_s19 }
 0x158   : > { %s1030_s15 = smov %s1036_s20  ;;  %14 = sbr.rel (!%p12_p7) target bundleno = 5 (0x5), region = 66 }
 0x15f   :  { %411 = vsyncpa [#allocation3], 1 }
 0x160   :  { %413 = vsyncpa [#allocation3 + $0x1], 1 }

// kernel: gcn_modified_ae_boosting_first_layer.6
= control target key start
LH: loop header
LB: loop body
LE: loop exit
PB: predicated region body
PF: predicated region fallthrough
CT: control target
= control target key end

     0   :  { %s1198_s12 = smov 0   ;;  %s1200_s13 = smov 0   ;;  %s1412_s0 = inlined_call_operand.vmem [shape: f32[512,512], index: 0, kind: input, shape index: {}]   ;;  %s1413_s1 = inlined_call_operand.vmem [shape: f32[512,128], index: 1, kind: input, shape index: {}]   ;;  %s1414_s2 = inlined_call_operand.vmem [shape: f32[128,128], index: 2, kind: input, shape index: {}]   ;;  %s1415_s3 = inlined_call_operand.vmem [shape: f32[512,128], index: 3, kind: output, shape index: {}]  }
   0x1   :  { %s1202_s14 = smov 0   ;;  %s1204_s15 = smov 0  }
   0x2   :  { %s1206_s16 = smov 0   ;;  %s1208_s17 = smov 0  }
   0x3   :  { %s1210_s18 = smov 0  }
   0x4 LB: > { %s22_s19 = sadd.s32 1, %s1167_s16  ;;  %s25_s20 = sadd.s32 1, %s1171_s17  ;;  %s1175_s18 = sphi %s1210_s18, %s13_s18   ;;  %s1171_s17 = sphi %s1208_s17, %s1421_s17   ;;  %s1167_s16 = sphi %s1206_s16, %s1420_s16   ;;  %s1163_s15 = sphi %s1204_s15, %s1419_s15   ;;  %s1159_s14 = sphi %s1202_s14, %s1418_s14   ;;  %s1155_s13 = sphi %s1200_s13, %s1417_s13   ;;  %s1151_s12 = sphi %s1198_s12, %s1416_s12  }
   0x5   : > { %p23_p0 = scmp.ge.s32.totalorder %s22_s19, 4  ;;  %p41_p1 = scmp.ne.s32.totalorder %s1155_s13, %s1151_s12 }
   0x6   : > { %p42_p2 = scmp.eq.s32.totalorder %s1175_s18, 0  ;;  %s34_s24 = sadd.s32 1, %s1155_s13 }
   0x7   : > { %s1423_s19 = smov (%p23_p0, %s22_s19), 0  ;;  %s1425_s20 = smov (!%p23_p0, %s25_s20), %s1171_s17 }
   0x8   : > { %p43_p3 = por %p42_p2, %p41_p1  ;;  %p27_p4 = scmp.ge.s32.totalorder %s1425_s20, 4 }
   0x9   : > { %s30_s21 = ssub.s32 %s1167_s16, %s1423_s19  ;;  %p809_p6 = scmp.ge.s32.totalorder %s1175_s18, 16 }
   0xa   : > { %s1427_s20 = smov (%p27_p4, %s1425_s20), 0 }
   0xb   : > { %s29_s22 = ssub.s32 %s1171_s17, %s1427_s20  ;;  %141 = sbr.rel (%p809_p6) target bundleno = 40 (0x28), region = 24 }
   0xc   : > { %s31_s23 = sor.u32 %s30_s21, %s29_s22 }
   0xd   : > { %p32_p5 = scmp.eq.s32.totalorder %s31_s23, 0 }
   0xf   : > { %s1249_s25 = scalar_select %p32_p5, %s1155_s13, %s34_s24  }
  0x12   : > { %144 = sbr.rel (!%p43_p3) target bundleno = 40 (0x28), region = 28  ;;  %s146_s26 = sand.u32 (%p43_p3), 1, %s1155_s13  }
  0x13   : > { %s823_s27 = sshll.u32 (%p43_p3), %s1171_s17, 6  ;;  %s810_s28 = sshll.u32 (%p43_p3), %s146_s26, 7 }
  0x14   : > { %s151_s29 = sadd.s32 (%p43_p3), %s1167_s16, %s823_s27  ;;  %s148_s7 = scalar_lea.vmem (%p43_p3), [#allocation3], %s810_s28 }
  0x15   : > { %s813_s30 = sshll.u32 (%p43_p3), %s151_s29, 3 }
  0x16   : > { %s1258_s6 = scalar_lea.vmem (%p43_p3), %s1412_s0, %s813_s30 }
  0x17   : > { %v211_v0 = vld [vmem:[%s1258_s6] sm:$0xff] (%p43_p3) }
  0x18   : > { %v213_v1 = vld [vmem:[%s1258_s6 + $0x20] sm:$0xff] (%p43_p3)  ;;  %212 = vst [vmem:[%s148_s7] sm:$0xff] (%p43_p3), %v211_v0 }
  0x19   : > { %v215_v2 = vld [vmem:[%s1258_s6 + $0x40] sm:$0xff]  ;;  %214 = vst [vmem:[%s148_s7 + $0x8] sm:$0xff] %v213_v1 }
  0x1a   : > { %216 = vst [vmem:[%s148_s7 + $0x10] sm:$0xff] %v215_v2  ;;  %v217_v3 = vld [vmem:[%s1258_s6 + $0x60] sm:$0xff] }
  0x1b   : > { %v219_v4 = vld [vmem:[%s1258_s6 + $0x80] sm:$0xff]  ;;  %218 = vst [vmem:[%s148_s7 + $0x18] sm:$0xff] %v217_v3 }
  0x1c   : > { %v221_v5 = vld [vmem:[%s1258_s6 + $0xa0] sm:$0xff]  ;;  %220 = vst [vmem:[%s148_s7 + $0x20] sm:$0xff] %v219_v4 }
  0x1d   : > { %222 = vst [vmem:[%s148_s7 + $0x28] sm:$0xff] %v221_v5  ;;  %v223_v6 = vld [vmem:[%s1258_s6 + $0xc0] sm:$0xff] }
  0x1e   : > { %v225_v7 = vld [vmem:[%s1258_s6 + $0xe0] sm:$0xff]  ;;  %224 = vst [vmem:[%s148_s7 + $0x30] sm:$0xff] %v223_v6 }
  0x1f   : > { %v227_v8 = vld [vmem:[%s1258_s6 + $0x100] sm:$0xff]  ;;  %226 = vst [vmem:[%s148_s7 + $0x38] sm:$0xff] %v225_v7 }
  0x20   : > { %228 = vst [vmem:[%s148_s7 + $0x40] sm:$0xff] %v227_v8  ;;  %v229_v9 = vld [vmem:[%s1258_s6 + $0x120] sm:$0xff] }
  0x21   : > { %v231_v10 = vld [vmem:[%s1258_s6 + $0x140] sm:$0xff]  ;;  %230 = vst [vmem:[%s148_s7 + $0x48] sm:$0xff] %v229_v9 }
  0x22   : > { %v233_v11 = vld [vmem:[%s1258_s6 + $0x160] sm:$0xff]  ;;  %232 = vst [vmem:[%s148_s7 + $0x50] sm:$0xff] %v231_v10 }
  0x23   : > { %234 = vst [vmem:[%s148_s7 + $0x58] sm:$0xff] %v233_v11  ;;  %v235_v12 = vld [vmem:[%s1258_s6 + $0x180] sm:$0xff] }
  0x24   : > { %v237_v13 = vld [vmem:[%s1258_s6 + $0x1a0] sm:$0xff]  ;;  %236 = vst [vmem:[%s148_s7 + $0x60] sm:$0xff] %v235_v12 }
  0x25   : > { %v239_v14 = vld [vmem:[%s1258_s6 + $0x1c0] sm:$0xff]  ;;  %238 = vst [vmem:[%s148_s7 + $0x68] sm:$0xff] %v237_v13 }
  0x26   : > { %240 = vst [vmem:[%s148_s7 + $0x70] sm:$0xff] %v239_v14  ;;  %v241_v15 = vld [vmem:[%s1258_s6 + $0x1e0] sm:$0xff] }
  0x27   : > { %242 = vst [vmem:[%s148_s7 + $0x78] sm:$0xff] %v241_v15 }
  0x28 PF: > { %p814_p7 = scmp.ge.s32.totalorder %s1175_s18, 1  ;;  %p247_p8 = scmp.lt.s32.totalorder %s1175_s18, 17 }
  0x2a   : > { %p248_p9 = pnand %p814_p7, %p247_p8 }
  0x2b   : > { %s254_s8 = sand.u32 (!%p248_p9), 1, %s1151_s12   ;;  %s816_s9 = sshll.u32 (!%p248_p9), %s1163_s15, 4 }
  0x2c   : > { %251 = sbr.rel (%p248_p9) target bundleno = 595 (0x253), region = 66  ;;  %s815_s10 = sshll.u32 (!%p248_p9), %s254_s8, 7 }
  0x2d   : > { %p279_p10 = scmp.lt.s32.totalorder (!%p248_p9), %s816_s9, 63  ;;  %s1285_s24 = scalar_lea.vmem (!%p248_p9), [#allocation3], %s815_s10 }
  0x2e   : > { %p818_p11 = scmp.ne.s32.totalorder (!%p248_p9), %s1159_s14, 0 }
  0x33   : > { %s1429_s9 = smov (!%p279_p10, %s816_s9), 63  ;;  %287 = sbr.rel (%p818_p11) target bundleno = 61 (0x3d), region = 74 }
  0x34   : > { %s817_s11 = sshll.u32 %s1429_s9, 3  ;;  %v1177_v16 = vmov (!%p818_p11), 0.0  }
  0x35   : > { %s1283_s23 = scalar_lea.vmem %s1415_s3, %s817_s11  ;;  %288 = vst [vmem:[#allocation2] sm:$0xff] (!%p818_p11), %v1177_v16  ;;  %289 = vst [vmem:[#allocation2 + $0x8] sm:$0xff] (!%p818_p11), %v1177_v16 }
  0x36   : > { %290 = vst [vmem:[#allocation2 + $0x10] sm:$0xff] (!%p818_p11), %v1177_v16  ;;  %291 = vst [vmem:[#allocation2 + $0x18] sm:$0xff] (!%p818_p11), %v1177_v16 }
  0x37   : > { %292 = vst [vmem:[#allocation2 + $0x20] sm:$0xff] (!%p818_p11), %v1177_v16  ;;  %293 = vst [vmem:[#allocation2 + $0x28] sm:$0xff] (!%p818_p11), %v1177_v16 }
  0x38   : > { %294 = vst [vmem:[#allocation2 + $0x30] sm:$0xff] (!%p818_p11), %v1177_v16  ;;  %295 = vst [vmem:[#allocation2 + $0x38] sm:$0xff] (!%p818_p11), %v1177_v16 }
  0x39   : > { %296 = vst [vmem:[#allocation2 + $0x40] sm:$0xff] (!%p818_p11), %v1177_v16  ;;  %297 = vst [vmem:[#allocation2 + $0x48] sm:$0xff] (!%p818_p11), %v1177_v16 }
  0x3a   : > { %298 = vst [vmem:[#allocation2 + $0x50] sm:$0xff] %v1177_v16  ;;  %299 = vst [vmem:[#allocation2 + $0x58] sm:$0xff] %v1177_v16 }
  0x3b   : > { %300 = vst [vmem:[#allocation2 + $0x60] sm:$0xff] %v1177_v16  ;;  %301 = vst [vmem:[#allocation2 + $0x68] sm:$0xff] %v1177_v16 }
  0x3c   : > { %302 = vst [vmem:[#allocation2 + $0x70] sm:$0xff] %v1177_v16  ;;  %303 = vst [vmem:[#allocation2 + $0x78] sm:$0xff] %v1177_v16 }
  0x3d PF: > { %v322_v17 = vld [vmem:[%s1414_s2] sm:$0xff]  ;;  %v323_v18 = vld [vmem:[%s1414_s2 + $0x8] sm:$0xff]  ;;  %v324_v19 = vld [vmem:[%s1414_s2 + $0x10] sm:$0xff]  ;;  %s819_s30 = sshll.u32 %s1159_s14, 7  ;;  %p820_p12 = scmp.ne.s32.totalorder %s1159_s14, 3 }
  0x3e   : > { %v1000_v20 = vpack.c.bf16 %v323_v18, %v322_v17  ;;  %v325_v21 = vld [vmem:[%s1414_s2 + $0x18] sm:$0xff]  ;;  %v326_v23 = vld [vmem:[%s1414_s2 + $0x20] sm:$0xff]  ;;  %v327_v24 = vld [vmem:[%s1414_s2 + $0x28] sm:$0xff]  ;;  %s1310_s21 = scalar_lea.vmem %s1413_s1, %s819_s30 }
  0x3f   : > { %v1004_v22 = vpack.c.bf16 %v325_v21, %v324_v19  ;;  %v1008_v25 = vpack.c.bf16 %v327_v24, %v326_v23  ;;  %v306_v26 = vld [vmem:[%s1310_s21] sm:$0xff]  ;;  %v328_v27 = vld [vmem:[%s1414_s2 + $0x30] sm:$0xff]  ;;  %v329_v28 = vld [vmem:[%s1414_s2 + $0x38] sm:$0xff] }
  0x40   : > { %1001 = vmatprep.subr.bf16.mxu0 %v1000_v20  ;;  %920 = vmatprep.mubr.f32.mxu0 %v306_v26  ;;  %v1012_v29 = vpack.c.bf16 %v329_v28, %v328_v27  ;;  %v330_v30 = vld [vmem:[%s1414_s2 + $0x40] sm:$0xff]  ;;  %v331_v31 = vld [vmem:[%s1414_s2 + $0x48] sm:$0xff]  ;;  %v332_v33 = vld [vmem:[%s1414_s2 + $0x50] sm:$0xff] }
  0x41   : > { %1003 = vmatpush3.bf16.msra.mxu0 %v1000_v20  ;;  %v1016_v32 = vpack.c.bf16 %v331_v31, %v330_v30  ;;  %v333_v34 = vld [vmem:[%s1414_s2 + $0x58] sm:$0xff]  ;;  %v334_v36 = vld [vmem:[%s1414_s2 + $0x60] sm:$0xff]  ;;  %v335_v37 = vld [vmem:[%s1414_s2 + $0x68] sm:$0xff] }
  0x42   : > { %1005 = vmatprep.subr.bf16.mxu0 %v1004_v22  ;;  %v1020_v35 = vpack.c.bf16 %v333_v34, %v332_v33  ;;  %v1024_v38 = vpack.c.bf16 %v335_v37, %v334_v36  ;;  %v336_v39 = vld [vmem:[%s1414_s2 + $0x70] sm:$0xff]  ;;  %v337_v40 = vld [vmem:[%s1414_s2 + $0x78] sm:$0xff]  ;;  %v307_v42 = vld [vmem:[%s1310_s21 + $0x8] sm:$0xff] }
  0x43   : > { %v1028_v41 = vpack.c.bf16 %v337_v40, %v336_v39  ;;  %v308_v43 = vld [vmem:[%s1310_s21 + $0x10] sm:$0xff]  ;;  %v309_v44 = vld [vmem:[%s1310_s21 + $0x18] sm:$0xff]  ;;  %v310_v45 = vld [vmem:[%s1310_s21 + $0x20] sm:$0xff] }
  0x44   : > { %v311_v46 = vld [vmem:[%s1310_s21 + $0x28] sm:$0xff]  ;;  %v312_v47 = vld [vmem:[%s1310_s21 + $0x30] sm:$0xff]  ;;  %v313_v48 = vld [vmem:[%s1310_s21 + $0x38] sm:$0xff] }
  0x45   : > { %1007 = vmatpush3.bf16.msra.mxu0 %v1004_v22  ;;  %v314_v49 = vld [vmem:[%s1310_s21 + $0x40] sm:$0xff]  ;;  %v315_v50 = vld [vmem:[%s1310_s21 + $0x48] sm:$0xff]  ;;  %v316_v51 = vld [vmem:[%s1310_s21 + $0x50] sm:$0xff] }
  0x46   : > { %1009 = vmatprep.subr.bf16.mxu0 %v1008_v25  ;;  %v317_v52 = vld [vmem:[%s1310_s21 + $0x58] sm:$0xff]  ;;  %v318_v53 = vld [vmem:[%s1310_s21 + $0x60] sm:$0xff]  ;;  %v319_v54 = vld [vmem:[%s1310_s21 + $0x68] sm:$0xff] }
  0x47   : > { %v320_v55 = vld [vmem:[%s1310_s21 + $0x70] sm:$0xff]  ;;  %v321_v56 = vld [vmem:[%s1310_s21 + $0x78] sm:$0xff]  ;;  %v499_v57 = vld [vmem:[%s1285_s24] sm:$0xff] }
  0x48   : > { %976 = vmatprep.mubr.f32.mxu1 %v499_v57  ;;  %v500_v18 = vld [vmem:[%s1285_s24 + $0x8] sm:$0xff]  ;;  %v501_v19 = vld [vmem:[%s1285_s24 + $0x10] sm:$0xff]  ;;  %v502_v20 = vld [vmem:[%s1285_s24 + $0x18] sm:$0xff] }
  0x49   : > { %1011 = vmatpush3.bf16.msra.mxu0 %v1008_v25  ;;  %v503_v21 = vld [vmem:[%s1285_s24 + $0x20] sm:$0xff]  ;;  %v504_v22 = vld [vmem:[%s1285_s24 + $0x28] sm:$0xff]  ;;  %v505_v23 = vld [vmem:[%s1285_s24 + $0x30] sm:$0xff] }
  0x4a   : > { %1013 = vmatprep.subr.bf16.mxu0 %v1012_v29  ;;  %v506_v24 = vld [vmem:[%s1285_s24 + $0x38] sm:$0xff]  ;;  %v507_v25 = vld [vmem:[%s1285_s24 + $0x40] sm:$0xff]  ;;  %v508_v26 = vld [vmem:[%s1285_s24 + $0x48] sm:$0xff] }
  0x4b   : > { %v509_v27 = vld [vmem:[%s1285_s24 + $0x50] sm:$0xff]  ;;  %v510_v28 = vld [vmem:[%s1285_s24 + $0x58] sm:$0xff]  ;;  %v512_v30 = vld [vmem:[%s1285_s24 + $0x68] sm:$0xff] }
  0x4c   : > { %v513_v31 = vld [vmem:[%s1285_s24 + $0x70] sm:$0xff]  ;;  %v484_v33 = vld [vmem:[#allocation2 + $0x8] sm:$0xff]  ;;  %v483_v34 = vld [vmem:[#allocation2] sm:$0xff] }
  0x4d   : > { %1015 = vmatpush3.bf16.msra.mxu0 %v1012_v29  ;;  %v511_v29 = vld [vmem:[%s1285_s24 + $0x60] sm:$0xff]  ;;  %v486_v39 = vld [vmem:[#allocation2 + $0x18] sm:$0xff]  ;;  %v485_v40 = vld [vmem:[#allocation2 + $0x10] sm:$0xff] }
  0x4e   : > { %1017 = vmatprep.subr.bf16.mxu0 %v1016_v32  ;;  %v492_v57 = vld [vmem:[#allocation2 + $0x48] sm:$0xff] }
  0x51   : > { %1019 = vmatpush3.bf16.msra.mxu0 %v1016_v32  ;;  %v514_v32 = vld [vmem:[%s1285_s24 + $0x78] sm:$0xff] }
  0x52   : > { %1021 = vmatprep.subr.bf16.mxu0 %v1020_v35 }
  0x55   : > { %1023 = vmatpush3.bf16.msra.mxu0 %v1020_v35 }
  0x56   : > { %1025 = vmatprep.subr.bf16.mxu0 %v1024_v38 }
  0x59   : > { %1027 = vmatpush3.bf16.msra.mxu0 %v1024_v38 }
  0x5a   : > { %1029 = vmatprep.subr.bf16.mxu0 %v1028_v41 }
  0x5d   : > { %1031 = vmatpush3.bf16.msra.mxu0 %v1028_v41 }
  0x60   : > { %921 = vmatmul.mubr.f32.vlgmr.msra.gmra.mrb[0].mxu0 %v307_v42 }
  0x61   : > { %923 = vmatprep.mubr.f32.mxu0 %v308_v43 }
  0x64   : > { %924 = vmatmul.mubr.f32.gmra.mrb[2].mxu0 %v309_v44 }
  0x65   : > { %926 = vmatprep.mubr.f32.mxu0 %v310_v45  ;;  %v488_v45 = vld [vmem:[#allocation2 + $0x28] sm:$0xff] }
  0x68   : > { %927 = vmatmul.mubr.f32.gmra.mrb[4].mxu0 %v311_v46  ;;  %v487_v46 = vld [vmem:[#allocation2 + $0x20] sm:$0xff] }
  0x69   : > { %929 = vmatprep.mubr.f32.mxu0 %v312_v47 }
  0x6c   : > { %930 = vmatmul.mubr.f32.gmra.mrb[6].mxu0 %v313_v48 }
  0x6d   : > { %932 = vmatprep.mubr.f32.mxu0 %v314_v49 }
  0x70   : > { %933 = vmatmul.mubr.f32.gmra.mrb[8].mxu0 %v315_v50 }
  0x71   : > { %935 = vmatprep.mubr.f32.mxu0 %v316_v51  ;;  %v490_v51 = vld [vmem:[#allocation2 + $0x38] sm:$0xff] }
  0x74   : > { %936 = vmatmul.mubr.f32.gmra.mrb[10].mxu0 %v317_v52  ;;  %v489_v52 = vld [vmem:[#allocation2 + $0x30] sm:$0xff] }
  0x75   : > { %938 = vmatprep.mubr.f32.mxu0 %v318_v53 }
  0x78   : > { %939 = vmatmul.mubr.f32.gmra.mrb[12].mxu0 %v319_v54 }
  0x79   : > { %941 = vmatprep.mubr.f32.mxu0 %v320_v55 }
  0x7c   : > { %942 = vmatmul.mubr.f32.gmra.mrb[14].mxu0 %v321_v56 }
 0x133   : > { %v922_v58 = vpop.f32.mrb[0].mxu0 }
 0x134   : > { %v404_v59 = vpop.f32.mrb[1].mxu0 }
 0x135   : > { %v1032_v60 = vpack.c.bf16 %v922_v58, %v404_v59  ;;  %v491_v58 = vld [vmem:[#allocation2 + $0x40] sm:$0xff] }
 0x137   : > { %v925_v61 = vpop.f32.mrb[2].mxu0  ;;  %1033 = vmatprep.subr.bf16.mxu1 %v1032_v60 }
 0x138   : > { %v414_v62 = vpop.f32.mrb[3].mxu0  ;;  %1035 = vmatpush3.bf16.msra.mxu1 %v1032_v60 }
 0x139   : > { %v1036_v63 = vpack.c.bf16 %v925_v61, %v414_v62 }
 0x13b   : > { %v928_v0 = vpop.f32.mrb[4].mxu0  ;;  %1037 = vmatprep.subr.bf16.mxu1 %v1036_v63 }
 0x13c   : > { %v424_v1 = vpop.f32.mrb[5].mxu0  ;;  %1039 = vmatpush3.bf16.msra.mxu1 %v1036_v63  ;;  %v494_v63 = vld [vmem:[#allocation2 + $0x58] sm:$0xff] }
 0x13d   : > { %v1040_v2 = vpack.c.bf16 %v928_v0, %v424_v1  ;;  %v493_v0 = vld [vmem:[#allocation2 + $0x50] sm:$0xff] }
 0x13f   : > { %v931_v3 = vpop.f32.mrb[6].mxu0  ;;  %1041 = vmatprep.subr.bf16.mxu1 %v1040_v2 }
 0x140   : > { %v434_v4 = vpop.f32.mrb[7].mxu0  ;;  %1043 = vmatpush3.bf16.msra.mxu1 %v1040_v2 }
 0x141   : > { %v1044_v5 = vpack.c.bf16 %v931_v3, %v434_v4 }
 0x143   : > { %v934_v6 = vpop.f32.mrb[8].mxu0  ;;  %1045 = vmatprep.subr.bf16.mxu1 %v1044_v5 }
 0x144   : > { %v444_v7 = vpop.f32.mrb[9].mxu0  ;;  %1047 = vmatpush3.bf16.msra.mxu1 %v1044_v5  ;;  %v496_v5 = vld [vmem:[#allocation2 + $0x68] sm:$0xff] }
 0x145   : > { %v1048_v8 = vpack.c.bf16 %v934_v6, %v444_v7  ;;  %v495_v6 = vld [vmem:[#allocation2 + $0x60] sm:$0xff] }
 0x147   : > { %v937_v9 = vpop.f32.mrb[10].mxu0  ;;  %1049 = vmatprep.subr.bf16.mxu1 %v1048_v8 }
 0x148   : > { %v454_v10 = vpop.f32.mrb[11].mxu0  ;;  %1051 = vmatpush3.bf16.msra.mxu1 %v1048_v8 }
 0x149   : > { %v1052_v11 = vpack.c.bf16 %v937_v9, %v454_v10 }
 0x14b   : > { %v940_v12 = vpop.f32.mrb[12].mxu0  ;;  %1053 = vmatprep.subr.bf16.mxu1 %v1052_v11 }
 0x14c   : > { %v464_v13 = vpop.f32.mrb[13].mxu0  ;;  %1055 = vmatpush3.bf16.msra.mxu1 %v1052_v11  ;;  %v498_v11 = vld [vmem:[#allocation2 + $0x78] sm:$0xff] }
 0x14d   : > { %v1056_v14 = vpack.c.bf16 %v940_v12, %v464_v13  ;;  %v497_v12 = vld [vmem:[#allocation2 + $0x70] sm:$0xff] }
 0x14f   : > { %v943_v15 = vpop.f32.mrb[14].mxu0  ;;  %1057 = vmatprep.subr.bf16.mxu1 %v1056_v14 }
 0x150   : > { %v474_v16 = vpop.f32.mrb[15].mxu0  ;;  %1059 = vmatpush3.bf16.msra.mxu1 %v1056_v14 }
 0x151   : > { %v1060_v17 = vpack.c.bf16 %v943_v15, %v474_v16 }
 0x153   : > { %1061 = vmatprep.subr.bf16.mxu1 %v1060_v17 }
 0x154   : > { %1063 = vmatpush3.bf16.msra.mxu1 %v1060_v17 }
 0x157   : > { %977 = vmatmul.mubr.f32.vlgmr.msra.gmra.mrb[0].mxu1 %v500_v18 }
 0x158   : > { %979 = vmatprep.mubr.f32.mxu1 %v501_v19 }
 0x15b   : > { %980 = vmatmul.mubr.f32.gmra.mrb[2].mxu1 %v502_v20 }
 0x15c   : > { %982 = vmatprep.mubr.f32.mxu1 %v503_v21 }
 0x15f   : > { %983 = vmatmul.mubr.f32.gmra.mrb[4].mxu1 %v504_v22 }
 0x160   : > { %985 = vmatprep.mubr.f32.mxu1 %v505_v23 }
 0x163   : > { %986 = vmatmul.mubr.f32.gmra.mrb[6].mxu1 %v506_v24 }
 0x164   : > { %988 = vmatprep.mubr.f32.mxu1 %v507_v25 }
 0x167   : > { %989 = vmatmul.mubr.f32.gmra.mrb[8].mxu1 %v508_v26 }
 0x168   : > { %991 = vmatprep.mubr.f32.mxu1 %v509_v27 }
 0x16b   : > { %992 = vmatmul.mubr.f32.gmra.mrb[10].mxu1 %v510_v28 }
 0x16c   : > { %994 = vmatprep.mubr.f32.mxu1 %v511_v29 }
 0x16f   : > { %995 = vmatmul.mubr.f32.gmra.mrb[12].mxu1 %v512_v30 }
 0x170   : > { %997 = vmatprep.mubr.f32.mxu1 %v513_v31 }
 0x173   : > { %998 = vmatmul.mubr.f32.gmra.mrb[14].mxu1 %v514_v32 }
 0x22a   : > { %v978_v35 = vpop.f32.mrb[0].mxu1 }
 0x22b   : > { %v661_v36 = vadd.f32 %v978_v35, %v484_v33  ;;  %v581_v37 = vpop.f32.mrb[1].mxu1 }
 0x22c   : > { %v660_v38 = vadd.f32 %v581_v37, %v483_v34 }
 0x22d   : > { %677 = vst [vmem:[#allocation2 + $0x8] sm:$0xff] %v661_v36 }
 0x22e   : > { %676 = vst [vmem:[#allocation2] sm:$0xff] %v660_v38  ;;  %v981_v41 = vpop.f32.mrb[2].mxu1 }
 0x22f   : > { %v663_v42 = vadd.f32 %v981_v41, %v486_v39  ;;  %v591_v43 = vpop.f32.mrb[3].mxu1 }
 0x230   : > { %v662_v44 = vadd.f32 %v591_v43, %v485_v40 }
 0x231   : > { %679 = vst [vmem:[#allocation2 + $0x18] sm:$0xff] %v663_v42 }
 0x232   : > { %678 = vst [vmem:[#allocation2 + $0x10] sm:$0xff] %v662_v44  ;;  %v984_v47 = vpop.f32.mrb[4].mxu1 }
 0x233   : > { %v665_v48 = vadd.f32 %v984_v47, %v488_v45  ;;  %v601_v49 = vpop.f32.mrb[5].mxu1 }
 0x234   : > { %v664_v50 = vadd.f32 %v601_v49, %v487_v46  ;;  %v697_v18 = vld [vmem:[#allocation2 + $0x8] sm:$0xff] (!%p820_p12) }
 0x235   : > { %681 = vst [vmem:[#allocation2 + $0x28] sm:$0xff] %v665_v48  ;;  %v696_v17 = vld [vmem:[#allocation2] sm:$0xff] (!%p820_p12)  ;;  %713 = vst [vmem:[%s1283_s23 + $0x8] sm:$0xff] (!%p820_p12), %v697_v18 }
 0x236   : > { %680 = vst [vmem:[#allocation2 + $0x20] sm:$0xff] %v664_v50  ;;  %v987_v53 = vpop.f32.mrb[6].mxu1  ;;  %712 = vst [vmem:[%s1283_s23] sm:$0xff] (!%p820_p12), %v696_v17 }
 0x237   : > { %v667_v54 = vadd.f32 %v987_v53, %v490_v51  ;;  %v611_v55 = vpop.f32.mrb[7].mxu1 }
 0x238   : > { %v666_v56 = vadd.f32 %v611_v55, %v489_v52  ;;  %v699_v20 = vld [vmem:[#allocation2 + $0x18] sm:$0xff] (!%p820_p12) }
 0x239   : > { %683 = vst [vmem:[#allocation2 + $0x38] sm:$0xff] %v667_v54  ;;  %v698_v19 = vld [vmem:[#allocation2 + $0x10] sm:$0xff] (!%p820_p12)  ;;  %715 = vst [vmem:[%s1283_s23 + $0x18] sm:$0xff] (!%p820_p12), %v699_v20 }
 0x23a   : > { %682 = vst [vmem:[#allocation2 + $0x30] sm:$0xff] %v666_v56  ;;  %v990_v59 = vpop.f32.mrb[8].mxu1  ;;  %714 = vst [vmem:[%s1283_s23 + $0x10] sm:$0xff] (!%p820_p12), %v698_v19 }
 0x23b   : > { %v669_v60 = vadd.f32 %v990_v59, %v492_v57  ;;  %v621_v61 = vpop.f32.mrb[9].mxu1 }
 0x23c   : > { %v668_v62 = vadd.f32 %v621_v61, %v491_v58  ;;  %v701_v22 = vld [vmem:[#allocation2 + $0x28] sm:$0xff] (!%p820_p12) }
 0x23d   : > { %685 = vst [vmem:[#allocation2 + $0x48] sm:$0xff] %v669_v60  ;;  %v700_v21 = vld [vmem:[#allocation2 + $0x20] sm:$0xff] (!%p820_p12)  ;;  %717 = vst [vmem:[%s1283_s23 + $0x28] sm:$0xff] (!%p820_p12), %v701_v22 }
 0x23e   : > { %684 = vst [vmem:[#allocation2 + $0x40] sm:$0xff] %v668_v62  ;;  %v993_v1 = vpop.f32.mrb[10].mxu1  ;;  %716 = vst [vmem:[%s1283_s23 + $0x20] sm:$0xff] (!%p820_p12), %v700_v21 }
 0x23f   : > { %v671_v2 = vadd.f32 %v993_v1, %v494_v63  ;;  %v631_v3 = vpop.f32.mrb[11].mxu1 }
 0x240   : > { %v670_v4 = vadd.f32 %v631_v3, %v493_v0  ;;  %v703_v24 = vld [vmem:[#allocation2 + $0x38] sm:$0xff] (!%p820_p12) }
 0x241   : > { %687 = vst [vmem:[#allocation2 + $0x58] sm:$0xff] %v671_v2  ;;  %v702_v23 = vld [vmem:[#allocation2 + $0x30] sm:$0xff] (!%p820_p12)  ;;  %719 = vst [vmem:[%s1283_s23 + $0x38] sm:$0xff] (!%p820_p12), %v703_v24 }
 0x242   : > { %686 = vst [vmem:[#allocation2 + $0x50] sm:$0xff] %v670_v4  ;;  %v996_v7 = vpop.f32.mrb[12].mxu1  ;;  %718 = vst [vmem:[%s1283_s23 + $0x30] sm:$0xff] (!%p820_p12), %v702_v23 }
 0x243   : > { %v673_v8 = vadd.f32 %v996_v7, %v496_v5  ;;  %v641_v9 = vpop.f32.mrb[13].mxu1 }
 0x244   : > { %v672_v10 = vadd.f32 %v641_v9, %v495_v6  ;;  %695 = sbr.rel (%p820_p12) target bundleno = 595 (0x253), region = 78  ;;  %v705_v26 = vld [vmem:[#allocation2 + $0x48] sm:$0xff] (!%p820_p12) }
 0x245   : > { %689 = vst [vmem:[#allocation2 + $0x68] sm:$0xff] %v673_v8  ;;  %v704_v25 = vld [vmem:[#allocation2 + $0x40] sm:$0xff] (!%p820_p12)  ;;  %721 = vst [vmem:[%s1283_s23 + $0x48] sm:$0xff] (!%p820_p12), %v705_v26 }
 0x246   : > { %688 = vst [vmem:[#allocation2 + $0x60] sm:$0xff] %v672_v10  ;;  %v999_v13 = vpop.f32.mrb[14].mxu1  ;;  %720 = vst [vmem:[%s1283_s23 + $0x40] sm:$0xff] (!%p820_p12), %v704_v25 }
 0x247   : > { %v675_v14 = vadd.f32 %v999_v13, %v498_v11  ;;  %v651_v15 = vpop.f32.mrb[15].mxu1 }
 0x248   : > { %v674_v16 = vadd.f32 %v651_v15, %v497_v12  ;;  %v707_v28 = vld [vmem:[#allocation2 + $0x58] sm:$0xff] (!%p820_p12) }
 0x249   : > { %691 = vst [vmem:[#allocation2 + $0x78] sm:$0xff] %v675_v14  ;;  %v706_v27 = vld [vmem:[#allocation2 + $0x50] sm:$0xff] (!%p820_p12)  ;;  %723 = vst [vmem:[%s1283_s23 + $0x58] sm:$0xff] (!%p820_p12), %v707_v28 }
 0x24a   : > { %690 = vst [vmem:[#allocation2 + $0x70] sm:$0xff] %v674_v16  ;;  %722 = vst [vmem:[%s1283_s23 + $0x50] sm:$0xff] (!%p820_p12), %v706_v27 }
 0x24c   : > { %v709_v30 = vld [vmem:[#allocation2 + $0x68] sm:$0xff] }
 0x24d   : > { %v708_v29 = vld [vmem:[#allocation2 + $0x60] sm:$0xff]  ;;  %725 = vst [vmem:[%s1283_s23 + $0x68] sm:$0xff] %v709_v30 }
 0x24e   : > { %724 = vst [vmem:[%s1283_s23 + $0x60] sm:$0xff] %v708_v29 }
 0x250   : > { %v711_v32 = vld [vmem:[#allocation2 + $0x78] sm:$0xff] }
 0x251   : > { %v710_v31 = vld [vmem:[#allocation2 + $0x70] sm:$0xff]  ;;  %727 = vst [vmem:[%s1283_s23 + $0x78] sm:$0xff] %v711_v32 }
 0x252   : > { %726 = vst [vmem:[%s1283_s23 + $0x70] sm:$0xff] %v710_v31 }
 0x253 PF: > { %s13_s18 = sadd.s32 1, %s1175_s18   ;;  %s1416_s12 = smov %s1155_s13 }
 0x254   : > { %p10_p13 = scmp.ge.s32.totalorder %s13_s18, 18   ;;  %s1417_s13 = smov %s1249_s25 }
 0x255   : > { %s1418_s14 = smov %s1167_s16  ;;  %s1419_s15 = smov %s1171_s17 }
 0x256   : > { %s1420_s16 = smov %s1423_s19  ;;  %s1421_s17 = smov %s1427_s20 }
 0x257   :  { %12 = sbr.rel (!%p10_p13) target bundleno = 4 (0x4), region = 114 }

// kernel: gcn_modified_ae_boosting_first_layer.4
= control target key start
LH: loop header
LB: loop body
LE: loop exit
PB: predicated region body
PF: predicated region fallthrough
CT: control target
= control target key end

     0   :  { %7 = vsyncpa [#allocation3], 0  ;;  %s1143_s0 = inlined_call_operand.hbm [shape: f32[512,128], index: 0, kind: input, shape index: {}]   ;;  %s1144_s1 = inlined_call_operand.hbm [shape: f32[128,128], index: 1, kind: input, shape index: {}]   ;;  %s1145_s2 = inlined_call_operand.vmem [shape: f32[512,128], index: 2, kind: output, shape index: {}]  }
   0x1   :  { %9 = vsyncpa [#allocation3 + $0x1], 0 }
   0x2   :  { %10 = vsyncpa [#allocation5], 0  ;;  %s924_s9 = smov 0   ;;  %s926_s10 = smov 0  }
   0x3   :  { %s928_s11 = smov 0   ;;  %s930_s12 = smov 0  }
   0x4 LB: > { %s563_s13 = sadd.s32 4294967295, %s903_s12   ;;  %p36_p0 = scmp.ne.s32.totalorder %s895_s10, %s891_s9  ;;  %s903_s12 = sphi %s930_s12, %s1161_s12   ;;  %s899_s11 = sphi %s928_s11, %s1160_s11   ;;  %s895_s10 = sphi %s926_s10, %s1159_s10   ;;  %s891_s9 = sphi %s924_s9, %s1158_s9  }
   0x5   : > { %p946_p1 = scmp.eq.s32.totalorder %s563_s13, 0  ;;  %p565_p2 = scmp.ge.s32.totalorder %s903_s12, 1 }
   0x6   : > { %p94_p3 = scmp.lt.s32.totalorder %s903_s12, 3  ;;  %s905_s17 = smov [#allocation4]  }
   0x7   : > { %s1150_s14 = scalar_select %p946_p1, 1, 0 }
   0x8   : > { %p954_p4 = por %p946_p1, %p36_p0  ;;  %p958_p5 = pnand %p565_p2, %p94_p3 }
   0x9   : > { %s106_s18 = sshll.u32 %s905_s17, 4  ;;  %s971_s20 = sadd.s32 1, %s903_s12   ;;  %s107_s18 = int_to_ptr.vmem [resolvable:$true] %s106_s18 }
   0xa   : > { %s1151_s15 = scalar_select %p954_p4, 1, 0 }
   0xb   : > { %s1152_s16 = scalar_select %p958_p5, 1, 0 }
   0xc   : > { %p761_p6 = pneg %p958_p5  ;;  %s23_s21 = sadd.s32 1, %s899_s11 }
   0xd   : > { %s20_s22 = ssub.s32 %s903_s12, %s971_s20  ;;  %s807_s25 = scalar_lea.hbm %s1144_s1, 2048 }
   0xe   : > { %p966_p7 = pnand %p761_p6, %p946_p1  ;;  %p808_p8 = scmp.ne.s32.totalorder %s1144_s1, %s807_s25 }
   0xf   : > { %p814_p12 = scmp.lt.u32.totalorder %s807_s25, %s1144_s1 }
  0x10   : > { %p809_p9 = pneg %p966_p7 }
  0x12   : > { %p810_p10 = pnand %p809_p9, %p808_p8 }
  0x14   : > { %p811_p11 = pneg %p810_p10 }
  0x16   : > { %p816_p13 = pnand %p814_p12, %p811_p11 }
  0x18   : > { %819 = shalt.err (!%p816_p13)
}
  0x19   : > { %s820_s30 = scalar_lea.vmem %s107_s18, 2048  ;;  %p828_p6 = scmp.lt.s32.totalorder %s107_s18, %s107_s18 }
  0x1a   : > { %p821_p0 = scmp.ne.s32.totalorder %s107_s18, %s820_s30  ;;  %p829_p1 = scmp.lt.s32.totalorder %s820_s30, %s820_s30 }
  0x1c   : > { %p823_p2 = pnand %p821_p0, %p809_p9  ;;  %p830_p4 = por %p829_p1, %p828_p6 }
  0x1e   : > { %p824_p3 = pneg %p823_p2 }
  0x20   : > { %p831_p5 = pnand %p830_p4, %p824_p3 }
  0x22   : > { %834 = shalt.err (!%p831_p5)
}
  0x23   : > { %s906_s3 = smov 128   ;;  %s907_s4 = smov 8  }
  0x24   : > { %764 = dma.hbm_to_vmem [thread:$0]  (!%p966_p7), %s1144_s1, 2048, %s107_s18, [#allocation5], %s906_s3, %s906_s3, %s907_s4  }
  0x25   : > { %p21_p1 = scmp.eq.s32.totalorder %s20_s22, 0  ;;  %p30_p4 = scmp.ne.s32.totalorder %s899_s11, %s895_s10 }
  0x26   : > { %p31_p5 = scmp.eq.s32.totalorder %s903_s12, 0  ;;  %p770_p8 = scmp.lt.s32.totalorder %s903_s12, 2 }
  0x27   : > { %s1000_s7 = scalar_select %p21_p1, %s899_s11, %s23_s21  }
  0x28   : > { %p32_p9 = por %p31_p5, %p30_p4  ;;  %s120_s8 = sand.u32 1, %s899_s11  }
  0x29   : > { %s568_s9 = sshll.u32 %s120_s8, 8  ;;  %s578_s17 = sshll.u32 %s903_s12, 12 }
  0x2a   : > { %s1007_s19 = scalar_lea.hbm %s1143_s0, %s578_s17  ;;  %s124_s18 = scalar_lea.vmem [#allocation2], %s568_s9 }
  0x2b   : > { %s131_s22 = sshll.u32 %s124_s18, 4  ;;  %p1011_p7 = pnand %p770_p8, %p32_p9  ;;  %s1009_s22 = int_to_ptr.vmem [resolvable:$true] %s131_s22 }
  0x2c   : > { %s1015_s25 = scalar_lea.sflag [#allocation3], %s120_s8  ;;  %s835_s26 = scalar_lea.hbm %s1007_s19, 4096 }
  0x2d   : > { %p836_p10 = scmp.ne.s32.totalorder %s1007_s19, %s835_s26  ;;  %p837_p11 = pneg %p1011_p7 }
  0x2e   : > { %s840_s29 = scalar_lea.hbm %s1143_s0, 8192  ;;  %p841_p0 = scmp.lt.u32.totalorder %s1007_s19, %s1143_s0 }
  0x2f   : > { %p838_p12 = pnand %p837_p11, %p836_p10  ;;  %p842_p2 = scmp.lt.u32.totalorder %s840_s29, %s835_s26 }
  0x30   : > { %p844_p6 = scmp.lt.u32.totalorder %s835_s26, %s1007_s19 }
  0x31   : > { %p839_p13 = pneg %p838_p12  ;;  %p843_p3 = por %p842_p2, %p841_p0 }
  0x33   : > { %p845_p1 = por %p844_p6, %p843_p3 }
  0x35   : > { %p846_p4 = pnand %p845_p1, %p839_p13 }
  0x37   : > { %849 = shalt.err (!%p846_p4)
}
  0x38   : > { %s850_s6 = scalar_lea.vmem %s1009_s22, 4096  ;;  %s908_s8 = smov [#allocation2]  }
  0x39   : > { %p851_p5 = scmp.ne.s32.totalorder %s1009_s22, %s850_s6  ;;  %s855_s9 = sshll.u32 %s908_s8, 4  ;;  %s856_s9 = int_to_ptr.vmem [resolvable:$false] %s855_s9 }
  0x3a   : > { %s857_s17 = scalar_lea.vmem %s856_s9, 8192  ;;  %p858_p10 = scmp.lt.s32.totalorder %s1009_s22, %s856_s9 }
  0x3b   : > { %p853_p8 = pnand %p851_p5, %p837_p11  ;;  %p859_p12 = scmp.lt.s32.totalorder %s857_s17, %s850_s6 }
  0x3d   : > { %p854_p9 = pneg %p853_p8  ;;  %p860_p0 = por %p859_p12, %p858_p10 }
  0x3f   : > { %p861_p2 = pnand %p860_p0, %p854_p9 }
  0x41   : > { %864 = shalt.err (!%p861_p2)
}
  0x42   : > { %768 = dma.hbm_to_vmem [thread:$0]  (!%p1011_p7), %s1007_s19, 4096, %s1009_s22, %s1015_s25, %s906_s3, %s906_s3, %s907_s4  }
  0x43   : > { %p1155_p11 = scmp.ne.s32.totalorder %s1152_s16, 0 }
  0x44   : > { %s145_s23 = sand.u32 (!%p1155_p11), 1, %s895_s10   ;;  %p1156_p13 = scmp.ne.s32.totalorder (!%p1155_p11), %s1151_s15, 0 }
  0x45   : > { %143 = sbr.rel (%p1155_p11) target bundleno = 357 (0x165), region = 28  ;;  %s572_s24 = sshll.u32 (!%p1155_p11), %s145_s23, 8 }
  0x46   : > { %s146_s18 = scalar_lea.sflag (!%p1155_p11), [#allocation3], %s145_s23  ;;  %s1049_s26 = scalar_lea.vmem (!%p1155_p11), [#allocation2], %s572_s24 }
  0x4c   : > { %882 = dma.done.wait (%p1156_p13), %s146_s18, 4096  }
  0x4d   : > { %884 = vsyncadd (%p1156_p13), %s146_s18, 4294963200  ;;  %p1157_p3 = scmp.ne.s32.totalorder %s1150_s14, 0 }
  0x4f   : > { %886 = dma.done.wait (%p1157_p3), [#allocation5], 2048  }
  0x50   : > { %888 = vsyncadd (%p1157_p3), [#allocation5], 4294965248  ;;  %v213_v0 = vld [vmem:[#allocation4] sm:$0xff]  ;;  %v214_v1 = vld [vmem:[#allocation4 + $0x8] sm:$0xff]  ;;  %s574_s14 = sshll.u32 %s563_s13, 5 }
  0x51   : > { %v215_v2 = vld [vmem:[#allocation4 + $0x10] sm:$0xff]  ;;  %v707_v3 = vpack.c.bf16 %v214_v1, %v213_v0  ;;  %v216_v4 = vld [vmem:[#allocation4 + $0x18] sm:$0xff]  ;;  %v217_v6 = vld [vmem:[#allocation4 + $0x20] sm:$0xff]  ;;  %p176_p7 = scmp.lt.s32.totalorder %s574_s14, 63 }
  0x52   : > { %v711_v5 = vpack.c.bf16 %v216_v4, %v215_v2  ;;  %v218_v7 = vld [vmem:[#allocation4 + $0x28] sm:$0xff]  ;;  %v181_v9 = vld [vmem:[%s1049_s26] sm:$0xff]  ;;  %v219_v11 = vld [vmem:[#allocation4 + $0x30] sm:$0xff] }
  0x53   : > { %708 = vmatprep.subr.bf16.mxu0 %v707_v3  ;;  %739 = vmatprep.subr.bf16.mxu1 %v707_v3  ;;  %v715_v8 = vpack.c.bf16 %v218_v7, %v217_v6  ;;  %v197_v10 = vld [vmem:[%s1049_s26 + $0x80] sm:$0xff]  ;;  %v220_v12 = vld [vmem:[#allocation4 + $0x38] sm:$0xff]  ;;  %v222_v15 = vld [vmem:[#allocation4 + $0x48] sm:$0xff]  ;;  %s1163_s14 = smov (!%p176_p7, %s574_s14), 63 }
  0x54   : > { %710 = vmatpush3.bf16.msra.mxu0 %v707_v3  ;;  %747 = vmatpush3.bf16.msra.mxu1 %v707_v3  ;;  %v719_v13 = vpack.c.bf16 %v220_v12, %v219_v11  ;;  %v221_v14 = vld [vmem:[#allocation4 + $0x40] sm:$0xff]  ;;  %v223_v17 = vld [vmem:[#allocation4 + $0x50] sm:$0xff]  ;;  %v224_v18 = vld [vmem:[#allocation4 + $0x58] sm:$0xff]  ;;  %s575_s15 = sshll.u32 %s1163_s14, 3 }
  0x55   : > { %712 = vmatprep.subr.bf16.mxu0 %v711_v5  ;;  %740 = vmatprep.subr.bf16.mxu1 %v711_v5  ;;  %v723_v16 = vpack.c.bf16 %v222_v15, %v221_v14  ;;  %v727_v19 = vpack.c.bf16 %v224_v18, %v223_v17  ;;  %v225_v20 = vld [vmem:[#allocation4 + $0x60] sm:$0xff]  ;;  %v226_v21 = vld [vmem:[#allocation4 + $0x68] sm:$0xff]  ;;  %v227_v23 = vld [vmem:[#allocation4 + $0x70] sm:$0xff]  ;;  %s1096_s4 = scalar_lea.vmem %s1145_s2, %s575_s15 }
  0x56   : > { %659 = vmatprep.mubr.f32.mxu0 %v181_v9  ;;  %683 = vmatprep.mubr.f32.mxu1 %v197_v10  ;;  %v731_v22 = vpack.c.bf16 %v226_v21, %v225_v20  ;;  %v228_v24 = vld [vmem:[#allocation4 + $0x78] sm:$0xff]  ;;  %v182_v26 = vld [vmem:[%s1049_s26 + $0x8] sm:$0xff]  ;;  %v183_v28 = vld [vmem:[%s1049_s26 + $0x10] sm:$0xff] }
  0x57   : > { %v735_v25 = vpack.c.bf16 %v228_v24, %v227_v23  ;;  %v198_v27 = vld [vmem:[%s1049_s26 + $0x88] sm:$0xff]  ;;  %v199_v29 = vld [vmem:[%s1049_s26 + $0x90] sm:$0xff]  ;;  %v184_v30 = vld [vmem:[%s1049_s26 + $0x18] sm:$0xff] }
  0x58   : > { %714 = vmatpush3.bf16.msra.mxu0 %v711_v5  ;;  %748 = vmatpush3.bf16.msra.mxu1 %v711_v5  ;;  %v200_v31 = vld [vmem:[%s1049_s26 + $0x98] sm:$0xff]  ;;  %v185_v32 = vld [vmem:[%s1049_s26 + $0x20] sm:$0xff]  ;;  %v186_v34 = vld [vmem:[%s1049_s26 + $0x28] sm:$0xff] }
  0x59   : > { %716 = vmatprep.subr.bf16.mxu0 %v715_v8  ;;  %741 = vmatprep.subr.bf16.mxu1 %v715_v8  ;;  %v201_v33 = vld [vmem:[%s1049_s26 + $0xa0] sm:$0xff]  ;;  %v202_v35 = vld [vmem:[%s1049_s26 + $0xa8] sm:$0xff]  ;;  %v187_v36 = vld [vmem:[%s1049_s26 + $0x30] sm:$0xff] }
  0x5a   : > { %v203_v37 = vld [vmem:[%s1049_s26 + $0xb0] sm:$0xff]  ;;  %v188_v38 = vld [vmem:[%s1049_s26 + $0x38] sm:$0xff]  ;;  %v189_v40 = vld [vmem:[%s1049_s26 + $0x40] sm:$0xff] }
  0x5b   : > { %v204_v39 = vld [vmem:[%s1049_s26 + $0xb8] sm:$0xff]  ;;  %v205_v41 = vld [vmem:[%s1049_s26 + $0xc0] sm:$0xff]  ;;  %v190_v42 = vld [vmem:[%s1049_s26 + $0x48] sm:$0xff] }
  0x5c   : > { %718 = vmatpush3.bf16.msra.mxu0 %v715_v8  ;;  %749 = vmatpush3.bf16.msra.mxu1 %v715_v8  ;;  %v206_v43 = vld [vmem:[%s1049_s26 + $0xc8] sm:$0xff]  ;;  %v191_v44 = vld [vmem:[%s1049_s26 + $0x50] sm:$0xff]  ;;  %v192_v46 = vld [vmem:[%s1049_s26 + $0x58] sm:$0xff] }
  0x5d   : > { %720 = vmatprep.subr.bf16.mxu0 %v719_v13  ;;  %742 = vmatprep.subr.bf16.mxu1 %v719_v13  ;;  %v207_v45 = vld [vmem:[%s1049_s26 + $0xd0] sm:$0xff]  ;;  %v208_v47 = vld [vmem:[%s1049_s26 + $0xd8] sm:$0xff]  ;;  %v193_v48 = vld [vmem:[%s1049_s26 + $0x60] sm:$0xff] }
  0x5e   : > { %v209_v49 = vld [vmem:[%s1049_s26 + $0xe0] sm:$0xff]  ;;  %v194_v50 = vld [vmem:[%s1049_s26 + $0x68] sm:$0xff]  ;;  %v195_v52 = vld [vmem:[%s1049_s26 + $0x70] sm:$0xff] }
  0x5f   : > { %v210_v51 = vld [vmem:[%s1049_s26 + $0xe8] sm:$0xff]  ;;  %v211_v53 = vld [vmem:[%s1049_s26 + $0xf0] sm:$0xff]  ;;  %v196_v54 = vld [vmem:[%s1049_s26 + $0x78] sm:$0xff] }
  0x60   : > { %722 = vmatpush3.bf16.msra.mxu0 %v719_v13  ;;  %750 = vmatpush3.bf16.msra.mxu1 %v719_v13  ;;  %v212_v55 = vld [vmem:[%s1049_s26 + $0xf8] sm:$0xff] }
  0x61   : > { %724 = vmatprep.subr.bf16.mxu0 %v723_v16  ;;  %743 = vmatprep.subr.bf16.mxu1 %v723_v16 }
  0x64   : > { %726 = vmatpush3.bf16.msra.mxu0 %v723_v16  ;;  %751 = vmatpush3.bf16.msra.mxu1 %v723_v16 }
  0x65   : > { %728 = vmatprep.subr.bf16.mxu0 %v727_v19  ;;  %744 = vmatprep.subr.bf16.mxu1 %v727_v19 }
  0x68   : > { %730 = vmatpush3.bf16.msra.mxu0 %v727_v19  ;;  %752 = vmatpush3.bf16.msra.mxu1 %v727_v19 }
  0x69   : > { %732 = vmatprep.subr.bf16.mxu0 %v731_v22  ;;  %745 = vmatprep.subr.bf16.mxu1 %v731_v22 }
  0x6c   : > { %734 = vmatpush3.bf16.msra.mxu0 %v731_v22  ;;  %753 = vmatpush3.bf16.msra.mxu1 %v731_v22 }
  0x6d   : > { %736 = vmatprep.subr.bf16.mxu0 %v735_v25  ;;  %746 = vmatprep.subr.bf16.mxu1 %v735_v25 }
  0x70   : > { %738 = vmatpush3.bf16.msra.mxu0 %v735_v25  ;;  %754 = vmatpush3.bf16.msra.mxu1 %v735_v25 }
  0x73   : > { %660 = vmatmul.mubr.f32.vlgmr.msra.gmra.mrb[0].mxu0 %v182_v26  ;;  %684 = vmatmul.mubr.f32.vlgmr.msra.gmra.mrb[0].mxu1 %v198_v27 }
  0x74   : > { %662 = vmatprep.mubr.f32.mxu0 %v183_v28  ;;  %686 = vmatprep.mubr.f32.mxu1 %v199_v29 }
  0x77   : > { %663 = vmatmul.mubr.f32.gmra.mrb[2].mxu0 %v184_v30  ;;  %687 = vmatmul.mubr.f32.gmra.mrb[2].mxu1 %v200_v31 }
  0x78   : > { %665 = vmatprep.mubr.f32.mxu0 %v185_v32  ;;  %689 = vmatprep.mubr.f32.mxu1 %v201_v33 }
  0x7b   : > { %666 = vmatmul.mubr.f32.gmra.mrb[4].mxu0 %v186_v34  ;;  %690 = vmatmul.mubr.f32.gmra.mrb[4].mxu1 %v202_v35 }
  0x7c   : > { %668 = vmatprep.mubr.f32.mxu0 %v187_v36  ;;  %692 = vmatprep.mubr.f32.mxu1 %v203_v37 }
  0x7f   : > { %669 = vmatmul.mubr.f32.gmra.mrb[6].mxu0 %v188_v38  ;;  %693 = vmatmul.mubr.f32.gmra.mrb[6].mxu1 %v204_v39 }
  0x80   : > { %671 = vmatprep.mubr.f32.mxu0 %v189_v40  ;;  %695 = vmatprep.mubr.f32.mxu1 %v205_v41 }
  0x83   : > { %672 = vmatmul.mubr.f32.gmra.mrb[8].mxu0 %v190_v42  ;;  %696 = vmatmul.mubr.f32.gmra.mrb[8].mxu1 %v206_v43 }
  0x84   : > { %674 = vmatprep.mubr.f32.mxu0 %v191_v44  ;;  %698 = vmatprep.mubr.f32.mxu1 %v207_v45 }
  0x87   : > { %675 = vmatmul.mubr.f32.gmra.mrb[10].mxu0 %v192_v46  ;;  %699 = vmatmul.mubr.f32.gmra.mrb[10].mxu1 %v208_v47 }
  0x88   : > { %677 = vmatprep.mubr.f32.mxu0 %v193_v48  ;;  %701 = vmatprep.mubr.f32.mxu1 %v209_v49 }
  0x8b   : > { %678 = vmatmul.mubr.f32.gmra.mrb[12].mxu0 %v194_v50  ;;  %702 = vmatmul.mubr.f32.gmra.mrb[12].mxu1 %v210_v51 }
  0x8c   : > { %680 = vmatprep.mubr.f32.mxu0 %v195_v52  ;;  %704 = vmatprep.mubr.f32.mxu1 %v211_v53 }
  0x8f   : > { %681 = vmatmul.mubr.f32.gmra.mrb[14].mxu0 %v196_v54  ;;  %705 = vmatmul.mubr.f32.gmra.mrb[14].mxu1 %v212_v55 }
 0x146   : > { %v661_v56 = vpop.f32.mrb[0].mxu0  ;;  %v685_v57 = vpop.f32.mrb[0].mxu1 }
 0x147   : > { %455 = vst [vmem:[%s1096_s4 + $0x8] sm:$0xff] %v661_v56  ;;  %471 = vst [vmem:[%s1096_s4 + $0x88] sm:$0xff] %v685_v57  ;;  %v295_v58 = vpop.f32.mrb[1].mxu0  ;;  %v375_v59 = vpop.f32.mrb[1].mxu1 }
 0x148   : > { %454 = vst [vmem:[%s1096_s4] sm:$0xff] %v295_v58  ;;  %470 = vst [vmem:[%s1096_s4 + $0x80] sm:$0xff] %v375_v59 }
 0x14a   : > { %v664_v60 = vpop.f32.mrb[2].mxu0  ;;  %v688_v61 = vpop.f32.mrb[2].mxu1 }
 0x14b   : > { %457 = vst [vmem:[%s1096_s4 + $0x18] sm:$0xff] %v664_v60  ;;  %473 = vst [vmem:[%s1096_s4 + $0x98] sm:$0xff] %v688_v61  ;;  %v305_v62 = vpop.f32.mrb[3].mxu0  ;;  %v385_v63 = vpop.f32.mrb[3].mxu1 }
 0x14c   : > { %456 = vst [vmem:[%s1096_s4 + $0x10] sm:$0xff] %v305_v62  ;;  %472 = vst [vmem:[%s1096_s4 + $0x90] sm:$0xff] %v385_v63 }
 0x14e   : > { %v667_v0 = vpop.f32.mrb[4].mxu0  ;;  %v691_v1 = vpop.f32.mrb[4].mxu1 }
 0x14f   : > { %459 = vst [vmem:[%s1096_s4 + $0x28] sm:$0xff] %v667_v0  ;;  %475 = vst [vmem:[%s1096_s4 + $0xa8] sm:$0xff] %v691_v1  ;;  %v315_v2 = vpop.f32.mrb[5].mxu0  ;;  %v395_v3 = vpop.f32.mrb[5].mxu1 }
 0x150   : > { %458 = vst [vmem:[%s1096_s4 + $0x20] sm:$0xff] %v315_v2  ;;  %474 = vst [vmem:[%s1096_s4 + $0xa0] sm:$0xff] %v395_v3 }
 0x152   : > { %v670_v4 = vpop.f32.mrb[6].mxu0  ;;  %v694_v5 = vpop.f32.mrb[6].mxu1 }
 0x153   : > { %461 = vst [vmem:[%s1096_s4 + $0x38] sm:$0xff] %v670_v4  ;;  %477 = vst [vmem:[%s1096_s4 + $0xb8] sm:$0xff] %v694_v5  ;;  %v325_v6 = vpop.f32.mrb[7].mxu0  ;;  %v405_v7 = vpop.f32.mrb[7].mxu1 }
 0x154   : > { %460 = vst [vmem:[%s1096_s4 + $0x30] sm:$0xff] %v325_v6  ;;  %476 = vst [vmem:[%s1096_s4 + $0xb0] sm:$0xff] %v405_v7 }
 0x156   : > { %v673_v8 = vpop.f32.mrb[8].mxu0  ;;  %v697_v9 = vpop.f32.mrb[8].mxu1 }
 0x157   : > { %463 = vst [vmem:[%s1096_s4 + $0x48] sm:$0xff] %v673_v8  ;;  %479 = vst [vmem:[%s1096_s4 + $0xc8] sm:$0xff] %v697_v9  ;;  %v335_v10 = vpop.f32.mrb[9].mxu0  ;;  %v415_v11 = vpop.f32.mrb[9].mxu1 }
 0x158   : > { %462 = vst [vmem:[%s1096_s4 + $0x40] sm:$0xff] %v335_v10  ;;  %478 = vst [vmem:[%s1096_s4 + $0xc0] sm:$0xff] %v415_v11 }
 0x15a   : > { %v676_v12 = vpop.f32.mrb[10].mxu0  ;;  %v700_v13 = vpop.f32.mrb[10].mxu1 }
 0x15b   : > { %465 = vst [vmem:[%s1096_s4 + $0x58] sm:$0xff] %v676_v12  ;;  %481 = vst [vmem:[%s1096_s4 + $0xd8] sm:$0xff] %v700_v13  ;;  %v345_v14 = vpop.f32.mrb[11].mxu0  ;;  %v425_v15 = vpop.f32.mrb[11].mxu1 }
 0x15c   : > { %464 = vst [vmem:[%s1096_s4 + $0x50] sm:$0xff] %v345_v14  ;;  %480 = vst [vmem:[%s1096_s4 + $0xd0] sm:$0xff] %v425_v15 }
 0x15e   : > { %v679_v16 = vpop.f32.mrb[12].mxu0  ;;  %v703_v17 = vpop.f32.mrb[12].mxu1 }
 0x15f   : > { %467 = vst [vmem:[%s1096_s4 + $0x68] sm:$0xff] %v679_v16  ;;  %483 = vst [vmem:[%s1096_s4 + $0xe8] sm:$0xff] %v703_v17  ;;  %v355_v18 = vpop.f32.mrb[13].mxu0  ;;  %v435_v19 = vpop.f32.mrb[13].mxu1 }
 0x160   : > { %466 = vst [vmem:[%s1096_s4 + $0x60] sm:$0xff] %v355_v18  ;;  %482 = vst [vmem:[%s1096_s4 + $0xe0] sm:$0xff] %v435_v19 }
 0x162   : > { %v682_v20 = vpop.f32.mrb[14].mxu0  ;;  %v706_v21 = vpop.f32.mrb[14].mxu1 }
 0x163   : > { %469 = vst [vmem:[%s1096_s4 + $0x78] sm:$0xff] %v682_v20  ;;  %485 = vst [vmem:[%s1096_s4 + $0xf8] sm:$0xff] %v706_v21  ;;  %v365_v22 = vpop.f32.mrb[15].mxu0  ;;  %v445_v23 = vpop.f32.mrb[15].mxu1 }
 0x164   : > { %468 = vst [vmem:[%s1096_s4 + $0x70] sm:$0xff] %v365_v22  ;;  %484 = vst [vmem:[%s1096_s4 + $0xf0] sm:$0xff] %v445_v23 }
 0x165 PF: > { %p13_p6 = scmp.ge.s32.totalorder %s971_s20, 4   ;;  %s1158_s9 = smov %s895_s10 }
 0x166   : > { %s1159_s10 = smov %s899_s11  ;;  %s1160_s11 = smov %s1000_s7 }
 0x167   : > { %s1161_s12 = smov %s971_s20  ;;  %15 = sbr.rel (!%p13_p6) target bundleno = 4 (0x4), region = 72 }
 0x16e   :  { %508 = vsyncpa [#allocation3], 1 }
 0x16f   :  { %510 = vsyncpa [#allocation3 + $0x1], 1 }
 0x170   :  { %511 = vsyncpa [#allocation5], 1 }

// kernel: gcn_modified_ae_boosting_first_layer.5
= control target key start
LH: loop header
LB: loop body
LE: loop exit
PB: predicated region body
PF: predicated region fallthrough
CT: control target
= control target key end

     0   :  { %s2437_s0 = inlined_call_operand.hbm [shape: f32[512,512], index: 0, kind: input, shape index: {}, may-alias: {0,1}]   ;;  %s2438_s1 = inlined_call_operand.hbm [shape: f32[512,512], index: 1, kind: input, shape index: {}, may-alias: {0,1}]   ;;  %s2439_s2 = inlined_call_operand.vmem [shape: f32[512,128], index: 2, kind: input, shape index: {}]   ;;  %s2440_s3 = inlined_call_operand.hbm [shape: f32[512,512], index: 3, kind: output, shape index: {0}]   ;;  %s2441_s4 = inlined_call_operand.vmem [shape: f32[512,128], index: 4, kind: output, shape index: {1}]  }
   0x1   :  { %2462 = sst [smem:[#allocation20_spill]] %s2437_s0 }
   0x2   :  { %2463 = sst [smem:[#allocation21_spill]] %s2438_s1 }
   0x3   :  { %2464 = sst [smem:[#allocation22_spill]] %s2439_s2 }
   0x4   :  { %2465 = sst [smem:[#allocation23_spill]] %s2440_s3 }
   0x5   :  { %10 = vsyncpa [#allocation5], 0 }
   0x6   :  { %12 = vsyncpa [#allocation5 + $0x1], 0 }
   0x7   :  { %13 = vsyncpa [#allocation8], 0 }
   0x8   :  { %15 = vsyncpa [#allocation8 + $0x1], 0 }
   0x9   :  { %16 = vsyncpa [#allocation6], 0 }
   0xa   :  { %18 = vsyncpa [#allocation6 + $0x1], 0  ;;  %s1837_s15 = smov 0   ;;  %s1839_s16 = smov 0  }
   0xb   :  { %s1841_s17 = smov 0   ;;  %s1843_s18 = smov 0  }
   0xc   :  { %s1845_s19 = smov 0   ;;  %s1847_s20 = smov 0  }
   0xd   :  { %s1849_s21 = smov 0   ;;  %s1851_s22 = smov 0  }
   0xe   :  { %s1853_s23 = smov 0   ;;  %s1855_s24 = smov 0  }
   0xf   :  { %s1857_s25 = smov 0   ;;  %s1859_s26 = smov 0  }
  0x10   :  { %s1861_s27 = smov 0   ;;  %s1863_s28 = smov 0  }
  0x11   :  { %s1865_s29 = smov 0   ;;  %s1867_s30 = smov 0  }
  0x12 LB: > { %2466 = sst [smem:[#allocation13_spill]] %s1775_s24  ;;  %s36_s5 = sadd.s32 1, %s1787_s27  ;;  %s1799_s30 = sphi %s1867_s30, %s24_s30   ;;  %s1795_s29 = sphi %s1865_s29, %s2514_s29   ;;  %s1791_s28 = sphi %s1863_s28, %s2527_s28   ;;  %s1787_s27 = sphi %s1861_s27, %s2526_s27   ;;  %s1783_s26 = sphi %s1859_s26, %s2511_s26   ;;  %s1779_s25 = sphi %s1857_s25, %s2525_s25   ;;  %s1775_s24 = sphi %s1855_s24, %s2524_s24   ;;  %s1771_s23 = sphi %s1853_s23, %s2523_s23   ;;  %s1767_s22 = sphi %s1851_s22, %s2522_s22   ;;  %s1763_s21 = sphi %s1849_s21, %s2521_s21   ;;  %s1759_s20 = sphi %s1847_s20, %s2520_s20   ;;  %s1755_s19 = sphi %s1845_s19, %s2519_s19   ;;  %s1751_s18 = sphi %s1843_s18, %s2518_s18   ;;  %s1747_s17 = sphi %s1841_s17, %s2517_s17   ;;  %s1743_s16 = sphi %s1839_s16, %s2516_s16   ;;  %s1739_s15 = sphi %s1837_s15, %s2515_s15  }
  0x13   : > { %2467 = sst [smem:[#allocation14_spill]] %s1779_s25  ;;  %s2442_s6 = sadd.s32 4294967295, %s1799_s30  }
  0x14   : > { %2468 = sst [smem:[#allocation15_spill]] %s1795_s29  ;;  %p1917_p0 = scmp.ge.s32.totalorder %s36_s5, 4 }
  0x15   : > { %p59_p1 = scmp.ne.s32.totalorder %s1771_s23, %s1767_s22  ;;  %p2449_p2 = scmp.eq.s32.totalorder %s1799_s30, 0 }
  0x16   : > { %s2529_s5 = smov (%p1917_p0, %s36_s5), 0  ;;  %p65_p3 = scmp.ne.s32.totalorder %s1767_s22, %s1763_s21 }
  0x17   : > { %2470 = sst [smem:[#allocation16_spill]] %s2529_s5  ;;  %p1933_p4 = scmp.eq.s32.totalorder %s2442_s6, 0 }
  0x18   : > { %s1939_s11 = ssub.s32 %s1787_s27, %s2529_s5  ;;  %p61_p5 = por %p2449_p2, %p59_p1 }
  0x19   : > { %s2471_s10 = scalar_select %p1933_p4, 1, 0 }
  0x1a   : > { %p1945_p6 = por %p1933_p4, %p65_p3  ;;  %p2448_p7 = scmp.lt.s32.totalorder %s1799_s30, 64 }
  0x1b   : > { %s195_s13 = sand.u32 1, %s1771_s23   ;;  %s1143_s21 = sshll.u32 %s1795_s29, 6 }
  0x1c   : > { %s2472_s12 = scalar_select %p1945_p6, 1, 0 }
  0x1d   : > { %s1118_s14 = sshll.u32 %s195_s13, 7  ;;  %s205_s9 = sadd.s32 %s1787_s27, %s1143_s21 }
  0x1e   : > { %s199_s8 = scalar_lea.vmem [#allocation4], %s1118_s14  ;;  %s1121_s3 = sshll.u32 %s205_s9, 7 }
  0x1f   : > { %s208_s6 = sshll.u32 %s199_s8, 4  ;;  %s2473_s0 = sld [smem:[#allocation20_spill]]  ;;  %s1953_s6 = int_to_ptr.vmem [resolvable:$true] %s208_s6 }
  0x20   : > { %p1962_p8 = pnand %p2448_p7, %p61_p5  ;;  %s1966_s8 = scalar_lea.sflag [#allocation5], %s195_s13 }
  0x22   : > { %p1575_p10 = pneg %p1962_p8 }
  0x25   : > { %s1958_s25 = scalar_lea.hbm %s2473_s0, %s1121_s3  ;;  %s1578_s5 = scalar_lea.hbm %s2473_s0, 32768 }
  0x26   : > { %s1573_s9 = scalar_lea.hbm %s1958_s25, 2048  ;;  %p1579_p13 = scmp.lt.u32.totalorder %s1958_s25, %s2473_s0 }
  0x27   : > { %p1574_p9 = scmp.ne.s32.totalorder %s1958_s25, %s1573_s9  ;;  %p1580_p1 = scmp.lt.u32.totalorder %s1578_s5, %s1573_s9 }
  0x28   : > { %p1582_p5 = scmp.lt.u32.totalorder %s1573_s9, %s1958_s25 }
  0x29   : > { %p1576_p11 = pnand %p1575_p10, %p1574_p9  ;;  %p1581_p3 = por %p1580_p1, %p1579_p13 }
  0x2b   : > { %p1577_p12 = pneg %p1576_p11  ;;  %p1583_p7 = por %p1582_p5, %p1581_p3 }
  0x2d   : > { %p1584_p2 = pnand %p1583_p7, %p1577_p12 }
  0x2f   : > { %1587 = shalt.err (!%p1584_p2)
}
  0x30   : > { %s1588_s13 = scalar_lea.vmem %s1953_s6, 2048  ;;  %s1801_s2 = smov [#allocation4]  }
  0x31   : > { %p1589_p9 = scmp.ne.s32.totalorder %s1953_s6, %s1588_s13  ;;  %s1593_s3 = sshll.u32 %s1801_s2, 4  ;;  %s1594_s3 = int_to_ptr.vmem [resolvable:$false] %s1593_s3 }
  0x32   : > { %s1595_s14 = scalar_lea.vmem %s1594_s3, 4096  ;;  %p1596_p4 = scmp.lt.s32.totalorder %s1953_s6, %s1594_s3 }
  0x33   : > { %p1591_p11 = pnand %p1589_p9, %p1575_p10  ;;  %p1597_p13 = scmp.lt.s32.totalorder %s1595_s14, %s1588_s13 }
  0x35   : > { %p1592_p6 = pneg %p1591_p11  ;;  %p1598_p1 = por %p1597_p13, %p1596_p4 }
  0x37   : > { %p1599_p3 = pnand %p1598_p1, %p1592_p6 }
  0x39   : > { %1602 = shalt.err (!%p1599_p3)
}
  0x3a   : > { %s2452_s9 = smov 512   ;;  %s2453_s5 = smov 128  }
  0x3b   : > { %s2454_s21 = smov 8   ;;  %p1126_p2 = scmp.ge.s32.totalorder %s1799_s30, 1 }
  0x3c   : > { %1427 = dma.hbm_to_vmem [thread:$0]  (!%p1962_p8), %s1958_s25, 2048, %s1953_s6, %s1966_s8, %s2452_s9, %s2453_s5, %s2454_s21  }
  0x3d   : > { %p239_p4 = scmp.lt.s32.totalorder %s1799_s30, 65  ;;  %s2475_s13 = sadd.s32 4294967295, %s1799_s30  }
  0x3e   : > { %p2001_p6 = scmp.eq.s32.totalorder %s2475_s13, 63  ;;  %s1115_s24 = sadd.s32 4294967294, %s1799_s30  }
  0x3f   : > { %p2005_p7 = pnand %p1126_p2, %p239_p4  ;;  %s39_s14 = sadd.s32 1, %s1791_s28 }
  0x40   : > { %s2531_s14 = smov (!%p1917_p0, %s39_s14), %s1791_s28  ;;  %s80_s25 = sadd.s32 1, %s1759_s20 }
  0x41   : > { %p93_p8 = scmp.ne.s32.totalorder %s1755_s19, %s1751_s18  ;;  %p41_p10 = scmp.ge.s32.totalorder %s2531_s14, 4 }
  0x42   : > { %p87_p12 = scmp.ne.s32.totalorder %s1759_s20, %s1755_s19  ;;  %p2478_p5 = scmp.ne.s32.totalorder %s2471_s10, 0 }
  0x43   : > { %s129_s8 = sadd.s32 1, %s1747_s17  ;;  %s2533_s14 = smov (%p41_p10, %s2531_s14), 0 }
  0x44   : > { %p2021_p9 = por %p93_p8, %p2478_p5  ;;  %2480 = sst [smem:[#allocation17_spill]] %s2533_s14 }
  0x45   : > { %s2481_s13 = sadd.s32 1, %s1795_s29  ;;  %s76_s7 = ssub.s32 %s1791_s28, %s2533_s14 }
  0x46   : > { %s2479_s6 = scalar_select %p2021_p9, 1, 0 }
  0x47   : > { %s2535_s13 = smov (!%p41_p10, %s2481_s13), %s1795_s29  ;;  %p139_p0 = scmp.ne.s32.totalorder %s1747_s17, %s1743_s16 }
  0x48   : > { %p45_p11 = scmp.ge.s32.totalorder %s2535_s13, 4  ;;  %s77_s18 = sor.u32 %s76_s7, %s1939_s11 }
  0x49   : > { %p78_p13 = scmp.eq.s32.totalorder %s77_s18, 0  ;;  %p2038_p1 = por %p2001_p6, %p139_p0 }
  0x4a   : > { %s2537_s13 = smov (%p45_p11, %s2535_s13), 0  ;;  %p145_p3 = scmp.ne.s32.totalorder %s1743_s16, %s1739_s15 }
  0x4b   : > { %s2482_s10 = scalar_select %p2038_p1, 1, 0 }
  0x4c   : > { %2484 = sst [smem:[#allocation19_spill]] %s2537_s13  ;;  %s47_s5 = ssub.s32 %s1795_s29, %s2537_s13 }
  0x4d   : > { %2483 = sst [smem:[#allocation18_spill]] %s2482_s10  ;;  %s49_s21 = sor.u32 %s1939_s11, %s47_s5 }
  0x4e   : > { %s2045_s9 = scalar_select %p78_p13, %s1759_s20, %s80_s25  }
  0x4f   : > { %s126_s0 = sor.u32 %s76_s7, %s47_s5  ;;  %p50_p2 = scmp.eq.s32.totalorder %s49_s21, 0 }
  0x50   : > { %p127_p4 = scmp.eq.s32.totalorder %s126_s0, 0  ;;  %p146_p8 = scmp.eq.s32.totalorder %s1115_s24, 63 }
  0x51   : > { %s218_s2 = sand.u32 1, %s1759_s20   ;;  %s2485_s18 = sadd.s32 1, %s1771_s23 }
  0x52   : > { %s2056_s14 = scalar_select %p50_p2, %s1771_s23, %s2485_s18  }
  0x53   : > { %s2059_s10 = scalar_select %p127_p4, %s1747_s17, %s129_s8  }
  0x54   : > { %p2486_p6 = scmp.eq.s32.totalorder %s1799_s30, 0  ;;  %p2066_p5 = por %p146_p8, %p145_p3 }
  0x55   : > { %s1122_s13 = sshll.u32 %s218_s2, 7  ;;  %s1144_s11 = sshll.u32 %s1787_s27, 6 }
  0x56   : > { %p89_p10 = por %p87_p12, %p2486_p6  ;;  %s228_s5 = sadd.s32 %s1791_s28, %s1144_s11 }
  0x57   : > { %s2487_s25 = scalar_select %p2066_p5, 1, 0 }
  0x58   : > { %s1125_s21 = sshll.u32 %s228_s5, 7  ;;  %s222_s7 = scalar_lea.vmem [#allocation7], %s1122_s13 }
  0x59   : > { %s231_s0 = sshll.u32 %s222_s7, 4  ;;  %s2488_s1 = sld [smem:[#allocation21_spill]]  ;;  %s2077_s0 = int_to_ptr.vmem [resolvable:$true] %s231_s0 }
  0x5a   : > { %p2489_p12 = scmp.lt.s32.totalorder %s1799_s30, 64  ;;  %s2085_s13 = scalar_lea.sflag [#allocation8], %s218_s2 }
  0x5c   : > { %p2081_p0 = pnand %p2489_p12, %p89_p10 }
  0x5e   : > { %p1605_p13 = pneg %p2081_p0 }
  0x5f   : > { %s2075_s18 = scalar_lea.hbm %s2488_s1, %s1125_s21  ;;  %s1608_s21 = scalar_lea.hbm %s2488_s1, 32768 }
  0x60   : > { %s1603_s11 = scalar_lea.hbm %s2075_s18, 2048  ;;  %p1609_p4 = scmp.lt.u32.totalorder %s2075_s18, %s2488_s1 }
  0x61   : > { %p1604_p11 = scmp.ne.s32.totalorder %s2075_s18, %s1603_s11  ;;  %p1610_p8 = scmp.lt.u32.totalorder %s1608_s21, %s1603_s11 }
  0x62   : > { %p1612_p10 = scmp.lt.u32.totalorder %s1603_s11, %s2075_s18 }
  0x63   : > { %p1606_p3 = pnand %p1605_p13, %p1604_p11  ;;  %p1611_p6 = por %p1610_p8, %p1609_p4 }
  0x65   : > { %p1607_p2 = pneg %p1606_p3  ;;  %p1613_p12 = por %p1612_p10, %p1611_p6 }
  0x67   : > { %p1614_p5 = pnand %p1613_p12, %p1607_p2 }
  0x69   : > { %1617 = shalt.err (!%p1614_p5)
}
  0x6a   : > { %s1618_s2 = scalar_lea.vmem %s2077_s0, 2048  ;;  %s1805_s29 = smov [#allocation7]  }
  0x6b   : > { %p1619_p11 = scmp.ne.s32.totalorder %s2077_s0, %s1618_s2  ;;  %s1623_s5 = sshll.u32 %s1805_s29, 4  ;;  %s1624_s5 = int_to_ptr.vmem [resolvable:$false] %s1623_s5 }
  0x6c   : > { %s1625_s7 = scalar_lea.vmem %s1624_s5, 4096  ;;  %p1626_p9 = scmp.lt.s32.totalorder %s2077_s0, %s1624_s5 }
  0x6d   : > { %p1621_p3 = pnand %p1619_p11, %p1605_p13  ;;  %p1627_p4 = scmp.lt.s32.totalorder %s1625_s7, %s1618_s2 }
  0x6f   : > { %p1622_p1 = pneg %p1621_p3  ;;  %p1628_p8 = por %p1627_p4, %p1626_p9 }
  0x71   : > { %p1629_p6 = pnand %p1628_p8, %p1622_p1 }
  0x73   : > { %1632 = shalt.err (!%p1629_p6)
}
  0x74   : > { %s2491_s11 = smov 8   ;;  %s2492_s21 = smov 128  }
  0x75   : > { %s2493_s24 = smov 512   ;;  %243 = sbr.rel (%p2005_p7) target bundleno = 773 (0x305), region = 32 }
  0x76   : > { %1430 = dma.hbm_to_vmem [thread:$0]  (!%p2081_p0), %s2075_s18, 2048, %s2077_s0, %s2085_s13, %s2493_s24, %s2492_s21, %s2491_s11  }
  0x77   : > { %s245_s29 = sand.u32 (!%p2005_p7), 1, %s1767_s22   ;;  %p2494_p9 = scmp.ne.s32.totalorder (!%p2005_p7), %s2472_s12, 0 }
  0x78   : > { %s1127_s5 = sshll.u32 (!%p2005_p7), %s245_s29, 7  ;;  %s246_s2 = scalar_lea.sflag (!%p2005_p7), [#allocation5], %s245_s29 }
  0x79   : > { %s2119_s7 = scalar_lea.vmem (!%p2005_p7), [#allocation4], %s1127_s5 }
  0x7c   : > { %1726 = dma.done.wait (%p2494_p9), %s246_s2, 2048  }
  0x7d   : > { %1728 = vsyncadd (%p2494_p9), %s246_s2, 4294965248  ;;  %s254_s8 = sand.u32 1, %s1755_s19   ;;  %p2495_p7 = scmp.ne.s32.totalorder %s2479_s6, 0 }
  0x7e   : > { %s1128_s1 = sshll.u32 %s254_s8, 7  ;;  %s255_s0 = scalar_lea.sflag [#allocation8], %s254_s8 }
  0x7f   : > { %s2126_s18 = scalar_lea.vmem [#allocation7], %s1128_s1 }
  0x80   : > { %1730 = dma.done.wait (%p2495_p7), %s255_s0, 2048  }
  0x81   : > { %1732 = vsyncadd (%p2495_p7), %s255_s0, 4294965248  ;;  %s283_s12 = sand.u32 1, %s1743_s16   ;;  %s1130_s1 = sshll.u32 %s1783_s26, 4  ;;  %v2142_v0 = vld [vmem:[%s2119_s7] sm:$0xff]  ;;  %v2145_v1 = vld [vmem:[%s2119_s7 + $0x8] sm:$0xff] }
  0x82   : > { %s1129_s3 = sshll.u32 %s283_s12, 7  ;;  %p297_p1 = scmp.lt.s32.totalorder %s1130_s1, 63  ;;  %v2148_v2 = vld [vmem:[%s2119_s7 + $0x10] sm:$0xff]  ;;  %v2151_v3 = vld [vmem:[%s2119_s7 + $0x18] sm:$0xff]  ;;  %v2154_v4 = vld [vmem:[%s2119_s7 + $0x20] sm:$0xff] }
  0x83   : > { %v2157_v5 = vld [vmem:[%s2119_s7 + $0x28] sm:$0xff]  ;;  %v2160_v6 = vld [vmem:[%s2119_s7 + $0x30] sm:$0xff]  ;;  %v2163_v7 = vld [vmem:[%s2119_s7 + $0x38] sm:$0xff]  ;;  %s2189_s24 = scalar_lea.vmem [#allocation9], %s1129_s3  ;;  %s2496_s29 = sld [smem:[#allocation13_spill]] }
  0x84   : > { %s2539_s1 = smov (!%p297_p1, %s1130_s1), 63  ;;  %v2166_v8 = vld [vmem:[%s2119_s7 + $0x40] sm:$0xff]  ;;  %v2169_v9 = vld [vmem:[%s2119_s7 + $0x48] sm:$0xff]  ;;  %v2172_v10 = vld [vmem:[%s2119_s7 + $0x50] sm:$0xff] }
  0x85   : > { %s1131_s6 = sshll.u32 %s2539_s1, 3  ;;  %v2175_v11 = vld [vmem:[%s2119_s7 + $0x58] sm:$0xff]  ;;  %v2178_v12 = vld [vmem:[%s2119_s7 + $0x60] sm:$0xff]  ;;  %v2181_v13 = vld [vmem:[%s2119_s7 + $0x68] sm:$0xff] }
  0x86   : > { %s2139_s21 = scalar_lea.vmem %s2441_s4, %s1131_s6  ;;  %v2184_v14 = vld [vmem:[%s2119_s7 + $0x70] sm:$0xff]  ;;  %v2187_v15 = vld [vmem:[%s2119_s7 + $0x78] sm:$0xff] }
  0x89   : > { %p1132_p5 = scmp.ne.s32.totalorder %s2496_s29, 0 }
  0x8a   : > { %v1806_v16 = vmov (!%p1132_p5), 0.0  }
  0x8b   : > { %321 = sbr.rel (%p1132_p5) target bundleno = 147 (0x93), region = 44  ;;  %322 = vst [vmem:[#allocation2] sm:$0xff] (!%p1132_p5), %v1806_v16  ;;  %323 = vst [vmem:[#allocation2 + $0x8] sm:$0xff] (!%p1132_p5), %v1806_v16 }
  0x8c   : > { %324 = vst [vmem:[#allocation2 + $0x10] sm:$0xff] (!%p1132_p5), %v1806_v16  ;;  %325 = vst [vmem:[#allocation2 + $0x18] sm:$0xff] (!%p1132_p5), %v1806_v16 }
  0x8d   : > { %326 = vst [vmem:[#allocation2 + $0x20] sm:$0xff] (!%p1132_p5), %v1806_v16  ;;  %327 = vst [vmem:[#allocation2 + $0x28] sm:$0xff] (!%p1132_p5), %v1806_v16 }
  0x8e   : > { %328 = vst [vmem:[#allocation2 + $0x30] sm:$0xff] (!%p1132_p5), %v1806_v16  ;;  %329 = vst [vmem:[#allocation2 + $0x38] sm:$0xff] (!%p1132_p5), %v1806_v16 }
  0x8f   : > { %330 = vst [vmem:[#allocation2 + $0x40] sm:$0xff] (!%p1132_p5), %v1806_v16  ;;  %331 = vst [vmem:[#allocation2 + $0x48] sm:$0xff] (!%p1132_p5), %v1806_v16 }
  0x90   : > { %332 = vst [vmem:[#allocation2 + $0x50] sm:$0xff] (!%p1132_p5), %v1806_v16  ;;  %333 = vst [vmem:[#allocation2 + $0x58] sm:$0xff] (!%p1132_p5), %v1806_v16 }
  0x91   : > { %334 = vst [vmem:[#allocation2 + $0x60] sm:$0xff] (!%p1132_p5), %v1806_v16  ;;  %335 = vst [vmem:[#allocation2 + $0x68] sm:$0xff] (!%p1132_p5), %v1806_v16 }
  0x92   : > { %336 = vst [vmem:[#allocation2 + $0x70] sm:$0xff] %v1806_v16  ;;  %337 = vst [vmem:[#allocation2 + $0x78] sm:$0xff] %v1806_v16 }
  0x93 PF: > { %v354_v17 = vld [vmem:[%s2126_s18] sm:$0xff]  ;;  %v355_v18 = vld [vmem:[%s2126_s18 + $0x8] sm:$0xff]  ;;  %v356_v19 = vld [vmem:[%s2126_s18 + $0x10] sm:$0xff]  ;;  %1242 = vmatprep.mubr.f32.mxu0 %v2142_v0  ;;  %1254 = vmatprep.mubr.f32.mxu1 %v2166_v8  ;;  %s2497_s5 = sld [smem:[#allocation14_spill]] }
  0x94   : > { %v1322_v20 = vpack.c.bf16 %v355_v18, %v354_v17  ;;  %v357_v21 = vld [vmem:[%s2126_s18 + $0x18] sm:$0xff]  ;;  %v358_v23 = vld [vmem:[%s2126_s18 + $0x20] sm:$0xff]  ;;  %v359_v24 = vld [vmem:[%s2126_s18 + $0x28] sm:$0xff] }
  0x95   : > { %v1326_v22 = vpack.c.bf16 %v357_v21, %v356_v19  ;;  %v1330_v25 = vpack.c.bf16 %v359_v24, %v358_v23  ;;  %v360_v26 = vld [vmem:[%s2126_s18 + $0x30] sm:$0xff]  ;;  %v361_v27 = vld [vmem:[%s2126_s18 + $0x38] sm:$0xff]  ;;  %v362_v29 = vld [vmem:[%s2126_s18 + $0x40] sm:$0xff] }
  0x96   : > { %1323 = vmatprep.subr.bf16.mxu0 %v1322_v20  ;;  %1386 = vmatprep.subr.bf16.mxu1 %v1322_v20  ;;  %v1334_v28 = vpack.c.bf16 %v361_v27, %v360_v26  ;;  %v363_v30 = vld [vmem:[%s2126_s18 + $0x48] sm:$0xff]  ;;  %v364_v32 = vld [vmem:[%s2126_s18 + $0x50] sm:$0xff]  ;;  %v365_v33 = vld [vmem:[%s2126_s18 + $0x58] sm:$0xff] }
  0x97   : > { %1325 = vmatpush3.bf16.msra.mxu0 %v1322_v20  ;;  %1394 = vmatpush3.bf16.msra.mxu1 %v1322_v20  ;;  %v1338_v31 = vpack.c.bf16 %v363_v30, %v362_v29  ;;  %v1342_v34 = vpack.c.bf16 %v365_v33, %v364_v32  ;;  %v366_v35 = vld [vmem:[%s2126_s18 + $0x60] sm:$0xff]  ;;  %v367_v36 = vld [vmem:[%s2126_s18 + $0x68] sm:$0xff]  ;;  %v368_v38 = vld [vmem:[%s2126_s18 + $0x70] sm:$0xff] }
  0x98   : > { %1327 = vmatprep.subr.bf16.mxu0 %v1326_v22  ;;  %1387 = vmatprep.subr.bf16.mxu1 %v1326_v22  ;;  %v1346_v37 = vpack.c.bf16 %v367_v36, %v366_v35  ;;  %v369_v39 = vld [vmem:[%s2126_s18 + $0x78] sm:$0xff]  ;;  %v339_v41 = vld [vmem:[#allocation2 + $0x8] sm:$0xff]  ;;  %v338_v43 = vld [vmem:[#allocation2] sm:$0xff] }
  0x99   : > { %v1350_v40 = vpack.c.bf16 %v369_v39, %v368_v38  ;;  %v347_v42 = vld [vmem:[#allocation2 + $0x48] sm:$0xff]  ;;  %v346_v44 = vld [vmem:[#allocation2 + $0x40] sm:$0xff]  ;;  %v341_v53 = vld [vmem:[#allocation2 + $0x18] sm:$0xff]  ;;  %p1133_p0 = scmp.ne.s32.totalorder %s2497_s5, 0 }
  0x9a   : > { %v349_v54 = vld [vmem:[#allocation2 + $0x58] sm:$0xff]  ;;  %v340_v55 = vld [vmem:[#allocation2 + $0x10] sm:$0xff]  ;;  %v343_v17 = vld [vmem:[#allocation2 + $0x28] sm:$0xff] }
  0x9b   : > { %1329 = vmatpush3.bf16.msra.mxu0 %v1326_v22  ;;  %1395 = vmatpush3.bf16.msra.mxu1 %v1326_v22  ;;  %v348_v56 = vld [vmem:[#allocation2 + $0x50] sm:$0xff]  ;;  %v351_v18 = vld [vmem:[#allocation2 + $0x68] sm:$0xff]  ;;  %v342_v19 = vld [vmem:[#allocation2 + $0x20] sm:$0xff] }
  0x9c   : > { %1331 = vmatprep.subr.bf16.mxu0 %v1330_v25  ;;  %1388 = vmatprep.subr.bf16.mxu1 %v1330_v25  ;;  %v350_v20 = vld [vmem:[#allocation2 + $0x60] sm:$0xff]  ;;  %v345_v29 = vld [vmem:[#allocation2 + $0x38] sm:$0xff]  ;;  %v352_v32 = vld [vmem:[#allocation2 + $0x70] sm:$0xff] }
  0x9d   : > { %v353_v30 = vld [vmem:[#allocation2 + $0x78] sm:$0xff] }
  0x9f   : > { %1333 = vmatpush3.bf16.msra.mxu0 %v1330_v25  ;;  %1396 = vmatpush3.bf16.msra.mxu1 %v1330_v25 }
  0xa0   : > { %1335 = vmatprep.subr.bf16.mxu0 %v1334_v28  ;;  %1389 = vmatprep.subr.bf16.mxu1 %v1334_v28 }
  0xa3   : > { %1337 = vmatpush3.bf16.msra.mxu0 %v1334_v28  ;;  %1397 = vmatpush3.bf16.msra.mxu1 %v1334_v28 }
  0xa4   : > { %1339 = vmatprep.subr.bf16.mxu0 %v1338_v31  ;;  %1390 = vmatprep.subr.bf16.mxu1 %v1338_v31 }
  0xa7   : > { %1341 = vmatpush3.bf16.msra.mxu0 %v1338_v31  ;;  %1398 = vmatpush3.bf16.msra.mxu1 %v1338_v31  ;;  %v344_v31 = vld [vmem:[#allocation2 + $0x30] sm:$0xff] }
  0xa8   : > { %1343 = vmatprep.subr.bf16.mxu0 %v1342_v34  ;;  %1391 = vmatprep.subr.bf16.mxu1 %v1342_v34 }
  0xab   : > { %1345 = vmatpush3.bf16.msra.mxu0 %v1342_v34  ;;  %1399 = vmatpush3.bf16.msra.mxu1 %v1342_v34 }
  0xac   : > { %1347 = vmatprep.subr.bf16.mxu0 %v1346_v37  ;;  %1392 = vmatprep.subr.bf16.mxu1 %v1346_v37 }
  0xaf   : > { %1349 = vmatpush3.bf16.msra.mxu0 %v1346_v37  ;;  %1400 = vmatpush3.bf16.msra.mxu1 %v1346_v37 }
  0xb0   : > { %1351 = vmatprep.subr.bf16.mxu0 %v1350_v40  ;;  %1393 = vmatprep.subr.bf16.mxu1 %v1350_v40 }
  0xb3   : > { %1353 = vmatpush3.bf16.msra.mxu0 %v1350_v40  ;;  %1401 = vmatpush3.bf16.msra.mxu1 %v1350_v40 }
  0xb6   : > { %1243 = vmatmul.mubr.f32.vlgmr.msra.gmra.mrb[0].mxu0 %v2145_v1  ;;  %1255 = vmatmul.mubr.f32.vlgmr.msra.gmra.mrb[0].mxu1 %v2169_v9 }
  0xb7   : > { %1245 = vmatprep.mubr.f32.mxu0 %v2148_v2  ;;  %1257 = vmatprep.mubr.f32.mxu1 %v2172_v10 }
  0xba   : > { %1246 = vmatmul.mubr.f32.gmra.mrb[2].mxu0 %v2151_v3  ;;  %1258 = vmatmul.mubr.f32.gmra.mrb[2].mxu1 %v2175_v11 }
  0xbb   : > { %1248 = vmatprep.mubr.f32.mxu0 %v2154_v4  ;;  %1260 = vmatprep.mubr.f32.mxu1 %v2178_v12 }
  0xbe   : > { %1249 = vmatmul.mubr.f32.gmra.mrb[4].mxu0 %v2157_v5  ;;  %1261 = vmatmul.mubr.f32.gmra.mrb[4].mxu1 %v2181_v13 }
  0xbf   : > { %1251 = vmatprep.mubr.f32.mxu0 %v2160_v6  ;;  %1263 = vmatprep.mubr.f32.mxu1 %v2184_v14 }
  0xc2   : > { %1252 = vmatmul.mubr.f32.gmra.mrb[6].mxu0 %v2163_v7  ;;  %1264 = vmatmul.mubr.f32.gmra.mrb[6].mxu1 %v2187_v15 }
 0x189   : > { %v1244_v45 = vpop.f32.mrb[0].mxu0  ;;  %v1256_v46 = vpop.f32.mrb[0].mxu1 }
 0x18a   : > { %v516_v47 = vadd.f32 %v1244_v45, %v339_v41  ;;  %v524_v48 = vadd.f32 %v1256_v46, %v347_v42  ;;  %v436_v49 = vpop.f32.mrb[1].mxu0  ;;  %v476_v50 = vpop.f32.mrb[1].mxu1 }
 0x18b   : > { %v515_v51 = vadd.f32 %v436_v49, %v338_v43  ;;  %v523_v52 = vadd.f32 %v476_v50, %v346_v44 }
 0x18c   : > { %532 = vst [vmem:[#allocation2 + $0x8] sm:$0xff] %v516_v47  ;;  %540 = vst [vmem:[#allocation2 + $0x48] sm:$0xff] %v524_v48 }
 0x18d   : > { %531 = vst [vmem:[#allocation2] sm:$0xff] %v515_v51  ;;  %539 = vst [vmem:[#allocation2 + $0x40] sm:$0xff] %v523_v52  ;;  %v1247_v57 = vpop.f32.mrb[2].mxu0  ;;  %v1259_v58 = vpop.f32.mrb[2].mxu1 }
 0x18e   : > { %v518_v59 = vadd.f32 %v1247_v57, %v341_v53  ;;  %v526_v60 = vadd.f32 %v1259_v58, %v349_v54  ;;  %v446_v61 = vpop.f32.mrb[3].mxu0  ;;  %v486_v62 = vpop.f32.mrb[3].mxu1 }
 0x18f   : > { %v517_v63 = vadd.f32 %v446_v61, %v340_v55  ;;  %v525_v16 = vadd.f32 %v486_v62, %v348_v56 }
 0x190   : > { %534 = vst [vmem:[#allocation2 + $0x18] sm:$0xff] %v518_v59  ;;  %542 = vst [vmem:[#allocation2 + $0x58] sm:$0xff] %v526_v60 }
 0x191   : > { %533 = vst [vmem:[#allocation2 + $0x10] sm:$0xff] %v517_v63  ;;  %541 = vst [vmem:[#allocation2 + $0x50] sm:$0xff] %v525_v16  ;;  %v1250_v21 = vpop.f32.mrb[4].mxu0  ;;  %v1262_v22 = vpop.f32.mrb[4].mxu1 }
 0x192   : > { %v520_v23 = vadd.f32 %v1250_v21, %v343_v17  ;;  %v528_v24 = vadd.f32 %v1262_v22, %v351_v18  ;;  %v456_v25 = vpop.f32.mrb[5].mxu0  ;;  %v496_v26 = vpop.f32.mrb[5].mxu1 }
 0x193   : > { %v519_v27 = vadd.f32 %v456_v25, %v342_v19  ;;  %v527_v28 = vadd.f32 %v496_v26, %v350_v20  ;;  %550 = sbr.rel (%p1133_p0) target bundleno = 699 (0x2bb), region = 48 }
 0x194   : > { %536 = vst [vmem:[#allocation2 + $0x28] sm:$0xff] %v520_v23  ;;  %544 = vst [vmem:[#allocation2 + $0x68] sm:$0xff] %v528_v24 }
 0x195   : > { %535 = vst [vmem:[#allocation2 + $0x20] sm:$0xff] %v519_v27  ;;  %543 = vst [vmem:[#allocation2 + $0x60] sm:$0xff] %v527_v28  ;;  %v1253_v33 = vpop.f32.mrb[6].mxu0  ;;  %v1265_v34 = vpop.f32.mrb[6].mxu1 }
 0x196   : > { %v522_v35 = vadd.f32 %v1253_v33, %v345_v29  ;;  %v530_v36 = vadd.f32 %v1265_v34, %v353_v30  ;;  %v466_v37 = vpop.f32.mrb[7].mxu0  ;;  %v506_v38 = vpop.f32.mrb[7].mxu1 }
 0x197   : > { %v521_v39 = vadd.f32 %v466_v37, %v344_v31  ;;  %v529_v40 = vadd.f32 %v506_v38, %v352_v32 }
 0x198   : > { %538 = vst [vmem:[#allocation2 + $0x38] sm:$0xff] %v522_v35  ;;  %546 = vst [vmem:[#allocation2 + $0x78] sm:$0xff] %v530_v36 }
 0x199   : > { %537 = vst [vmem:[#allocation2 + $0x30] sm:$0xff] %v521_v39  ;;  %545 = vst [vmem:[#allocation2 + $0x70] sm:$0xff] %v529_v40 }
 0x19a   : > { %553 = sbr.rel (%p1132_p5) target bundleno = 419 (0x1a3), region = 52  ;;  %v1807_v41 = vmov (!%p1132_p5), 0.0  }
 0x19b   : > { %554 = vst [vmem:[#allocation3] sm:$0xff] (!%p1132_p5), %v1807_v41  ;;  %555 = vst [vmem:[#allocation3 + $0x8] sm:$0xff] (!%p1132_p5), %v1807_v41 }
 0x19c   : > { %556 = vst [vmem:[#allocation3 + $0x10] sm:$0xff] (!%p1132_p5), %v1807_v41  ;;  %557 = vst [vmem:[#allocation3 + $0x18] sm:$0xff] (!%p1132_p5), %v1807_v41 }
 0x19d   : > { %558 = vst [vmem:[#allocation3 + $0x20] sm:$0xff] (!%p1132_p5), %v1807_v41  ;;  %559 = vst [vmem:[#allocation3 + $0x28] sm:$0xff] (!%p1132_p5), %v1807_v41 }
 0x19e   : > { %560 = vst [vmem:[#allocation3 + $0x30] sm:$0xff] (!%p1132_p5), %v1807_v41  ;;  %561 = vst [vmem:[#allocation3 + $0x38] sm:$0xff] (!%p1132_p5), %v1807_v41 }
 0x19f   : > { %562 = vst [vmem:[#allocation3 + $0x40] sm:$0xff] (!%p1132_p5), %v1807_v41  ;;  %563 = vst [vmem:[#allocation3 + $0x48] sm:$0xff] (!%p1132_p5), %v1807_v41 }
 0x1a0   : > { %564 = vst [vmem:[#allocation3 + $0x50] sm:$0xff] (!%p1132_p5), %v1807_v41  ;;  %565 = vst [vmem:[#allocation3 + $0x58] sm:$0xff] (!%p1132_p5), %v1807_v41 }
 0x1a1   : > { %566 = vst [vmem:[#allocation3 + $0x60] sm:$0xff] %v1807_v41  ;;  %567 = vst [vmem:[#allocation3 + $0x68] sm:$0xff] %v1807_v41 }
 0x1a2   : > { %568 = vst [vmem:[#allocation3 + $0x70] sm:$0xff] %v1807_v41  ;;  %569 = vst [vmem:[#allocation3 + $0x78] sm:$0xff] %v1807_v41 }
 0x1a3 PF: > { %s2499_s7 = sld [smem:[#allocation13_spill]]  ;;  %1298 = vmatprep.mubr.f32.mxu0 %v2142_v0  ;;  %1310 = vmatprep.mubr.f32.mxu1 %v2166_v8  ;;  %s2500_s1 = sld [smem:[#allocation22_spill]] }
 0x1a5   : > { %v591_v18 = vld [vmem:[#allocation3 + $0x18] sm:$0xff] }
 0x1a6   : > { %v593_v26 = vld [vmem:[#allocation3 + $0x28] sm:$0xff]  ;;  %v592_v28 = vld [vmem:[#allocation3 + $0x20] sm:$0xff] }
 0x1a7   : > { %v595_v38 = vld [vmem:[#allocation3 + $0x38] sm:$0xff]  ;;  %v594_v40 = vld [vmem:[#allocation3 + $0x30] sm:$0xff] }
 0x1a9   : > { %s1135_s8 = sshll.u32 %s2499_s7, 7  ;;  %v603_v39 = vld [vmem:[#allocation3 + $0x78] sm:$0xff]  ;;  %v602_v41 = vld [vmem:[#allocation3 + $0x70] sm:$0xff]  ;;  %p1136_p13 = scmp.ne.s32.totalorder %s2499_s7, 3 }
 0x1aa   : > { %s2235_s3 = scalar_lea.vmem %s2500_s1, %s1135_s8  ;;  %v601_v27 = vld [vmem:[#allocation3 + $0x68] sm:$0xff]  ;;  %v600_v29 = vld [vmem:[#allocation3 + $0x60] sm:$0xff] }
 0x1ab   : > { %v572_v42 = vld [vmem:[%s2235_s3] sm:$0xff]  ;;  %v573_v43 = vld [vmem:[%s2235_s3 + $0x8] sm:$0xff]  ;;  %v574_v44 = vld [vmem:[%s2235_s3 + $0x10] sm:$0xff] }
 0x1ac   : > { %v1354_v45 = vpack.c.bf16 %v573_v43, %v572_v42  ;;  %v575_v0 = vld [vmem:[%s2235_s3 + $0x18] sm:$0xff]  ;;  %v576_v8 = vld [vmem:[%s2235_s3 + $0x20] sm:$0xff]  ;;  %v577_v47 = vld [vmem:[%s2235_s3 + $0x28] sm:$0xff] }
 0x1ad   : > { %v1358_v46 = vpack.c.bf16 %v575_v0, %v574_v44  ;;  %v1362_v48 = vpack.c.bf16 %v577_v47, %v576_v8  ;;  %v578_v49 = vld [vmem:[%s2235_s3 + $0x30] sm:$0xff]  ;;  %v579_v50 = vld [vmem:[%s2235_s3 + $0x38] sm:$0xff]  ;;  %v580_v52 = vld [vmem:[%s2235_s3 + $0x40] sm:$0xff] }
 0x1ae   : > { %1355 = vmatprep.subr.bf16.mxu0 %v1354_v45  ;;  %1402 = vmatprep.subr.bf16.mxu1 %v1354_v45  ;;  %v1366_v51 = vpack.c.bf16 %v579_v50, %v578_v49  ;;  %v581_v53 = vld [vmem:[%s2235_s3 + $0x48] sm:$0xff]  ;;  %v582_v55 = vld [vmem:[%s2235_s3 + $0x50] sm:$0xff]  ;;  %v583_v56 = vld [vmem:[%s2235_s3 + $0x58] sm:$0xff] }
 0x1af   : > { %1357 = vmatpush3.bf16.msra.mxu0 %v1354_v45  ;;  %1410 = vmatpush3.bf16.msra.mxu1 %v1354_v45  ;;  %v1370_v54 = vpack.c.bf16 %v581_v53, %v580_v52  ;;  %v1374_v57 = vpack.c.bf16 %v583_v56, %v582_v55  ;;  %v584_v58 = vld [vmem:[%s2235_s3 + $0x60] sm:$0xff]  ;;  %v585_v59 = vld [vmem:[%s2235_s3 + $0x68] sm:$0xff]  ;;  %v586_v61 = vld [vmem:[%s2235_s3 + $0x70] sm:$0xff] }
 0x1b0   : > { %1359 = vmatprep.subr.bf16.mxu0 %v1358_v46  ;;  %1403 = vmatprep.subr.bf16.mxu1 %v1358_v46  ;;  %v1378_v60 = vpack.c.bf16 %v585_v59, %v584_v58  ;;  %v587_v62 = vld [vmem:[%s2235_s3 + $0x78] sm:$0xff] }
 0x1b1   : > { %v1382_v63 = vpack.c.bf16 %v587_v62, %v586_v61 }
 0x1b3   : > { %1361 = vmatpush3.bf16.msra.mxu0 %v1358_v46  ;;  %1411 = vmatpush3.bf16.msra.mxu1 %v1358_v46 }
 0x1b4   : > { %1363 = vmatprep.subr.bf16.mxu0 %v1362_v48  ;;  %1404 = vmatprep.subr.bf16.mxu1 %v1362_v48 }
 0x1b7   : > { %1365 = vmatpush3.bf16.msra.mxu0 %v1362_v48  ;;  %1412 = vmatpush3.bf16.msra.mxu1 %v1362_v48 }
 0x1b8   : > { %1367 = vmatprep.subr.bf16.mxu0 %v1366_v51  ;;  %1405 = vmatprep.subr.bf16.mxu1 %v1366_v51 }
 0x1bb   : > { %1369 = vmatpush3.bf16.msra.mxu0 %v1366_v51  ;;  %1413 = vmatpush3.bf16.msra.mxu1 %v1366_v51 }
 0x1bc   : > { %1371 = vmatprep.subr.bf16.mxu0 %v1370_v54  ;;  %1406 = vmatprep.subr.bf16.mxu1 %v1370_v54 }
 0x1bf   : > { %1373 = vmatpush3.bf16.msra.mxu0 %v1370_v54  ;;  %1414 = vmatpush3.bf16.msra.mxu1 %v1370_v54 }
 0x1c0   : > { %1375 = vmatprep.subr.bf16.mxu0 %v1374_v57  ;;  %1407 = vmatprep.subr.bf16.mxu1 %v1374_v57 }
 0x1c3   : > { %1377 = vmatpush3.bf16.msra.mxu0 %v1374_v57  ;;  %1415 = vmatpush3.bf16.msra.mxu1 %v1374_v57 }
 0x1c4   : > { %1379 = vmatprep.subr.bf16.mxu0 %v1378_v60  ;;  %1408 = vmatprep.subr.bf16.mxu1 %v1378_v60 }
 0x1c7   : > { %1381 = vmatpush3.bf16.msra.mxu0 %v1378_v60  ;;  %1416 = vmatpush3.bf16.msra.mxu1 %v1378_v60 }
 0x1c8   : > { %1383 = vmatprep.subr.bf16.mxu0 %v1382_v63  ;;  %1409 = vmatprep.subr.bf16.mxu1 %v1382_v63 }
 0x1cb   : > { %1385 = vmatpush3.bf16.msra.mxu0 %v1382_v63  ;;  %1417 = vmatpush3.bf16.msra.mxu1 %v1382_v63 }
 0x1ce   : > { %1299 = vmatmul.mubr.f32.vlgmr.msra.gmra.mrb[0].mxu0 %v2145_v1  ;;  %1311 = vmatmul.mubr.f32.vlgmr.msra.gmra.mrb[0].mxu1 %v2169_v9  ;;  %v589_v1 = vld [vmem:[#allocation3 + $0x8] sm:$0xff]  ;;  %v596_v9 = vld [vmem:[#allocation3 + $0x40] sm:$0xff] }
 0x1cf   : > { %1301 = vmatprep.mubr.f32.mxu0 %v2148_v2  ;;  %1313 = vmatprep.mubr.f32.mxu1 %v2172_v10  ;;  %v597_v2 = vld [vmem:[#allocation3 + $0x48] sm:$0xff] }
 0x1d2   : > { %1302 = vmatmul.mubr.f32.gmra.mrb[2].mxu0 %v2151_v3  ;;  %1314 = vmatmul.mubr.f32.gmra.mrb[2].mxu1 %v2175_v11  ;;  %v588_v3 = vld [vmem:[#allocation3] sm:$0xff] }
 0x1d3   : > { %1304 = vmatprep.mubr.f32.mxu0 %v2154_v4  ;;  %1316 = vmatprep.mubr.f32.mxu1 %v2178_v12 }
 0x1d6   : > { %1305 = vmatmul.mubr.f32.gmra.mrb[4].mxu0 %v2157_v5  ;;  %1317 = vmatmul.mubr.f32.gmra.mrb[4].mxu1 %v2181_v13 }
 0x1d7   : > { %1307 = vmatprep.mubr.f32.mxu0 %v2160_v6  ;;  %1319 = vmatprep.mubr.f32.mxu1 %v2184_v14  ;;  %v599_v6 = vld [vmem:[#allocation3 + $0x58] sm:$0xff]  ;;  %v590_v14 = vld [vmem:[#allocation3 + $0x10] sm:$0xff] }
 0x1da   : > { %1308 = vmatmul.mubr.f32.gmra.mrb[6].mxu0 %v2163_v7  ;;  %1320 = vmatmul.mubr.f32.gmra.mrb[6].mxu1 %v2187_v15  ;;  %v598_v7 = vld [vmem:[#allocation3 + $0x50] sm:$0xff] }
 0x2a1   : > { %v1300_v10 = vpop.f32.mrb[0].mxu0  ;;  %v1312_v4 = vpop.f32.mrb[0].mxu1 }
 0x2a2   : > { %v750_v11 = vadd.f32 %v1300_v10, %v589_v1  ;;  %v758_v12 = vadd.f32 %v1312_v4, %v597_v2  ;;  %v670_v16 = vpop.f32.mrb[1].mxu0  ;;  %v710_v5 = vpop.f32.mrb[1].mxu1 }
 0x2a3   : > { %v749_v17 = vadd.f32 %v670_v16, %v588_v3  ;;  %v757_v13 = vadd.f32 %v710_v5, %v596_v9 }
 0x2a4   : > { %766 = vst [vmem:[#allocation3 + $0x8] sm:$0xff] %v750_v11  ;;  %774 = vst [vmem:[#allocation3 + $0x48] sm:$0xff] %v758_v12 }
 0x2a5   : > { %765 = vst [vmem:[#allocation3] sm:$0xff] %v749_v17  ;;  %773 = vst [vmem:[#allocation3 + $0x40] sm:$0xff] %v757_v13  ;;  %v1303_v15 = vpop.f32.mrb[2].mxu0  ;;  %v1315_v19 = vpop.f32.mrb[2].mxu1 }
 0x2a6   : > { %v752_v20 = vadd.f32 %v1303_v15, %v591_v18  ;;  %v760_v21 = vadd.f32 %v1315_v19, %v599_v6  ;;  %v680_v22 = vpop.f32.mrb[3].mxu0  ;;  %v720_v23 = vpop.f32.mrb[3].mxu1 }
 0x2a7   : > { %v751_v24 = vadd.f32 %v680_v22, %v590_v14  ;;  %v759_v25 = vadd.f32 %v720_v23, %v598_v7 }
 0x2a8   : > { %768 = vst [vmem:[#allocation3 + $0x18] sm:$0xff] %v752_v20  ;;  %776 = vst [vmem:[#allocation3 + $0x58] sm:$0xff] %v760_v21 }
 0x2a9   : > { %767 = vst [vmem:[#allocation3 + $0x10] sm:$0xff] %v751_v24  ;;  %775 = vst [vmem:[#allocation3 + $0x50] sm:$0xff] %v759_v25  ;;  %v1306_v30 = vpop.f32.mrb[4].mxu0  ;;  %v1318_v31 = vpop.f32.mrb[4].mxu1 }
 0x2aa   : > { %v754_v32 = vadd.f32 %v1306_v30, %v593_v26  ;;  %v762_v33 = vadd.f32 %v1318_v31, %v601_v27  ;;  %v690_v34 = vpop.f32.mrb[5].mxu0  ;;  %v730_v35 = vpop.f32.mrb[5].mxu1 }
 0x2ab   : > { %v753_v36 = vadd.f32 %v690_v34, %v592_v28  ;;  %v761_v37 = vadd.f32 %v730_v35, %v600_v29  ;;  %784 = sbr.rel (%p1136_p13) target bundleno = 699 (0x2bb), region = 56  ;;  %v786_v49 = vld [vmem:[#allocation3 + $0x8] sm:$0xff] (!%p1136_p13) }
 0x2ac   : > { %770 = vst [vmem:[#allocation3 + $0x28] sm:$0xff] %v754_v32  ;;  %778 = vst [vmem:[#allocation3 + $0x68] sm:$0xff] %v762_v33  ;;  %v785_v48 = vld [vmem:[#allocation3] sm:$0xff] (!%p1136_p13)  ;;  %v794_v57 = vld [vmem:[#allocation3 + $0x48] sm:$0xff] (!%p1136_p13) }
 0x2ad   : > { %769 = vst [vmem:[#allocation3 + $0x20] sm:$0xff] %v753_v36  ;;  %777 = vst [vmem:[#allocation3 + $0x60] sm:$0xff] %v761_v37  ;;  %v1309_v42 = vpop.f32.mrb[6].mxu0  ;;  %v1321_v43 = vpop.f32.mrb[6].mxu1  ;;  %v793_v56 = vld [vmem:[#allocation3 + $0x40] sm:$0xff] (!%p1136_p13) }
 0x2ae   : > { %v756_v44 = vadd.f32 %v1309_v42, %v595_v38  ;;  %v764_v45 = vadd.f32 %v1321_v43, %v603_v39  ;;  %v700_v0 = vpop.f32.mrb[7].mxu0  ;;  %v740_v46 = vpop.f32.mrb[7].mxu1  ;;  %801 = vst [vmem:[%s2139_s21] sm:$0xff] (!%p1136_p13), %v785_v48  ;;  %802 = vst [vmem:[%s2139_s21 + $0x8] sm:$0xff] (!%p1136_p13), %v786_v49 }
 0x2af   : > { %v755_v8 = vadd.f32 %v700_v0, %v594_v40  ;;  %v763_v47 = vadd.f32 %v740_v46, %v602_v41  ;;  %v788_v51 = vld [vmem:[#allocation3 + $0x18] sm:$0xff] (!%p1136_p13)  ;;  %809 = vst [vmem:[%s2139_s21 + $0x40] sm:$0xff] (!%p1136_p13), %v793_v56  ;;  %810 = vst [vmem:[%s2139_s21 + $0x48] sm:$0xff] (!%p1136_p13), %v794_v57 }
 0x2b0   : > { %772 = vst [vmem:[#allocation3 + $0x38] sm:$0xff] %v756_v44  ;;  %780 = vst [vmem:[#allocation3 + $0x78] sm:$0xff] %v764_v45  ;;  %v787_v50 = vld [vmem:[#allocation3 + $0x10] sm:$0xff] (!%p1136_p13)  ;;  %v796_v59 = vld [vmem:[#allocation3 + $0x58] sm:$0xff] (!%p1136_p13) }
 0x2b1   : > { %771 = vst [vmem:[#allocation3 + $0x30] sm:$0xff] %v755_v8  ;;  %779 = vst [vmem:[#allocation3 + $0x70] sm:$0xff] %v763_v47  ;;  %v795_v58 = vld [vmem:[#allocation3 + $0x50] sm:$0xff] (!%p1136_p13) }
 0x2b2   : > { %803 = vst [vmem:[%s2139_s21 + $0x10] sm:$0xff] %v787_v50  ;;  %804 = vst [vmem:[%s2139_s21 + $0x18] sm:$0xff] %v788_v51 }
 0x2b3   : > { %v790_v53 = vld [vmem:[#allocation3 + $0x28] sm:$0xff]  ;;  %811 = vst [vmem:[%s2139_s21 + $0x50] sm:$0xff] %v795_v58  ;;  %812 = vst [vmem:[%s2139_s21 + $0x58] sm:$0xff] %v796_v59 }
 0x2b4   : > { %v789_v52 = vld [vmem:[#allocation3 + $0x20] sm:$0xff]  ;;  %806 = vst [vmem:[%s2139_s21 + $0x28] sm:$0xff] %v790_v53  ;;  %v798_v61 = vld [vmem:[#allocation3 + $0x68] sm:$0xff] }
 0x2b5   : > { %805 = vst [vmem:[%s2139_s21 + $0x20] sm:$0xff] %v789_v52  ;;  %v797_v60 = vld [vmem:[#allocation3 + $0x60] sm:$0xff]  ;;  %814 = vst [vmem:[%s2139_s21 + $0x68] sm:$0xff] %v798_v61 }
 0x2b6   : > { %813 = vst [vmem:[%s2139_s21 + $0x60] sm:$0xff] %v797_v60 }
 0x2b7   : > { %v792_v55 = vld [vmem:[#allocation3 + $0x38] sm:$0xff] }
 0x2b8   : > { %v791_v54 = vld [vmem:[#allocation3 + $0x30] sm:$0xff]  ;;  %808 = vst [vmem:[%s2139_s21 + $0x38] sm:$0xff] %v792_v55  ;;  %v800_v63 = vld [vmem:[#allocation3 + $0x78] sm:$0xff] }
 0x2b9   : > { %807 = vst [vmem:[%s2139_s21 + $0x30] sm:$0xff] %v791_v54  ;;  %v799_v62 = vld [vmem:[#allocation3 + $0x70] sm:$0xff]  ;;  %816 = vst [vmem:[%s2139_s21 + $0x78] sm:$0xff] %v800_v63 }
 0x2ba   : > { %815 = vst [vmem:[%s2139_s21 + $0x70] sm:$0xff] %v799_v62 }
 0x2bb PF: > { %s2501_s6 = sld [smem:[#allocation13_spill]]  ;;  %s2502_s13 = sld [smem:[#allocation14_spill]] }
 0x2c1   : > { %p817_p2 = scmp.eq.s32.totalorder %s2501_s6, 3  ;;  %p818_p10 = scmp.ne.s32.totalorder %s1783_s26, %s2502_s13 }
 0x2c3   : > { %p819_p12 = pnand %p818_p10, %p817_p2 }
 0x2c4   : > { %v823_v1 = vld [vmem:[#allocation2] sm:$0xff] (!%p819_p12)  ;;  %v824_v2 = vld [vmem:[#allocation2 + $0x8] sm:$0xff] (!%p819_p12)  ;;  %v825_v3 = vld [vmem:[#allocation2 + $0x10] sm:$0xff] (!%p819_p12) }
 0x2c5   : > { %822 = sbr.rel (%p819_p12) target bundleno = 717 (0x2cd), region = 60  ;;  %839 = vst [vmem:[%s2189_s24] sm:$0xff] (!%p819_p12), %v823_v1  ;;  %840 = vst [vmem:[%s2189_s24 + $0x8] sm:$0xff] (!%p819_p12), %v824_v2  ;;  %v826_v9 = vld [vmem:[#allocation2 + $0x18] sm:$0xff] (!%p819_p12)  ;;  %v827_v10 = vld [vmem:[#allocation2 + $0x20] sm:$0xff] (!%p819_p12) }
 0x2c6   : > { %841 = vst [vmem:[%s2189_s24 + $0x10] sm:$0xff] (!%p819_p12), %v825_v3  ;;  %v828_v4 = vld [vmem:[#allocation2 + $0x28] sm:$0xff] (!%p819_p12)  ;;  %842 = vst [vmem:[%s2189_s24 + $0x18] sm:$0xff] (!%p819_p12), %v826_v9  ;;  %v829_v11 = vld [vmem:[#allocation2 + $0x30] sm:$0xff] (!%p819_p12) }
 0x2c7   : > { %843 = vst [vmem:[%s2189_s24 + $0x20] sm:$0xff] (!%p819_p12), %v827_v10  ;;  %844 = vst [vmem:[%s2189_s24 + $0x28] sm:$0xff] (!%p819_p12), %v828_v4  ;;  %v830_v12 = vld [vmem:[#allocation2 + $0x38] sm:$0xff] (!%p819_p12)  ;;  %v831_v16 = vld [vmem:[#allocation2 + $0x40] sm:$0xff] (!%p819_p12) }
 0x2c8   : > { %845 = vst [vmem:[%s2189_s24 + $0x30] sm:$0xff] (!%p819_p12), %v829_v11  ;;  %846 = vst [vmem:[%s2189_s24 + $0x38] sm:$0xff] (!%p819_p12), %v830_v12  ;;  %v832_v5 = vld [vmem:[#allocation2 + $0x48] sm:$0xff] (!%p819_p12)  ;;  %v833_v17 = vld [vmem:[#allocation2 + $0x50] sm:$0xff] (!%p819_p12) }
 0x2c9   : > { %847 = vst [vmem:[%s2189_s24 + $0x40] sm:$0xff] (!%p819_p12), %v831_v16  ;;  %v834_v13 = vld [vmem:[#allocation2 + $0x58] sm:$0xff] (!%p819_p12)  ;;  %848 = vst [vmem:[%s2189_s24 + $0x48] sm:$0xff] (!%p819_p12), %v832_v5  ;;  %v835_v18 = vld [vmem:[#allocation2 + $0x60] sm:$0xff] (!%p819_p12) }
 0x2ca   : > { %849 = vst [vmem:[%s2189_s24 + $0x50] sm:$0xff] (!%p819_p12), %v833_v17  ;;  %850 = vst [vmem:[%s2189_s24 + $0x58] sm:$0xff] (!%p819_p12), %v834_v13  ;;  %v836_v6 = vld [vmem:[#allocation2 + $0x68] sm:$0xff] (!%p819_p12)  ;;  %v837_v14 = vld [vmem:[#allocation2 + $0x70] sm:$0xff] (!%p819_p12) }
 0x2cb   : > { %851 = vst [vmem:[%s2189_s24 + $0x60] sm:$0xff] (!%p819_p12), %v835_v18  ;;  %852 = vst [vmem:[%s2189_s24 + $0x68] sm:$0xff] (!%p819_p12), %v836_v6  ;;  %v838_v7 = vld [vmem:[#allocation2 + $0x78] sm:$0xff] (!%p819_p12) }
 0x2cc   : > { %853 = vst [vmem:[%s2189_s24 + $0x70] sm:$0xff] %v837_v14  ;;  %854 = vst [vmem:[%s2189_s24 + $0x78] sm:$0xff] %v838_v7 }
 0x2cd PF: > { %s2503_s11 = sld [smem:[#allocation14_spill]] }
 0x2d3   : > { %p855_p11 = scmp.eq.s32.totalorder %s1783_s26, %s2503_s11 }
 0x2d5   : > { %p856_p3 = pnand %p855_p11, %p817_p2 }
 0x2d6   : > { %v860_v15 = vlaneseq (!%p856_p3)  ;;  %v895_v21 = vld [vmem:[#allocation2] sm:$0xff] (!%p856_p3)  ;;  %v896_v23 = vld [vmem:[#allocation2 + $0x8] sm:$0xff] (!%p856_p3)  ;;  %v897_v25 = vld [vmem:[#allocation2 + $0x10] sm:$0xff] (!%p856_p3) }
 0x2d7   : > { %859 = sbr.rel (%p856_p3) target bundleno = 744 (0x2e8), region = 64  ;;  %v898_v27 = vld [vmem:[#allocation2 + $0x18] sm:$0xff] (!%p856_p3)  ;;  %v899_v30 = vld [vmem:[#allocation2 + $0x20] sm:$0xff] (!%p856_p3)  ;;  %v900_v33 = vld [vmem:[#allocation2 + $0x28] sm:$0xff] (!%p856_p3) }
 0x2d8   : > { %v861_v19 = vshrl.u32 (!%p856_p3), %v860_v15, 7  ;;  %v2309_v20 = vand.u32 (!%p856_p3), 127, %v860_v15  ;;  %v901_v34 = vld [vmem:[#allocation2 + $0x30] sm:$0xff] (!%p856_p3)  ;;  %v902_v36 = vld [vmem:[#allocation2 + $0x38] sm:$0xff] (!%p856_p3)  ;;  %v903_v45 = vld [vmem:[#allocation2 + $0x40] sm:$0xff] (!%p856_p3) }
 0x2d9   : > { %v904_v0 = vld [vmem:[#allocation2 + $0x48] sm:$0xff] (!%p856_p3)  ;;  %v905_v47 = vld [vmem:[#allocation2 + $0x50] sm:$0xff] (!%p856_p3)  ;;  %v906_v49 = vld [vmem:[#allocation2 + $0x58] sm:$0xff] (!%p856_p3) }
 0x2da   : > { %vm879_vm0 = vcmp.eq.s32.totalorder (!%p856_p3), %v861_v19, %v2309_v20  ;;  %v862_v22 = vadd.s32 (!%p856_p3), 8, %v861_v19  ;;  %v863_v24 = vadd.s32 (!%p856_p3), 16, %v861_v19  ;;  %v864_v26 = vadd.s32 (!%p856_p3), 24, %v861_v19  ;;  %v907_v51 = vld [vmem:[#allocation2 + $0x60] sm:$0xff] (!%p856_p3)  ;;  %v908_v56 = vld [vmem:[#allocation2 + $0x68] sm:$0xff] (!%p856_p3)  ;;  %v909_v57 = vld [vmem:[#allocation2 + $0x70] sm:$0xff] (!%p856_p3) }
 0x2db   : > { %v911_v28 = vsel (!%p856_p3), %vm879_vm0, 0.0, %v895_v21  ;;  %v865_v29 = vadd.s32 (!%p856_p3), 32, %v861_v19  ;;  %v866_v31 = vadd.s32 (!%p856_p3), 40, %v861_v19  ;;  %v867_v32 = vadd.s32 (!%p856_p3), 48, %v861_v19  ;;  %v910_v58 = vld [vmem:[#allocation2 + $0x78] sm:$0xff] (!%p856_p3) }
 0x2dc   : > { %927 = vst [vmem:[%s2189_s24] sm:$0xff] (!%p856_p3), %v911_v28  ;;  %vm880_vm1 = vcmp.eq.s32.totalorder (!%p856_p3), %v862_v22, %v2309_v20  ;;  %vm881_vm2 = vcmp.eq.s32.totalorder (!%p856_p3), %v863_v24, %v2309_v20  ;;  %vm882_vm3 = vcmp.eq.s32.totalorder (!%p856_p3), %v864_v26, %v2309_v20  ;;  %v868_v35 = vadd.s32 (!%p856_p3), 56, %v861_v19 }
 0x2dd   : > { %v912_v37 = vsel (!%p856_p3), %vm880_vm1, 0.0, %v896_v23  ;;  %v913_v38 = vsel (!%p856_p3), %vm881_vm2, 0.0, %v897_v25  ;;  %v914_v39 = vsel (!%p856_p3), %vm882_vm3, 0.0, %v898_v27  ;;  %vm883_vm4 = vcmp.eq.s32.totalorder (!%p856_p3), %v865_v29, %v2309_v20 }
 0x2de   : > { %928 = vst [vmem:[%s2189_s24 + $0x8] sm:$0xff] %v912_v37  ;;  %929 = vst [vmem:[%s2189_s24 + $0x10] sm:$0xff] %v913_v38  ;;  %v915_v40 = vsel %vm883_vm4, 0.0, %v899_v30  ;;  %vm884_vm5 = vcmp.eq.s32.totalorder %v866_v31, %v2309_v20  ;;  %vm885_vm6 = vcmp.eq.s32.totalorder %v867_v32, %v2309_v20  ;;  %vm886_vm7 = vcmp.eq.s32.totalorder %v868_v35, %v2309_v20 }
 0x2df   : > { %930 = vst [vmem:[%s2189_s24 + $0x18] sm:$0xff] %v914_v39  ;;  %931 = vst [vmem:[%s2189_s24 + $0x20] sm:$0xff] %v915_v40  ;;  %v916_v41 = vsel %vm884_vm5, 0.0, %v900_v33  ;;  %v917_v42 = vsel %vm885_vm6, 0.0, %v901_v34  ;;  %v918_v43 = vsel %vm886_vm7, 0.0, %v902_v36  ;;  %v869_v44 = vadd.s32 64, %v861_v19 }
 0x2e0   : > { %932 = vst [vmem:[%s2189_s24 + $0x28] sm:$0xff] %v916_v41  ;;  %933 = vst [vmem:[%s2189_s24 + $0x30] sm:$0xff] %v917_v42  ;;  %v870_v46 = vadd.s32 72, %v861_v19  ;;  %v871_v8 = vadd.s32 80, %v861_v19  ;;  %v872_v48 = vadd.s32 88, %v861_v19  ;;  %v873_v50 = vadd.s32 96, %v861_v19 }
 0x2e1   : > { %934 = vst [vmem:[%s2189_s24 + $0x38] sm:$0xff] %v918_v43  ;;  %vm887_vm8 = vcmp.eq.s32.totalorder %v869_v44, %v2309_v20  ;;  %v874_v52 = vadd.s32 104, %v861_v19  ;;  %v875_v53 = vadd.s32 112, %v861_v19  ;;  %v876_v54 = vadd.s32 120, %v861_v19 }
 0x2e2   : > { %v919_v55 = vsel %vm887_vm8, 0.0, %v903_v45  ;;  %vm888_vm9 = vcmp.eq.s32.totalorder %v870_v46, %v2309_v20  ;;  %vm889_vm10 = vcmp.eq.s32.totalorder %v871_v8, %v2309_v20  ;;  %vm890_vm11 = vcmp.eq.s32.totalorder %v872_v48, %v2309_v20 }
 0x2e3   : > { %935 = vst [vmem:[%s2189_s24 + $0x40] sm:$0xff] %v919_v55  ;;  %v920_v59 = vsel %vm888_vm9, 0.0, %v904_v0  ;;  %v921_v60 = vsel %vm889_vm10, 0.0, %v905_v47  ;;  %v922_v61 = vsel %vm890_vm11, 0.0, %v906_v49  ;;  %vm891_vm12 = vcmp.eq.s32.totalorder %v873_v50, %v2309_v20 }
 0x2e4   : > { %936 = vst [vmem:[%s2189_s24 + $0x48] sm:$0xff] %v920_v59  ;;  %937 = vst [vmem:[%s2189_s24 + $0x50] sm:$0xff] %v921_v60  ;;  %v923_v62 = vsel %vm891_vm12, 0.0, %v907_v51  ;;  %vm892_vm13 = vcmp.eq.s32.totalorder %v874_v52, %v2309_v20  ;;  %vm893_vm14 = vcmp.eq.s32.totalorder %v875_v53, %v2309_v20  ;;  %vm894_vm15 = vcmp.eq.s32.totalorder %v876_v54, %v2309_v20 }
 0x2e5   : > { %938 = vst [vmem:[%s2189_s24 + $0x58] sm:$0xff] %v922_v61  ;;  %939 = vst [vmem:[%s2189_s24 + $0x60] sm:$0xff] %v923_v62  ;;  %v924_v63 = vsel %vm892_vm13, 0.0, %v908_v56  ;;  %v925_v1 = vsel %vm893_vm14, 0.0, %v909_v57  ;;  %v926_v2 = vsel %vm894_vm15, 0.0, %v910_v58 }
 0x2e6   : > { %940 = vst [vmem:[%s2189_s24 + $0x68] sm:$0xff] %v924_v63  ;;  %941 = vst [vmem:[%s2189_s24 + $0x70] sm:$0xff] %v925_v1 }
 0x2e7   : > { %942 = vst [vmem:[%s2189_s24 + $0x78] sm:$0xff] %v926_v2 }
 0x2e8 PF: > { %s2505_s29 = sld [smem:[#allocation14_spill]]  ;;  %s2506_s5 = sld [smem:[#allocation18_spill]] }
 0x2e9   : > { %s1145_s2 = sshll.u32 %s1783_s26, 6  ;;  %s964_s8 = sshll.u32 %s2189_s24, 4  ;;  %s2346_s8 = int_to_ptr.vmem [resolvable:$true] %s964_s8 }
 0x2ea   : > { %s2507_s3 = sld [smem:[#allocation23_spill]]  ;;  %s2355_s13 = scalar_lea.sflag [#allocation6], %s283_s12 }
 0x2eb   : > { %s1633_s11 = scalar_lea.vmem %s2346_s8, 2048  ;;  %s1808_s26 = smov [#allocation9]  }
 0x2ec   : > { %p1634_p4 = scmp.ne.s32.totalorder %s2346_s8, %s1633_s11  ;;  %s1637_s24 = sshll.u32 %s1808_s26, 4  ;;  %s1638_s24 = int_to_ptr.vmem [resolvable:$false] %s1637_s24 }
 0x2ed   : > { %s1639_s21 = scalar_lea.vmem %s1638_s24, 4096  ;;  %p1640_p7 = scmp.lt.s32.totalorder %s2346_s8, %s1638_s24 }
 0x2ee   : > { %s961_s7 = sadd.s32 %s2505_s29, %s1145_s2  ;;  %p2508_p8 = scmp.ne.s32.totalorder %s2506_s5, 0 }
 0x2ef   : > { %s1140_s0 = sshll.u32 %s961_s7, 7  ;;  %p1641_p1 = scmp.lt.s32.totalorder %s1639_s21, %s1633_s11 }
 0x2f0   : > { %s2351_s6 = scalar_lea.hbm %s2507_s3, %s1140_s0  ;;  %p1635_p6 = pnand %p1634_p4, %p2508_p8 }
 0x2f1   : > { %p1642_p5 = por %p1641_p1, %p1640_p7 }
 0x2f2   : > { %p1636_p9 = pneg %p1635_p6 }
 0x2f4   : > { %p1643_p0 = pnand %p1642_p5, %p1636_p9 }
 0x2f6   : > { %1646 = shalt.err (!%p1643_p0)
}
 0x2f7   : > { %s1647_s12 = scalar_lea.hbm %s2351_s6, 2048  ;;  %s1651_s7 = scalar_lea.hbm %s2507_s3, 32768 }
 0x2f8   : > { %p1648_p13 = scmp.ne.s32.totalorder %s2351_s6, %s1647_s12  ;;  %p1652_p12 = scmp.lt.u32.totalorder %s2351_s6, %s2507_s3 }
 0x2f9   : > { %p1653_p11 = scmp.lt.u32.totalorder %s1651_s7, %s1647_s12  ;;  %p1655_p4 = scmp.lt.u32.totalorder %s1647_s12, %s2351_s6 }
 0x2fa   : > { %p1649_p2 = pnand %p1648_p13, %p2508_p8 }
 0x2fb   : > { %p1654_p3 = por %p1653_p11, %p1652_p12 }
 0x2fc   : > { %p1650_p10 = pneg %p1649_p2 }
 0x2fd   : > { %p1656_p6 = por %p1655_p4, %p1654_p3 }
 0x2ff   : > { %p1657_p9 = pnand %p1656_p6, %p1650_p10 }
 0x301   : > { %1660 = shalt.err (!%p1657_p9)
}
 0x302   : > { %s1809_s1 = smov 128   ;;  %s1810_s11 = smov 512  }
 0x303   : > { %s1811_s26 = smov 8  }
 0x304   : > { %1422 = dma.vmem_to_hbm [thread:$0]  (%p2508_p8), %s2346_s8, 2048, %s2351_s6, %s2355_s13, %s1809_s1, %s1810_s11, %s1811_s26  }
 0x305 PF: > { %p1436_p7 = scmp.ge.s32.totalorder %s1799_s30, 2  ;;  %s983_s24 = sand.u32 1, %s1739_s15  }
 0x306   : > { %p2509_p1 = scmp.ne.s32.totalorder %s2487_s25, 0  ;;  %s984_s21 = scalar_lea.sflag [#allocation6], %s983_s24 }
 0x308   : > { %p1432_p5 = pnand %p1436_p7, %p2509_p1 }
 0x30a   : > { %1734 = dma.done.wait (!%p1432_p5), %s984_s21, 2048  }
 0x30b   : > { %1736 = vsyncadd (!%p1432_p5), %s984_s21, 4294965248  ;;  %s24_s30 = sadd.s32 1, %s1799_s30   ;;  %s2511_s26 = sld [smem:[#allocation15_spill]] }
 0x30c   : > { %p2384_p0 = scmp.ge.s32.totalorder %s24_s30, 66   ;;  %s2512_s5 = sld [smem:[#allocation16_spill]] }
 0x30d   : > { %s2513_s8 = sld [smem:[#allocation17_spill]]  ;;  %s2514_s29 = sld [smem:[#allocation19_spill]] }
 0x30e   : > { %s2515_s15 = smov %s1743_s16  ;;  %s2516_s16 = smov %s1747_s17 }
 0x30f   : > { %s2517_s17 = smov %s2059_s10  ;;  %s2518_s18 = smov %s1755_s19 }
 0x310   : > { %s2519_s19 = smov %s1759_s20  ;;  %s2520_s20 = smov %s2045_s9 }
 0x311   : > { %s2521_s21 = smov %s1767_s22  ;;  %s2522_s22 = smov %s1771_s23 }
 0x312   : > { %s2523_s23 = smov %s2056_s14  ;;  %s2524_s24 = smov %s1787_s27 }
 0x313   : > { %s2525_s25 = smov %s1791_s28  ;;  %s2526_s27 = smov %s2512_s5 }
 0x314   : > { %s2527_s28 = smov %s2513_s8  ;;  %23 = sbr.rel (!%p2384_p0) target bundleno = 18 (0x12), region = 127 }
 0x31b   :  { %997 = vsyncpa [#allocation5], 1 }
 0x31c   :  { %999 = vsyncpa [#allocation5 + $0x1], 1 }
 0x31d   :  { %1000 = vsyncpa [#allocation8], 1 }
 0x31e   :  { %1002 = vsyncpa [#allocation8 + $0x1], 1 }
 0x31f   :  { %1003 = vsyncpa [#allocation6], 1 }
 0x320   :  { %1005 = vsyncpa [#allocation6 + $0x1], 1 }

</bundles_post_ra>
